<compile_context>
chip_gen: v7x
topology: tpu7x:2x2x1
jax: 0.10.0
libtpu: 0.0.40
codegen_flags: <defaults>
</compile_context>

<pallas_src>
import jax
import jax.numpy as jnp
from jax.experimental import pallas as pl
from jax.experimental.pallas import tpu as pltpu


def _round_up(a, b):
    return (a + b - 1) // b * b


# ----------------------------------------------------------------------------
# Fused kernel: whole layer stack for one image, state resident in VMEM
# ----------------------------------------------------------------------------
def _make_kernel(F, Cin, H, W, NB, PREF):
    Wp2 = W + 2
    LW = H * Wp2                   # "wide" conv-output length per channel
    interior = Wp2 + 1             # flat offset of padded position (1, 1)
    STORE = PREF + interior        # 128-aligned writeback offset by construction

    def kernel(x_ref, w0_ref, b0_ref, wm_ref, bm_ref, o_ref,
               feat, tmp, src16, col, obuf):
        # Zero the persistent padded-layout buffers once per image: the shifted
        # tap reads rely on the zero pad ring / tail at the image borders.
        feat[...] = jnp.zeros_like(feat)
        tmp[...] = jnp.zeros_like(tmp)

        # Validity mask over the wide output: kills the 2 wrap-around columns of
        # every row.  Generated in-kernel (no HBM mask input), hoisted out of
        # the layer loop.
        lane = jax.lax.broadcasted_iota(jnp.int32, (F, LW), 1)
        valid = (lane % Wp2) < W

        # ---------------- conv0 (Cin -> F) + LeakyReLU(0.1) ----------------
        # Cin is tiny, so 9 per-tap dots (K = Cin) read straight from the input.
        x16 = x_ref[0].astype(jnp.bfloat16)            # (Cin, LP_PAD)
        acc = jnp.zeros((F, LW), jnp.float32)
        for k in range(9):
            off = (k // 3) * Wp2 + (k % 3)
            acc = acc + jnp.dot(
                w0_ref[k],                             # (F, Cin) bf16
                x16[:, off:off + LW],                  # (Cin, LW) bf16, static slice
                preferred_element_type=jnp.float32)
        acc = acc + b0_ref[...]                        # (F, 1) broadcast over lanes
        acc = jnp.where(acc >= 0.0, acc, 0.1 * acc)    # LeakyReLU(0.1)
        feat[:, pl.ds(STORE, LW)] = jnp.where(valid, acc, 0.0)

        # ---------- residual blocks: ONE K=9F MXU contraction per conv ----------
        def conv3x3_merged(src, w, b):
            # src: (F, PL) bf16 padded-layout ref.  Stage the 9 shifted taps into
            # the im2col buffer (lane offset 0, aligned), then one (F,9F)@(9F,LW).
            for k in range(9):
                off = PREF + (k // 3) * Wp2 + (k % 3)
                col[pl.ds(k * F, F), :] = src[:, pl.ds(off, LW)]
            return jnp.dot(w, col[...], preferred_element_type=jnp.float32) + b

        @pl.loop(0, NB)
        def _(bi):
            # Residual trunk (feat) stays f32; bf16 only for the MXU operands.
            src16[...] = feat[...].astype(jnp.bfloat16)
            a1 = conv3x3_merged(src16, wm_ref[2 * bi], bm_ref[2 * bi])
            a1 = jnp.where(jnp.logical_and(valid, a1 > 0.0), a1, 0.0)   # ReLU + mask
            tmp[:, pl.ds(STORE, LW)] = a1.astype(jnp.bfloat16)
            a2 = conv3x3_merged(tmp, wm_ref[2 * bi + 1], bm_ref[2 * bi + 1])
            feat[:, pl.ds(STORE, LW)] = (feat[:, pl.ds(STORE, LW)]
                                         + jnp.where(valid, a2, 0.0))

        # -------- compact NCHW output: strip the pad ring in-kernel --------
        # H is a trace-time constant -> static per-row copies into a compact
        # (F, H*W) VMEM buffer, then a single lane-dense block write.
        for y in range(H):
            obuf[:, pl.ds(y * W, W)] = feat[:, pl.ds(STORE + y * Wp2, W)]
        o_ref[0] = obuf[...]

    return kernel


# ----------------------------------------------------------------------------
# Forward pass (NCHW in / NCHW out, like the PyTorch module)
# ----------------------------------------------------------------------------
def conv_residual_blocks_forward(x_nchw, params):
    N, Cin, H, W = x_nchw.shape
    F = params["w0"].shape[0]
    NB = len(params["blocks"])
    assert NB >= 1

    Wp2 = W + 2
    LP = (H + 2) * Wp2              # flat length of the zero-padded image
    LW = H * Wp2                    # wide conv-output length per channel
    LP_PAD = _round_up(LP + 2, 128) # +2: last tap of last wide row reads past LP
    interior = Wp2 + 1
    PREF = (-interior) % 128        # prefix so the interior store is 128-aligned
    PL = _round_up(PREF + LP + 2, 128)

    # ---- glue: spatial zero-pad + flatten per channel (channels stay at true Cin)
    xp = jnp.pad(x_nchw.astype(jnp.float32), ((0, 0), (0, 0), (1, 1), (1, 1)))
    xp = xp.reshape(N, Cin, LP)
    xp = jnp.pad(xp, ((0, 0), (0, 0), (0, LP_PAD - LP)))          # (N, Cin, LP_PAD)

    # ---- glue: conv0 weights per tap (9, F, Cin); block weights merged (F, 9F)
    w0 = jnp.transpose(params["w0"], (2, 3, 0, 1)).reshape(9, F, Cin)
    w0 = w0.astype(jnp.bfloat16)
    b0 = params["b0"].astype(jnp.float32).reshape(F, 1)

    wm_list, bm_list = [], []
    for blk in params["blocks"]:
        for wkey, bkey in (("w1", "b1"), ("w2", "b2")):
            # W_merged[co, k*F + ci] = w[co, ci, ky, kx] with k = ky*3 + kx
            wm_list.append(jnp.transpose(blk[wkey], (0, 2, 3, 1)).reshape(F, 9 * F))
            bm_list.append(blk[bkey])
    wm = jnp.stack(wm_list).astype(jnp.bfloat16)                  # (2*NB, F, 9F)
    bm = jnp.stack(bm_list).astype(jnp.float32).reshape(2 * NB, F, 1)

    # ---- VMEM budget (per-generation cap with compiler headroom)
    need = (2 * (Cin * LP_PAD * 4 + F * H * W * 4 + w0.size * 2
                 + wm.size * 2 + (b0.size + bm.size) * 4)
            + F * PL * 4 + 2 * F * PL * 2 + 9 * F * LW * 2 + F * H * W * 4)
    try:
        cap = pltpu.get_tpu_info().vmem_capacity_bytes
    except Exception:
        cap = 64 * 2 ** 20
    vmem_limit = int(min(int(cap * 0.85), max(8 * 2 ** 20, 2 * need)))

    out_flat = pl.pallas_call(
        _make_kernel(F, Cin, H, W, NB, PREF),
        out_shape=jax.ShapeDtypeStruct((N, F, H * W), jnp.float32),
        grid=(N,),
        in_specs=[
            pl.BlockSpec((1, Cin, LP_PAD), lambda n: (n, 0, 0)),     # padded input
            pl.BlockSpec((9, F, Cin), lambda n: (0, 0, 0)),          # conv0 weights
            pl.BlockSpec((F, 1), lambda n: (0, 0)),                  # conv0 bias
            pl.BlockSpec((2 * NB, F, 9 * F), lambda n: (0, 0, 0)),   # merged block weights
            pl.BlockSpec((2 * NB, F, 1), lambda n: (0, 0, 0)),       # block biases
        ],
        out_specs=pl.BlockSpec((1, F, H * W), lambda n: (n, 0, 0)),
        scratch_shapes=[
            pltpu.VMEM((F, PL), jnp.float32),        # feat (residual trunk, f32)
            pltpu.VMEM((F, PL), jnp.bfloat16),       # tmp  (conv1 output)
            pltpu.VMEM((F, PL), jnp.bfloat16),       # src16 (bf16 view of feat)
            pltpu.VMEM((9 * F, LW), jnp.bfloat16),   # im2col staging (K = 9F)
            pltpu.VMEM((F, H * W), jnp.float32),     # compact output staging
        ],
        compiler_params=pltpu.CompilerParams(
            dimension_semantics=("parallel",),
            vmem_limit_bytes=vmem_limit,
        ),
    )(xp, w0, b0, wm, bm)

    return out_flat.reshape(N, F, H, W)


# ----------------------------------------------------------------------------
# Pure-JAX reference (mirrors the PyTorch module) and synthetic init
# ----------------------------------------------------------------------------
def _reference_forward(x, params):
    def conv(x, w, b):
        y = jax.lax.conv_general_dilated(
            x, w, (1, 1), ((1, 1), (1, 1)),
            dimension_numbers=("NCHW", "OIHW", "NCHW"))
        return y + b[None, :, None, None]

    feat = conv(x, params["w0"], params["b0"])
    feat = jnp.where(feat >= 0, feat, 0.1 * feat)          # LeakyReLU(0.1)
    for blk in params["blocks"]:
        t = jax.nn.relu(conv(feat, blk["w1"], blk["b1"]))
        feat = feat + conv(t, blk["w2"], blk["b2"])        # res_scale = 1
    return feat


def init_params(key, num_in_ch, num_out_ch, num_block):
    def conv_init(k, cin, cout, scale):
        kw, kb = jax.random.split(k)
        fan_in = cin * 9
        w = jax.random.normal(kw, (cout, cin, 3, 3), jnp.float32)
        w = w * (scale / jnp.sqrt(fan_in))
        b = jax.random.normal(kb, (cout,), jnp.float32) * 0.01
        return w, b

    keys = jax.random.split(key, 1 + 2 * num_block)
    w0, b0 = conv_init(keys[0], num_in_ch, num_out_ch, 1.0)
    blocks = []
    for i in range(num_block):
        w1, b1 = conv_init(keys[1 + 2 * i], num_out_ch, num_out_ch, 0.1)
        w2, b2 = conv_init(keys[2 + 2 * i], num_out_ch, num_out_ch, 0.1)
        blocks.append({"w1": w1, "b1": b1, "w2": w2, "b2": b2})
    return {"w0": w0, "b0": b0, "blocks": blocks}


if __name__ == "__main__":
    # Small shapes consistent with the module: batch=2, in_ch=4, feat=32,
    # spatial=16x16, num_block=2.
    N, CIN, COUT, H, W, NUM_BLOCK = 2, 4, 32, 16, 16, 2

    key = jax.random.PRNGKey(0)
    kx, kp = jax.random.split(key)
    x = jax.random.normal(kx, (N, CIN, H, W), jnp.float32)   # NCHW like PyTorch
    params = init_params(kp, CIN, COUT, NUM_BLOCK)

    fwd = jax.jit(conv_residual_blocks_forward)
    out = jax.block_until_ready(fwd(x, params))

    assert out.shape == (N, COUT, H, W), out.shape
    assert bool(jnp.all(jnp.isfinite(out)))

    # loose tolerance: kernel uses bf16 MXU operands with f32 accumulation
    ref = jax.block_until_ready(_reference_forward(x, params))
    err = float(jnp.max(jnp.abs(out - ref)))
    assert err < 5e-2, f"max abs err vs reference: {err}"
    print("KERNEL_OK")
</pallas_src>

<mosaic_0001>
module attributes {stable_mosaic.version = 11 : i64} {
  func.func @kernel(%arg0: i32, %arg1: memref<1x4x384xf32, #tpu.memory_space<vmem>>, %arg2: memref<9x32x4xbf16, #tpu.memory_space<vmem>>, %arg3: memref<32x1xf32, #tpu.memory_space<vmem>>, %arg4: memref<4x32x288xbf16, #tpu.memory_space<vmem>>, %arg5: memref<4x32x1xf32, #tpu.memory_space<vmem>>, %arg6: memref<1x32x256xf32, #tpu.memory_space<vmem>>, %arg7: memref<32x512xf32, #tpu.memory_space<vmem>>, %arg8: memref<32x512xbf16, #tpu.memory_space<vmem>>, %arg9: memref<32x512xbf16, #tpu.memory_space<vmem>>, %arg10: memref<288x288xbf16, #tpu.memory_space<vmem>>, %arg11: memref<32x256xf32, #tpu.memory_space<vmem>>) attributes {dimension_semantics = [#tpu.dimension_semantics<parallel>], iteration_bounds = array<i64: 2>, scalar_prefetch = 0 : i64, scratch_operands = 5 : i64, tpu.core_type = #tpu.core_type<tc>, window_params = [{transform_indices = @transform_0, window_bounds = array<i64: 1, 4, 384>}, {pipeline_mode = #tpu.pipeline_mode<synchronous>, transform_indices = @transform_1, window_bounds = array<i64: 9, 32, 4>}, {pipeline_mode = #tpu.pipeline_mode<synchronous>, transform_indices = @transform_2, window_bounds = array<i64: 32, 1>}, {pipeline_mode = #tpu.pipeline_mode<synchronous>, transform_indices = @transform_3, window_bounds = array<i64: 4, 32, 288>}, {pipeline_mode = #tpu.pipeline_mode<synchronous>, transform_indices = @transform_4, window_bounds = array<i64: 4, 32, 1>}, {transform_indices = @transform_5, window_bounds = array<i64: 1, 32, 256>}]} {
    %cst = arith.constant 0.000000e+00 : f32
    %0 = vector.broadcast %cst : f32 to vector<32x512xf32>
    %c0 = arith.constant 0 : index
    %c0_0 = arith.constant 0 : index
    %1 = vector.load %arg7[%c0, %c0_0] : memref<32x512xf32, #tpu.memory_space<vmem>>, vector<32x512xf32>
    tpu.vector_store %arg7[%c0, %c0_0], %0 {strides = array<i32>} : memref<32x512xf32, #tpu.memory_space<vmem>>, vector<32x512xf32>,
    %cst_1 = arith.constant 0.000000e+00 : bf16
    %2 = vector.broadcast %cst_1 : bf16 to vector<32x512xbf16>
    %c0_2 = arith.constant 0 : index
    %c0_3 = arith.constant 0 : index
    %3 = vector.load %arg8[%c0_2, %c0_3] : memref<32x512xbf16, #tpu.memory_space<vmem>>, vector<32x512xbf16>
    tpu.vector_store %arg8[%c0_2, %c0_3], %2 {strides = array<i32>} : memref<32x512xbf16, #tpu.memory_space<vmem>>, vector<32x512xbf16>,
    %4 = tpu.iota {dimensions = array<i32: 1>} : vector<32x288xi32>
    %c18_i32 = arith.constant 18 : i32
    %c0_i32 = arith.constant 0 : i32
    %5 = arith.cmpi eq, %c18_i32, %c0_i32 : i32
    %c1_i32 = arith.constant 1 : i32
    %6 = arith.select %5, %c1_i32, %c18_i32 : i32
    %7 = vector.broadcast %6 : i32 to vector<32x288xi32>
    %8 = arith.remsi %4, %7 : vector<32x288xi32>
    %c0_i32_4 = arith.constant 0 : i32
    %9 = vector.broadcast %c0_i32_4 : i32 to vector<32x288xi32>
    %10 = arith.cmpi ne, %8, %9 : vector<32x288xi32>
    %c0_i32_5 = arith.constant 0 : i32
    %11 = vector.broadcast %c0_i32_5 : i32 to vector<32x288xi32>
    %12 = arith.cmpi slt, %8, %11 : vector<32x288xi32>
    %c0_i32_6 = arith.constant 0 : i32
    %13 = arith.cmpi slt, %6, %c0_i32_6 : i32
    %14 = vector.broadcast %13 : i1 to vector<32x288xi1>
    %15 = vector.broadcast %14 : vector<32x288xi1> to vector<32x288xi1>
    %16 = arith.xori %12, %15 : vector<32x288xi1>
    %17 = arith.andi %16, %10 : vector<32x288xi1>
    %18 = vector.broadcast %6 : i32 to vector<32x288xi32>
    %19 = arith.addi %8, %18 : vector<32x288xi32>
    %20 = arith.select %17, %19, %8 : vector<32x288xi1>, vector<32x288xi32>
    %c16_i32 = arith.constant 16 : i32
    %21 = vector.broadcast %c16_i32 : i32 to vector<32x288xi32>
    %22 = arith.cmpi slt, %20, %21 : vector<32x288xi32>
    %c0_7 = arith.constant 0 : index
    %c0_8 = arith.constant 0 : index
    %c0_9 = arith.constant 0 : index
    %23 = vector.load %arg1[%c0_7, %c0_8, %c0_9] : memref<1x4x384xf32, #tpu.memory_space<vmem>>, vector<1x4x384xf32>
    %24 = vector.shape_cast %23 : vector<1x4x384xf32> to vector<4x384xf32>
    %25 = arith.truncf %24 : vector<4x384xf32> to vector<4x384xbf16>
    %cst_10 = arith.constant 0.000000e+00 : f32
    %26 = vector.broadcast %cst_10 : f32 to vector<32x288xf32>
    %c0_11 = arith.constant 0 : index
    %c0_12 = arith.constant 0 : index
    %c0_13 = arith.constant 0 : index
    %27 = vector.load %arg2[%c0_11, %c0_12, %c0_13] : memref<9x32x4xbf16, #tpu.memory_space<vmem>>, vector<1x32x4xbf16>
    %28 = vector.shape_cast %27 : vector<1x32x4xbf16> to vector<32x4xbf16>
    %29 = vector.extract_strided_slice %25 {offsets = [0, 0], sizes = [4, 288], strides = [1, 1]} : vector<4x384xbf16> to vector<4x288xbf16>
    %cst_14 = arith.constant dense<0.000000e+00> : vector<32x288xf32>
    %30 = tpu.matmul %28, %29, %cst_14 {dimension_numbers = #tpu.dot_dimension_numbers<[1], [0], [0], [1], [0, 0, 1, 1], [], []>} : vector<32x4xbf16>, vector<4x288xbf16>, vector<32x288xf32> -> vector<32x288xf32>
    %31 = arith.addf %26, %30 : vector<32x288xf32>
    %c1 = arith.constant 1 : index
    %c0_15 = arith.constant 0 : index
    %c0_16 = arith.constant 0 : index
    %32 = vector.load %arg2[%c1, %c0_15, %c0_16] : memref<9x32x4xbf16, #tpu.memory_space<vmem>>, vector<1x32x4xbf16>
    %33 = vector.shape_cast %32 : vector<1x32x4xbf16> to vector<32x4xbf16>
    %34 = vector.extract_strided_slice %25 {offsets = [0, 1], sizes = [4, 288], strides = [1, 1]} : vector<4x384xbf16> to vector<4x288xbf16>
    %cst_17 = arith.constant dense<0.000000e+00> : vector<32x288xf32>
    %35 = tpu.matmul %33, %34, %cst_17 {dimension_numbers = #tpu.dot_dimension_numbers<[1], [0], [0], [1], [0, 0, 1, 1], [], []>} : vector<32x4xbf16>, vector<4x288xbf16>, vector<32x288xf32> -> vector<32x288xf32>
    %36 = arith.addf %31, %35 : vector<32x288xf32>
    %c2 = arith.constant 2 : index
    %c0_18 = arith.constant 0 : index
    %c0_19 = arith.constant 0 : index
    %37 = vector.load %arg2[%c2, %c0_18, %c0_19] : memref<9x32x4xbf16, #tpu.memory_space<vmem>>, vector<1x32x4xbf16>
    %38 = vector.shape_cast %37 : vector<1x32x4xbf16> to vector<32x4xbf16>
    %39 = vector.extract_strided_slice %25 {offsets = [0, 2], sizes = [4, 288], strides = [1, 1]} : vector<4x384xbf16> to vector<4x288xbf16>
    %cst_20 = arith.constant dense<0.000000e+00> : vector<32x288xf32>
    %40 = tpu.matmul %38, %39, %cst_20 {dimension_numbers = #tpu.dot_dimension_numbers<[1], [0], [0], [1], [0, 0, 1, 1], [], []>} : vector<32x4xbf16>, vector<4x288xbf16>, vector<32x288xf32> -> vector<32x288xf32>
    %41 = arith.addf %36, %40 : vector<32x288xf32>
    %c3 = arith.constant 3 : index
    %c0_21 = arith.constant 0 : index
    %c0_22 = arith.constant 0 : index
    %42 = vector.load %arg2[%c3, %c0_21, %c0_22] : memref<9x32x4xbf16, #tpu.memory_space<vmem>>, vector<1x32x4xbf16>
    %43 = vector.shape_cast %42 : vector<1x32x4xbf16> to vector<32x4xbf16>
    %44 = vector.extract_strided_slice %25 {offsets = [0, 18], sizes = [4, 288], strides = [1, 1]} : vector<4x384xbf16> to vector<4x288xbf16>
    %cst_23 = arith.constant dense<0.000000e+00> : vector<32x288xf32>
    %45 = tpu.matmul %43, %44, %cst_23 {dimension_numbers = #tpu.dot_dimension_numbers<[1], [0], [0], [1], [0, 0, 1, 1], [], []>} : vector<32x4xbf16>, vector<4x288xbf16>, vector<32x288xf32> -> vector<32x288xf32>
    %46 = arith.addf %41, %45 : vector<32x288xf32>
    %c4 = arith.constant 4 : index
    %c0_24 = arith.constant 0 : index
    %c0_25 = arith.constant 0 : index
    %47 = vector.load %arg2[%c4, %c0_24, %c0_25] : memref<9x32x4xbf16, #tpu.memory_space<vmem>>, vector<1x32x4xbf16>
    %48 = vector.shape_cast %47 : vector<1x32x4xbf16> to vector<32x4xbf16>
    %49 = vector.extract_strided_slice %25 {offsets = [0, 19], sizes = [4, 288], strides = [1, 1]} : vector<4x384xbf16> to vector<4x288xbf16>
    %cst_26 = arith.constant dense<0.000000e+00> : vector<32x288xf32>
    %50 = tpu.matmul %48, %49, %cst_26 {dimension_numbers = #tpu.dot_dimension_numbers<[1], [0], [0], [1], [0, 0, 1, 1], [], []>} : vector<32x4xbf16>, vector<4x288xbf16>, vector<32x288xf32> -> vector<32x288xf32>
    %51 = arith.addf %46, %50 : vector<32x288xf32>
    %c5 = arith.constant 5 : index
    %c0_27 = arith.constant 0 : index
    %c0_28 = arith.constant 0 : index
    %52 = vector.load %arg2[%c5, %c0_27, %c0_28] : memref<9x32x4xbf16, #tpu.memory_space<vmem>>, vector<1x32x4xbf16>
    %53 = vector.shape_cast %52 : vector<1x32x4xbf16> to vector<32x4xbf16>
    %54 = vector.extract_strided_slice %25 {offsets = [0, 20], sizes = [4, 288], strides = [1, 1]} : vector<4x384xbf16> to vector<4x288xbf16>
    %cst_29 = arith.constant dense<0.000000e+00> : vector<32x288xf32>
    %55 = tpu.matmul %53, %54, %cst_29 {dimension_numbers = #tpu.dot_dimension_numbers<[1], [0], [0], [1], [0, 0, 1, 1], [], []>} : vector<32x4xbf16>, vector<4x288xbf16>, vector<32x288xf32> -> vector<32x288xf32>
    %56 = arith.addf %51, %55 : vector<32x288xf32>
    %c6 = arith.constant 6 : index
    %c0_30 = arith.constant 0 : index
    %c0_31 = arith.constant 0 : index
    %57 = vector.load %arg2[%c6, %c0_30, %c0_31] : memref<9x32x4xbf16, #tpu.memory_space<vmem>>, vector<1x32x4xbf16>
    %58 = vector.shape_cast %57 : vector<1x32x4xbf16> to vector<32x4xbf16>
    %59 = vector.extract_strided_slice %25 {offsets = [0, 36], sizes = [4, 288], strides = [1, 1]} : vector<4x384xbf16> to vector<4x288xbf16>
    %cst_32 = arith.constant dense<0.000000e+00> : vector<32x288xf32>
    %60 = tpu.matmul %58, %59, %cst_32 {dimension_numbers = #tpu.dot_dimension_numbers<[1], [0], [0], [1], [0, 0, 1, 1], [], []>} : vector<32x4xbf16>, vector<4x288xbf16>, vector<32x288xf32> -> vector<32x288xf32>
    %61 = arith.addf %56, %60 : vector<32x288xf32>
    %c7 = arith.constant 7 : index
    %c0_33 = arith.constant 0 : index
    %c0_34 = arith.constant 0 : index
    %62 = vector.load %arg2[%c7, %c0_33, %c0_34] : memref<9x32x4xbf16, #tpu.memory_space<vmem>>, vector<1x32x4xbf16>
    %63 = vector.shape_cast %62 : vector<1x32x4xbf16> to vector<32x4xbf16>
    %64 = vector.extract_strided_slice %25 {offsets = [0, 37], sizes = [4, 288], strides = [1, 1]} : vector<4x384xbf16> to vector<4x288xbf16>
    %cst_35 = arith.constant dense<0.000000e+00> : vector<32x288xf32>
    %65 = tpu.matmul %63, %64, %cst_35 {dimension_numbers = #tpu.dot_dimension_numbers<[1], [0], [0], [1], [0, 0, 1, 1], [], []>} : vector<32x4xbf16>, vector<4x288xbf16>, vector<32x288xf32> -> vector<32x288xf32>
    %66 = arith.addf %61, %65 : vector<32x288xf32>
    %c8 = arith.constant 8 : index
    %c0_36 = arith.constant 0 : index
    %c0_37 = arith.constant 0 : index
    %67 = vector.load %arg2[%c8, %c0_36, %c0_37] : memref<9x32x4xbf16, #tpu.memory_space<vmem>>, vector<1x32x4xbf16>
    %68 = vector.shape_cast %67 : vector<1x32x4xbf16> to vector<32x4xbf16>
    %69 = vector.extract_strided_slice %25 {offsets = [0, 38], sizes = [4, 288], strides = [1, 1]} : vector<4x384xbf16> to vector<4x288xbf16>
    %cst_38 = arith.constant dense<0.000000e+00> : vector<32x288xf32>
    %70 = tpu.matmul %68, %69, %cst_38 {dimension_numbers = #tpu.dot_dimension_numbers<[1], [0], [0], [1], [0, 0, 1, 1], [], []>} : vector<32x4xbf16>, vector<4x288xbf16>, vector<32x288xf32> -> vector<32x288xf32>
    %71 = arith.addf %66, %70 : vector<32x288xf32>
    %c0_39 = arith.constant 0 : index
    %c0_40 = arith.constant 0 : index
    %72 = vector.load %arg3[%c0_39, %c0_40] : memref<32x1xf32, #tpu.memory_space<vmem>>, vector<32x1xf32>
    %73 = vector.broadcast %72 : vector<32x1xf32> to vector<32x288xf32>
    %74 = arith.addf %71, %73 : vector<32x288xf32>
    %cst_41 = arith.constant 0.000000e+00 : f32
    %75 = vector.broadcast %cst_41 : f32 to vector<32x288xf32>
    %76 = arith.cmpf oge, %74, %75 : vector<32x288xf32>
    %cst_42 = arith.constant 1.000000e-01 : f32
    %77 = vector.broadcast %cst_42 : f32 to vector<32x288xf32>
    %78 = arith.mulf %77, %74 : vector<32x288xf32>
    %79 = arith.select %76, %74, %78 : vector<32x288xi1>, vector<32x288xf32>
    %cst_43 = arith.constant 0.000000e+00 : f32
    %80 = vector.broadcast %cst_43 : f32 to vector<32x288xf32>
    %81 = arith.select %22, %79, %80 : vector<32x288xi1>, vector<32x288xf32>
    %c0_44 = arith.constant 0 : index
    %c128 = arith.constant 128 : index
    %82 = vector.load %arg7[%c0_44, %c128] : memref<32x512xf32, #tpu.memory_space<vmem>>, vector<32x288xf32>
    tpu.vector_store %arg7[%c0_44, %c128], %81 {strides = array<i32>} : memref<32x512xf32, #tpu.memory_space<vmem>>, vector<32x288xf32>,
    %c0_i32_45 = arith.constant 0 : i32
    %c2_i32 = arith.constant 2 : i32
    %83 = arith.addi %c0_i32_45, %c2_i32 : i32
    %c1_i32_46 = arith.constant 1 : i32
    scf.for %arg12 = %c0_i32_45 to %83 step %c1_i32_46  : i32 {
      %c1_i32_88 = arith.constant 1 : i32
      %120 = arith.muli %arg12, %c1_i32_88 : i32
      %c0_i32_89 = arith.constant 0 : i32
      %121 = arith.addi %c0_i32_89, %120 : i32
      %c0_90 = arith.constant 0 : index
      %c0_91 = arith.constant 0 : index
      %122 = vector.load %arg7[%c0_90, %c0_91] : memref<32x512xf32, #tpu.memory_space<vmem>>, vector<32x512xf32>
      %123 = arith.truncf %122 : vector<32x512xf32> to vector<32x512xbf16>
      %c0_92 = arith.constant 0 : index
      %c0_93 = arith.constant 0 : index
      %124 = vector.load %arg9[%c0_92, %c0_93] : memref<32x512xbf16, #tpu.memory_space<vmem>>, vector<32x512xbf16>
      tpu.vector_store %arg9[%c0_92, %c0_93], %123 {strides = array<i32>} : memref<32x512xbf16, #tpu.memory_space<vmem>>, vector<32x512xbf16>,
      %c2_i32_94 = arith.constant 2 : i32
      %125 = arith.muli %c2_i32_94, %121 : i32
      %126 = arith.index_cast %125 : i32 to index
      %c0_95 = arith.constant 0 : index
      %c0_96 = arith.constant 0 : index
      %127 = vector.load %arg4[%126, %c0_95, %c0_96] : memref<4x32x288xbf16, #tpu.memory_space<vmem>>, vector<1x32x288xbf16>
      %128 = vector.shape_cast %127 : vector<1x32x288xbf16> to vector<32x288xbf16>
      %c2_i32_97 = arith.constant 2 : i32
      %129 = arith.muli %c2_i32_97, %121 : i32
      %130 = arith.index_cast %129 : i32 to index
      %c0_98 = arith.constant 0 : index
      %c0_99 = arith.constant 0 : index
      %131 = vector.load %arg5[%130, %c0_98, %c0_99] : memref<4x32x1xf32, #tpu.memory_space<vmem>>, vector<1x32x1xf32>
      %132 = vector.shape_cast %131 : vector<1x32x1xf32> to vector<32x1xf32>
      %c0_100 = arith.constant 0 : index
      %c109 = arith.constant 109 : index
      %133 = vector.load %arg9[%c0_100, %c109] : memref<32x512xbf16, #tpu.memory_space<vmem>>, vector<32x288xbf16>
      %c0_101 = arith.constant 0 : index
      %c0_102 = arith.constant 0 : index
      %134 = vector.load %arg10[%c0_101, %c0_102] : memref<288x288xbf16, #tpu.memory_space<vmem>>, vector<32x288xbf16>
      tpu.vector_store %arg10[%c0_101, %c0_102], %133 {strides = array<i32>} : memref<288x288xbf16, #tpu.memory_space<vmem>>, vector<32x288xbf16>,
      %c0_103 = arith.constant 0 : index
      %c110 = arith.constant 110 : index
      %135 = vector.load %arg9[%c0_103, %c110] : memref<32x512xbf16, #tpu.memory_space<vmem>>, vector<32x288xbf16>
      %c32_104 = arith.constant 32 : index
      %c0_105 = arith.constant 0 : index
      %136 = vector.load %arg10[%c32_104, %c0_105] : memref<288x288xbf16, #tpu.memory_space<vmem>>, vector<32x288xbf16>
      tpu.vector_store %arg10[%c32_104, %c0_105], %135 {strides = array<i32>} : memref<288x288xbf16, #tpu.memory_space<vmem>>, vector<32x288xbf16>,
      %c0_106 = arith.constant 0 : index
      %c111 = arith.constant 111 : index
      %137 = vector.load %arg9[%c0_106, %c111] : memref<32x512xbf16, #tpu.memory_space<vmem>>, vector<32x288xbf16>
      %c64_107 = arith.constant 64 : index
      %c0_108 = arith.constant 0 : index
      %138 = vector.load %arg10[%c64_107, %c0_108] : memref<288x288xbf16, #tpu.memory_space<vmem>>, vector<32x288xbf16>
      tpu.vector_store %arg10[%c64_107, %c0_108], %137 {strides = array<i32>} : memref<288x288xbf16, #tpu.memory_space<vmem>>, vector<32x288xbf16>,
      %c0_109 = arith.constant 0 : index
      %c127 = arith.constant 127 : index
      %139 = vector.load %arg9[%c0_109, %c127] : memref<32x512xbf16, #tpu.memory_space<vmem>>, vector<32x288xbf16>
      %c96_110 = arith.constant 96 : index
      %c0_111 = arith.constant 0 : index
      %140 = vector.load %arg10[%c96_110, %c0_111] : memref<288x288xbf16, #tpu.memory_space<vmem>>, vector<32x288xbf16>
      tpu.vector_store %arg10[%c96_110, %c0_111], %139 {strides = array<i32>} : memref<288x288xbf16, #tpu.memory_space<vmem>>, vector<32x288xbf16>,
      %c0_112 = arith.constant 0 : index
      %c128_113 = arith.constant 128 : index
      %141 = vector.load %arg9[%c0_112, %c128_113] : memref<32x512xbf16, #tpu.memory_space<vmem>>, vector<32x288xbf16>
      %c128_114 = arith.constant 128 : index
      %c0_115 = arith.constant 0 : index
      %142 = vector.load %arg10[%c128_114, %c0_115] : memref<288x288xbf16, #tpu.memory_space<vmem>>, vector<32x288xbf16>
      tpu.vector_store %arg10[%c128_114, %c0_115], %141 {strides = array<i32>} : memref<288x288xbf16, #tpu.memory_space<vmem>>, vector<32x288xbf16>,
      %c0_116 = arith.constant 0 : index
      %c129 = arith.constant 129 : index
      %143 = vector.load %arg9[%c0_116, %c129] : memref<32x512xbf16, #tpu.memory_space<vmem>>, vector<32x288xbf16>
      %c160_117 = arith.constant 160 : index
      %c0_118 = arith.constant 0 : index
      %144 = vector.load %arg10[%c160_117, %c0_118] : memref<288x288xbf16, #tpu.memory_space<vmem>>, vector<32x288xbf16>
      tpu.vector_store %arg10[%c160_117, %c0_118], %143 {strides = array<i32>} : memref<288x288xbf16, #tpu.memory_space<vmem>>, vector<32x288xbf16>,
      %c0_119 = arith.constant 0 : index
      %c145 = arith.constant 145 : index
      %145 = vector.load %arg9[%c0_119, %c145] : memref<32x512xbf16, #tpu.memory_space<vmem>>, vector<32x288xbf16>
      %c192_120 = arith.constant 192 : index
      %c0_121 = arith.constant 0 : index
      %146 = vector.load %arg10[%c192_120, %c0_121] : memref<288x288xbf16, #tpu.memory_space<vmem>>, vector<32x288xbf16>
      tpu.vector_store %arg10[%c192_120, %c0_121], %145 {strides = array<i32>} : memref<288x288xbf16, #tpu.memory_space<vmem>>, vector<32x288xbf16>,
      %c0_122 = arith.constant 0 : index
      %c146_123 = arith.constant 146 : index
      %147 = vector.load %arg9[%c0_122, %c146_123] : memref<32x512xbf16, #tpu.memory_space<vmem>>, vector<32x288xbf16>
      %c224_124 = arith.constant 224 : index
      %c0_125 = arith.constant 0 : index
      %148 = vector.load %arg10[%c224_124, %c0_125] : memref<288x288xbf16, #tpu.memory_space<vmem>>, vector<32x288xbf16>
      tpu.vector_store %arg10[%c224_124, %c0_125], %147 {strides = array<i32>} : memref<288x288xbf16, #tpu.memory_space<vmem>>, vector<32x288xbf16>,
      %c0_126 = arith.constant 0 : index
      %c147 = arith.constant 147 : index
      %149 = vector.load %arg9[%c0_126, %c147] : memref<32x512xbf16, #tpu.memory_space<vmem>>, vector<32x288xbf16>
      %c256 = arith.constant 256 : index
      %c0_127 = arith.constant 0 : index
      %150 = vector.load %arg10[%c256, %c0_127] : memref<288x288xbf16, #tpu.memory_space<vmem>>, vector<32x288xbf16>
      tpu.vector_store %arg10[%c256, %c0_127], %149 {strides = array<i32>} : memref<288x288xbf16, #tpu.memory_space<vmem>>, vector<32x288xbf16>,
      %c0_128 = arith.constant 0 : index
      %c0_129 = arith.constant 0 : index
      %151 = vector.load %arg10[%c0_128, %c0_129] : memref<288x288xbf16, #tpu.memory_space<vmem>>, vector<288x288xbf16>
      %cst_130 = arith.constant dense<0.000000e+00> : vector<32x288xf32>
      %152 = tpu.matmul %128, %151, %cst_130 {dimension_numbers = #tpu.dot_dimension_numbers<[1], [0], [0], [1], [0, 0, 1, 1], [], []>} : vector<32x288xbf16>, vector<288x288xbf16>, vector<32x288xf32> -> vector<32x288xf32>
      %153 = vector.broadcast %132 : vector<32x1xf32> to vector<32x288xf32>
      %154 = arith.addf %152, %153 : vector<32x288xf32>
      %cst_131 = arith.constant 0.000000e+00 : f32
      %155 = vector.broadcast %cst_131 : f32 to vector<32x288xf32>
      %156 = arith.cmpf ogt, %154, %155 : vector<32x288xf32>
      %157 = arith.andi %22, %156 : vector<32x288xi1>
      %cst_132 = arith.constant 0.000000e+00 : f32
      %158 = vector.broadcast %cst_132 : f32 to vector<32x288xf32>
      %159 = arith.select %157, %154, %158 : vector<32x288xi1>, vector<32x288xf32>
      %160 = arith.truncf %159 : vector<32x288xf32> to vector<32x288xbf16>
      %c0_133 = arith.constant 0 : index
      %c128_134 = arith.constant 128 : index
      %161 = vector.load %arg8[%c0_133, %c128_134] : memref<32x512xbf16, #tpu.memory_space<vmem>>, vector<32x288xbf16>
      tpu.vector_store %arg8[%c0_133, %c128_134], %160 {strides = array<i32>} : memref<32x512xbf16, #tpu.memory_space<vmem>>, vector<32x288xbf16>,
      %c2_i32_135 = arith.constant 2 : i32
      %162 = arith.muli %c2_i32_135, %121 : i32
      %c1_i32_136 = arith.constant 1 : i32
      %163 = arith.addi %162, %c1_i32_136 : i32
      %164 = arith.index_cast %163 : i32 to index
      %c0_137 = arith.constant 0 : index
      %c0_138 = arith.constant 0 : index
      %165 = vector.load %arg4[%164, %c0_137, %c0_138] : memref<4x32x288xbf16, #tpu.memory_space<vmem>>, vector<1x32x288xbf16>
      %166 = vector.shape_cast %165 : vector<1x32x288xbf16> to vector<32x288xbf16>
      %c2_i32_139 = arith.constant 2 : i32
      %167 = arith.muli %c2_i32_139, %121 : i32
      %c1_i32_140 = arith.constant 1 : i32
      %168 = arith.addi %167, %c1_i32_140 : i32
      %169 = arith.index_cast %168 : i32 to index
      %c0_141 = arith.constant 0 : index
      %c0_142 = arith.constant 0 : index
      %170 = vector.load %arg5[%169, %c0_141, %c0_142] : memref<4x32x1xf32, #tpu.memory_space<vmem>>, vector<1x32x1xf32>
      %171 = vector.shape_cast %170 : vector<1x32x1xf32> to vector<32x1xf32>
      %c0_143 = arith.constant 0 : index
      %c109_144 = arith.constant 109 : index
      %172 = vector.load %arg8[%c0_143, %c109_144] : memref<32x512xbf16, #tpu.memory_space<vmem>>, vector<32x288xbf16>
      %c0_145 = arith.constant 0 : index
      %c0_146 = arith.constant 0 : index
      %173 = vector.load %arg10[%c0_145, %c0_146] : memref<288x288xbf16, #tpu.memory_space<vmem>>, vector<32x288xbf16>
      tpu.vector_store %arg10[%c0_145, %c0_146], %172 {strides = array<i32>} : memref<288x288xbf16, #tpu.memory_space<vmem>>, vector<32x288xbf16>,
      %c0_147 = arith.constant 0 : index
      %c110_148 = arith.constant 110 : index
      %174 = vector.load %arg8[%c0_147, %c110_148] : memref<32x512xbf16, #tpu.memory_space<vmem>>, vector<32x288xbf16>
      %c32_149 = arith.constant 32 : index
      %c0_150 = arith.constant 0 : index
      %175 = vector.load %arg10[%c32_149, %c0_150] : memref<288x288xbf16, #tpu.memory_space<vmem>>, vector<32x288xbf16>
      tpu.vector_store %arg10[%c32_149, %c0_150], %174 {strides = array<i32>} : memref<288x288xbf16, #tpu.memory_space<vmem>>, vector<32x288xbf16>,
      %c0_151 = arith.constant 0 : index
      %c111_152 = arith.constant 111 : index
      %176 = vector.load %arg8[%c0_151, %c111_152] : memref<32x512xbf16, #tpu.memory_space<vmem>>, vector<32x288xbf16>
      %c64_153 = arith.constant 64 : index
      %c0_154 = arith.constant 0 : index
      %177 = vector.load %arg10[%c64_153, %c0_154] : memref<288x288xbf16, #tpu.memory_space<vmem>>, vector<32x288xbf16>
      tpu.vector_store %arg10[%c64_153, %c0_154], %176 {strides = array<i32>} : memref<288x288xbf16, #tpu.memory_space<vmem>>, vector<32x288xbf16>,
      %c0_155 = arith.constant 0 : index
      %c127_156 = arith.constant 127 : index
      %178 = vector.load %arg8[%c0_155, %c127_156] : memref<32x512xbf16, #tpu.memory_space<vmem>>, vector<32x288xbf16>
      %c96_157 = arith.constant 96 : index
      %c0_158 = arith.constant 0 : index
      %179 = vector.load %arg10[%c96_157, %c0_158] : memref<288x288xbf16, #tpu.memory_space<vmem>>, vector<32x288xbf16>
      tpu.vector_store %arg10[%c96_157, %c0_158], %178 {strides = array<i32>} : memref<288x288xbf16, #tpu.memory_space<vmem>>, vector<32x288xbf16>,
      %c0_159 = arith.constant 0 : index
      %c128_160 = arith.constant 128 : index
      %180 = vector.load %arg8[%c0_159, %c128_160] : memref<32x512xbf16, #tpu.memory_space<vmem>>, vector<32x288xbf16>
      %c128_161 = arith.constant 128 : index
      %c0_162 = arith.constant 0 : index
      %181 = vector.load %arg10[%c128_161, %c0_162] : memref<288x288xbf16, #tpu.memory_space<vmem>>, vector<32x288xbf16>
      tpu.vector_store %arg10[%c128_161, %c0_162], %180 {strides = array<i32>} : memref<288x288xbf16, #tpu.memory_space<vmem>>, vector<32x288xbf16>,
      %c0_163 = arith.constant 0 : index
      %c129_164 = arith.constant 129 : index
      %182 = vector.load %arg8[%c0_163, %c129_164] : memref<32x512xbf16, #tpu.memory_space<vmem>>, vector<32x288xbf16>
      %c160_165 = arith.constant 160 : index
      %c0_166 = arith.constant 0 : index
      %183 = vector.load %arg10[%c160_165, %c0_166] : memref<288x288xbf16, #tpu.memory_space<vmem>>, vector<32x288xbf16>
      tpu.vector_store %arg10[%c160_165, %c0_166], %182 {strides = array<i32>} : memref<288x288xbf16, #tpu.memory_space<vmem>>, vector<32x288xbf16>,
      %c0_167 = arith.constant 0 : index
      %c145_168 = arith.constant 145 : index
      %184 = vector.load %arg8[%c0_167, %c145_168] : memref<32x512xbf16, #tpu.memory_space<vmem>>, vector<32x288xbf16>
      %c192_169 = arith.constant 192 : index
      %c0_170 = arith.constant 0 : index
      %185 = vector.load %arg10[%c192_169, %c0_170] : memref<288x288xbf16, #tpu.memory_space<vmem>>, vector<32x288xbf16>
      tpu.vector_store %arg10[%c192_169, %c0_170], %184 {strides = array<i32>} : memref<288x288xbf16, #tpu.memory_space<vmem>>, vector<32x288xbf16>,
      %c0_171 = arith.constant 0 : index
      %c146_172 = arith.constant 146 : index
      %186 = vector.load %arg8[%c0_171, %c146_172] : memref<32x512xbf16, #tpu.memory_space<vmem>>, vector<32x288xbf16>
      %c224_173 = arith.constant 224 : index
      %c0_174 = arith.constant 0 : index
      %187 = vector.load %arg10[%c224_173, %c0_174] : memref<288x288xbf16, #tpu.memory_space<vmem>>, vector<32x288xbf16>
      tpu.vector_store %arg10[%c224_173, %c0_174], %186 {strides = array<i32>} : memref<288x288xbf16, #tpu.memory_space<vmem>>, vector<32x288xbf16>,
      %c0_175 = arith.constant 0 : index
      %c147_176 = arith.constant 147 : index
      %188 = vector.load %arg8[%c0_175, %c147_176] : memref<32x512xbf16, #tpu.memory_space<vmem>>, vector<32x288xbf16>
      %c256_177 = arith.constant 256 : index
      %c0_178 = arith.constant 0 : index
      %189 = vector.load %arg10[%c256_177, %c0_178] : memref<288x288xbf16, #tpu.memory_space<vmem>>, vector<32x288xbf16>
      tpu.vector_store %arg10[%c256_177, %c0_178], %188 {strides = array<i32>} : memref<288x288xbf16, #tpu.memory_space<vmem>>, vector<32x288xbf16>,
      %c0_179 = arith.constant 0 : index
      %c0_180 = arith.constant 0 : index
      %190 = vector.load %arg10[%c0_179, %c0_180] : memref<288x288xbf16, #tpu.memory_space<vmem>>, vector<288x288xbf16>
      %cst_181 = arith.constant dense<0.000000e+00> : vector<32x288xf32>
      %191 = tpu.matmul %166, %190, %cst_181 {dimension_numbers = #tpu.dot_dimension_numbers<[1], [0], [0], [1], [0, 0, 1, 1], [], []>} : vector<32x288xbf16>, vector<288x288xbf16>, vector<32x288xf32> -> vector<32x288xf32>
      %192 = vector.broadcast %171 : vector<32x1xf32> to vector<32x288xf32>
      %193 = arith.addf %191, %192 : vector<32x288xf32>
      %c0_182 = arith.constant 0 : index
      %c128_183 = arith.constant 128 : index
      %194 = vector.load %arg7[%c0_182, %c128_183] : memref<32x512xf32, #tpu.memory_space<vmem>>, vector<32x288xf32>
      %cst_184 = arith.constant 0.000000e+00 : f32
      %195 = vector.broadcast %cst_184 : f32 to vector<32x288xf32>
      %196 = arith.select %22, %193, %195 : vector<32x288xi1>, vector<32x288xf32>
      %197 = arith.addf %194, %196 : vector<32x288xf32>
      %c0_185 = arith.constant 0 : index
      %c128_186 = arith.constant 128 : index
      %198 = vector.load %arg7[%c0_185, %c128_186] : memref<32x512xf32, #tpu.memory_space<vmem>>, vector<32x288xf32>
      tpu.vector_store %arg7[%c0_185, %c128_186], %197 {strides = array<i32>} : memref<32x512xf32, #tpu.memory_space<vmem>>, vector<32x288xf32>,
    }
    %c2_i32_47 = arith.constant 2 : i32
    %c0_48 = arith.constant 0 : index
    %c128_49 = arith.constant 128 : index
    %84 = vector.load %arg7[%c0_48, %c128_49] : memref<32x512xf32, #tpu.memory_space<vmem>>, vector<32x16xf32>
    %c0_50 = arith.constant 0 : index
    %c0_51 = arith.constant 0 : index
    %85 = vector.load %arg11[%c0_50, %c0_51] : memref<32x256xf32, #tpu.memory_space<vmem>>, vector<32x16xf32>
    tpu.vector_store %arg11[%c0_50, %c0_51], %84 {strides = array<i32>} : memref<32x256xf32, #tpu.memory_space<vmem>>, vector<32x16xf32>,
    %c0_52 = arith.constant 0 : index
    %c146 = arith.constant 146 : index
    %86 = vector.load %arg7[%c0_52, %c146] : memref<32x512xf32, #tpu.memory_space<vmem>>, vector<32x16xf32>
    %c0_53 = arith.constant 0 : index
    %c16 = arith.constant 16 : index
    %87 = vector.load %arg11[%c0_53, %c16] : memref<32x256xf32, #tpu.memory_space<vmem>>, vector<32x16xf32>
    tpu.vector_store %arg11[%c0_53, %c16], %86 {strides = array<i32>} : memref<32x256xf32, #tpu.memory_space<vmem>>, vector<32x16xf32>,
    %c0_54 = arith.constant 0 : index
    %c164 = arith.constant 164 : index
    %88 = vector.load %arg7[%c0_54, %c164] : memref<32x512xf32, #tpu.memory_space<vmem>>, vector<32x16xf32>
    %c0_55 = arith.constant 0 : index
    %c32 = arith.constant 32 : index
    %89 = vector.load %arg11[%c0_55, %c32] : memref<32x256xf32, #tpu.memory_space<vmem>>, vector<32x16xf32>
    tpu.vector_store %arg11[%c0_55, %c32], %88 {strides = array<i32>} : memref<32x256xf32, #tpu.memory_space<vmem>>, vector<32x16xf32>,
    %c0_56 = arith.constant 0 : index
    %c182 = arith.constant 182 : index
    %90 = vector.load %arg7[%c0_56, %c182] : memref<32x512xf32, #tpu.memory_space<vmem>>, vector<32x16xf32>
    %c0_57 = arith.constant 0 : index
    %c48 = arith.constant 48 : index
    %91 = vector.load %arg11[%c0_57, %c48] : memref<32x256xf32, #tpu.memory_space<vmem>>, vector<32x16xf32>
    tpu.vector_store %arg11[%c0_57, %c48], %90 {strides = array<i32>} : memref<32x256xf32, #tpu.memory_space<vmem>>, vector<32x16xf32>,
    %c0_58 = arith.constant 0 : index
    %c200 = arith.constant 200 : index
    %92 = vector.load %arg7[%c0_58, %c200] : memref<32x512xf32, #tpu.memory_space<vmem>>, vector<32x16xf32>
    %c0_59 = arith.constant 0 : index
    %c64 = arith.constant 64 : index
    %93 = vector.load %arg11[%c0_59, %c64] : memref<32x256xf32, #tpu.memory_space<vmem>>, vector<32x16xf32>
    tpu.vector_store %arg11[%c0_59, %c64], %92 {strides = array<i32>} : memref<32x256xf32, #tpu.memory_space<vmem>>, vector<32x16xf32>,
    %c0_60 = arith.constant 0 : index
    %c218 = arith.constant 218 : index
    %94 = vector.load %arg7[%c0_60, %c218] : memref<32x512xf32, #tpu.memory_space<vmem>>, vector<32x16xf32>
    %c0_61 = arith.constant 0 : index
    %c80 = arith.constant 80 : index
    %95 = vector.load %arg11[%c0_61, %c80] : memref<32x256xf32, #tpu.memory_space<vmem>>, vector<32x16xf32>
    tpu.vector_store %arg11[%c0_61, %c80], %94 {strides = array<i32>} : memref<32x256xf32, #tpu.memory_space<vmem>>, vector<32x16xf32>,
    %c0_62 = arith.constant 0 : index
    %c236 = arith.constant 236 : index
    %96 = vector.load %arg7[%c0_62, %c236] : memref<32x512xf32, #tpu.memory_space<vmem>>, vector<32x16xf32>
    %c0_63 = arith.constant 0 : index
    %c96 = arith.constant 96 : index
    %97 = vector.load %arg11[%c0_63, %c96] : memref<32x256xf32, #tpu.memory_space<vmem>>, vector<32x16xf32>
    tpu.vector_store %arg11[%c0_63, %c96], %96 {strides = array<i32>} : memref<32x256xf32, #tpu.memory_space<vmem>>, vector<32x16xf32>,
    %c0_64 = arith.constant 0 : index
    %c254 = arith.constant 254 : index
    %98 = vector.load %arg7[%c0_64, %c254] : memref<32x512xf32, #tpu.memory_space<vmem>>, vector<32x16xf32>
    %c0_65 = arith.constant 0 : index
    %c112 = arith.constant 112 : index
    %99 = vector.load %arg11[%c0_65, %c112] : memref<32x256xf32, #tpu.memory_space<vmem>>, vector<32x16xf32>
    tpu.vector_store %arg11[%c0_65, %c112], %98 {strides = array<i32>} : memref<32x256xf32, #tpu.memory_space<vmem>>, vector<32x16xf32>,
    %c0_66 = arith.constant 0 : index
    %c272 = arith.constant 272 : index
    %100 = vector.load %arg7[%c0_66, %c272] : memref<32x512xf32, #tpu.memory_space<vmem>>, vector<32x16xf32>
    %c0_67 = arith.constant 0 : index
    %c128_68 = arith.constant 128 : index
    %101 = vector.load %arg11[%c0_67, %c128_68] : memref<32x256xf32, #tpu.memory_space<vmem>>, vector<32x16xf32>
    tpu.vector_store %arg11[%c0_67, %c128_68], %100 {strides = array<i32>} : memref<32x256xf32, #tpu.memory_space<vmem>>, vector<32x16xf32>,
    %c0_69 = arith.constant 0 : index
    %c290 = arith.constant 290 : index
    %102 = vector.load %arg7[%c0_69, %c290] : memref<32x512xf32, #tpu.memory_space<vmem>>, vector<32x16xf32>
    %c0_70 = arith.constant 0 : index
    %c144 = arith.constant 144 : index
    %103 = vector.load %arg11[%c0_70, %c144] : memref<32x256xf32, #tpu.memory_space<vmem>>, vector<32x16xf32>
    tpu.vector_store %arg11[%c0_70, %c144], %102 {strides = array<i32>} : memref<32x256xf32, #tpu.memory_space<vmem>>, vector<32x16xf32>,
    %c0_71 = arith.constant 0 : index
    %c308 = arith.constant 308 : index
    %104 = vector.load %arg7[%c0_71, %c308] : memref<32x512xf32, #tpu.memory_space<vmem>>, vector<32x16xf32>
    %c0_72 = arith.constant 0 : index
    %c160 = arith.constant 160 : index
    %105 = vector.load %arg11[%c0_72, %c160] : memref<32x256xf32, #tpu.memory_space<vmem>>, vector<32x16xf32>
    tpu.vector_store %arg11[%c0_72, %c160], %104 {strides = array<i32>} : memref<32x256xf32, #tpu.memory_space<vmem>>, vector<32x16xf32>,
    %c0_73 = arith.constant 0 : index
    %c326 = arith.constant 326 : index
    %106 = vector.load %arg7[%c0_73, %c326] : memref<32x512xf32, #tpu.memory_space<vmem>>, vector<32x16xf32>
    %c0_74 = arith.constant 0 : index
    %c176 = arith.constant 176 : index
    %107 = vector.load %arg11[%c0_74, %c176] : memref<32x256xf32, #tpu.memory_space<vmem>>, vector<32x16xf32>
    tpu.vector_store %arg11[%c0_74, %c176], %106 {strides = array<i32>} : memref<32x256xf32, #tpu.memory_space<vmem>>, vector<32x16xf32>,
    %c0_75 = arith.constant 0 : index
    %c344 = arith.constant 344 : index
    %108 = vector.load %arg7[%c0_75, %c344] : memref<32x512xf32, #tpu.memory_space<vmem>>, vector<32x16xf32>
    %c0_76 = arith.constant 0 : index
    %c192 = arith.constant 192 : index
    %109 = vector.load %arg11[%c0_76, %c192] : memref<32x256xf32, #tpu.memory_space<vmem>>, vector<32x16xf32>
    tpu.vector_store %arg11[%c0_76, %c192], %108 {strides = array<i32>} : memref<32x256xf32, #tpu.memory_space<vmem>>, vector<32x16xf32>,
    %c0_77 = arith.constant 0 : index
    %c362 = arith.constant 362 : index
    %110 = vector.load %arg7[%c0_77, %c362] : memref<32x512xf32, #tpu.memory_space<vmem>>, vector<32x16xf32>
    %c0_78 = arith.constant 0 : index
    %c208 = arith.constant 208 : index
    %111 = vector.load %arg11[%c0_78, %c208] : memref<32x256xf32, #tpu.memory_space<vmem>>, vector<32x16xf32>
    tpu.vector_store %arg11[%c0_78, %c208], %110 {strides = array<i32>} : memref<32x256xf32, #tpu.memory_space<vmem>>, vector<32x16xf32>,
    %c0_79 = arith.constant 0 : index
    %c380 = arith.constant 380 : index
    %112 = vector.load %arg7[%c0_79, %c380] : memref<32x512xf32, #tpu.memory_space<vmem>>, vector<32x16xf32>
    %c0_80 = arith.constant 0 : index
    %c224 = arith.constant 224 : index
    %113 = vector.load %arg11[%c0_80, %c224] : memref<32x256xf32, #tpu.memory_space<vmem>>, vector<32x16xf32>
    tpu.vector_store %arg11[%c0_80, %c224], %112 {strides = array<i32>} : memref<32x256xf32, #tpu.memory_space<vmem>>, vector<32x16xf32>,
    %c0_81 = arith.constant 0 : index
    %c398 = arith.constant 398 : index
    %114 = vector.load %arg7[%c0_81, %c398] : memref<32x512xf32, #tpu.memory_space<vmem>>, vector<32x16xf32>
    %c0_82 = arith.constant 0 : index
    %c240 = arith.constant 240 : index
    %115 = vector.load %arg11[%c0_82, %c240] : memref<32x256xf32, #tpu.memory_space<vmem>>, vector<32x16xf32>
    tpu.vector_store %arg11[%c0_82, %c240], %114 {strides = array<i32>} : memref<32x256xf32, #tpu.memory_space<vmem>>, vector<32x16xf32>,
    %c0_83 = arith.constant 0 : index
    %c0_84 = arith.constant 0 : index
    %116 = vector.load %arg11[%c0_83, %c0_84] : memref<32x256xf32, #tpu.memory_space<vmem>>, vector<32x256xf32>
    %c0_85 = arith.constant 0 : index
    %c0_86 = arith.constant 0 : index
    %c0_87 = arith.constant 0 : index
    %117 = vector.load %arg6[%c0_85, %c0_86, %c0_87] : memref<1x32x256xf32, #tpu.memory_space<vmem>>, vector<1x32x256xf32>
    %118 = vector.shape_cast %117 : vector<1x32x256xf32> to vector<32x256xf32>
    %119 = vector.shape_cast %116 : vector<32x256xf32> to vector<1x32x256xf32>
    tpu.vector_store %arg6[%c0_85, %c0_86, %c0_87], %119 {strides = array<i32>} : memref<1x32x256xf32, #tpu.memory_space<vmem>>, vector<1x32x256xf32>,
    return
  }
  func.func @transform_0(%arg0: i32) -> (i32, i32, i32) {
    %c0_i32 = arith.constant 0 : i32
    %c0_i32_0 = arith.constant 0 : i32
    %c0_i32_1 = arith.constant 0 : i32
    return %arg0, %c0_i32, %c0_i32_0 : i32, i32, i32
  }
  func.func @transform_1(%arg0: i32) -> (i32, i32, i32) {
    %c0_i32 = arith.constant 0 : i32
    %c0_i32_0 = arith.constant 0 : i32
    %c0_i32_1 = arith.constant 0 : i32
    %c0_i32_2 = arith.constant 0 : i32
    return %c0_i32, %c0_i32_0, %c0_i32_1 : i32, i32, i32
  }
  func.func @transform_2(%arg0: i32) -> (i32, i32) {
    %c0_i32 = arith.constant 0 : i32
    %c0_i32_0 = arith.constant 0 : i32
    %c0_i32_1 = arith.constant 0 : i32
    return %c0_i32, %c0_i32_0 : i32, i32
  }
  func.func @transform_3(%arg0: i32) -> (i32, i32, i32) {
    %c0_i32 = arith.constant 0 : i32
    %c0_i32_0 = arith.constant 0 : i32
    %c0_i32_1 = arith.constant 0 : i32
    %c0_i32_2 = arith.constant 0 : i32
    return %c0_i32, %c0_i32_0, %c0_i32_1 : i32, i32, i32
  }
  func.func @transform_4(%arg0: i32) -> (i32, i32, i32) {
    %c0_i32 = arith.constant 0 : i32
    %c0_i32_0 = arith.constant 0 : i32
    %c0_i32_1 = arith.constant 0 : i32
    %c0_i32_2 = arith.constant 0 : i32
    return %c0_i32, %c0_i32_0, %c0_i32_1 : i32, i32, i32
  }
  func.func @transform_5(%arg0: i32) -> (i32, i32, i32) {
    %c0_i32 = arith.constant 0 : i32
    %c0_i32_0 = arith.constant 0 : i32
    %c0_i32_1 = arith.constant 0 : i32
    return %arg0, %c0_i32, %c0_i32_0 : i32, i32, i32
  }
}

</mosaic_0001>

<bundles_post_ra>
// kernel: conv_residual_blocks_forward.1
= control target key start
LH: loop header
LB: loop body
LE: loop exit
PB: predicated region body
PF: predicated region fallthrough
CT: control target
= control target key end

     0   :  { %s4440_s18 = smov 0   ;;  %s5539_s0 = inlined_call_operand.vmem [shape: f32[2,4,384], index: 0, kind: input, shape index: {}]   ;;  %s5540_s1 = inlined_call_operand.vmem [shape: bf16[9,32,4], index: 1, kind: input, shape index: {}]   ;;  %s5541_s2 = inlined_call_operand.vmem [shape: f32[32,1], index: 2, kind: input, shape index: {}]   ;;  %s5542_s3 = inlined_call_operand.vmem [shape: bf16[4,32,288], index: 3, kind: input, shape index: {}]   ;;  %s5543_s4 = inlined_call_operand.vmem [shape: f32[4,32,1], index: 4, kind: input, shape index: {}]   ;;  %s5544_s5 = inlined_call_operand.vmem [shape: f32[2,32,256], index: 5, kind: output, shape index: {}]  }
   0x1 LB: > { %s3811_s19 = sadd.s32 4294967295, %s4373_s18   ;;  %p3815_p0 = scmp.ge.s32.totalorder %s4373_s18, 1  ;;  %s4373_s18 = sphi %s4440_s18, %s15_s18  }
   0x2   : > { %p187_p1 = scmp.lt.s32.totalorder %s4373_s18, 3 }
   0x4   : > { %p188_p2 = pnand %p3815_p0, %p187_p1 }
   0x5   : > { %p215_p3 = scmp.lt.s32.totalorder (!%p188_p2), %s3811_s19, 1  ;;  %v4379_v0 = vmov (!%p188_p2), 0   ;;  %s4380_s28 = smov (!%p188_p2), 127   ;;  %vm5548_vm0 = vcmask (!%p188_p2), 1039360   ;;  %vm351_vm1 = vcmask (!%p188_p2), 1041408   ;;  %v4315_v14 = vld [vmem:[%s5540_s1 + $0x10] sm:$0xff] (!%p188_p2)  }
   0x6   : > { %191 = sbr.rel (%p188_p2) target bundleno = 1667 (0x683), region = 40  ;;  %242 = vst [vmem:[#allocation3] sm:$0xff] (!%p188_p2), %v4379_v0  ;;  %245 = vst [vmem:[#allocation3 + $0x18] sm:$0xff] (!%p188_p2), %v4379_v0  ;;  %393 = vmatprep.mubr.bf16.mxu1 (!%p188_p2), %v4379_v0  ;;  %661 = vmatprep.mubr.bf16.mxu0 (!%p188_p2), %v4379_v0  ;;  %s4381_s29 = smov (!%p188_p2), 126   ;;  %vm611_vm2 = vcmask (!%p188_p2), 1031168   ;;  %v1661_v15 = vld [vmem:[%s5541_s2] sm:$0xff] (!%p188_p2) }
   0x7   : > { %246 = vst [vmem:[#allocation3 + $0x20] sm:$0xff] (!%p188_p2), %v4379_v0  ;;  %249 = vst [vmem:[#allocation3 + $0x38] sm:$0xff] (!%p188_p2), %v4379_v0  ;;  %4312 = vset.pattern.permute.xlu0 (!%p188_p2), %v4379_v0  ;;  %4313 = vset.pattern.permute.xlu1 (!%p188_p2), %v4379_v0  ;;  %s4382_s30 = smov (!%p188_p2), 110   ;;  %s4383_s6 = smov (!%p188_p2), 109   ;;  %v1662_v16 = vld [vmem:[%s5541_s2 + $0x8] sm:$0xff] (!%p188_p2)  ;;  %vm344_vm3 = vcmask (!%p188_p2), 31744  }
   0x8   : > { %s4384_s7 = smov (!%p188_p2), 108   ;;  %s4385_s8 = smov (!%p188_p2), 92   ;;  %v4527_v23 = vld [vmem:[%s5540_s1 + $0x20] sm:$0xff] (!%p188_p2)   ;;  %vm5546_vm4 = vcmask (!%p188_p2), 900096   ;;  %v1663_v24 = vld [vmem:[%s5541_s2 + $0x10] sm:$0xff] (!%p188_p2)  ;;  %v1664_v25 = vld [vmem:[%s5541_s2 + $0x18] sm:$0xff] (!%p188_p2) }
   0x9   : > { %s4386_s9 = smov (!%p188_p2), 91   ;;  %s4387_s10 = smov (!%p188_p2), 90   ;;  %v4317_v29 = vld [vmem:[%s5540_s1 + $0x18] sm:$0xff] (!%p188_p2)   ;;  %v4554_v34 = vld [vmem:[%s5540_s1 + $0x28] sm:$0xff] (!%p188_p2)   ;;  %vm5545_vm5 = vcmask (!%p188_p2), 891904   ;;  %v4319_v41 = vld [vmem:[%s5540_s1 + $0x30] sm:$0xff] (!%p188_p2)  }
   0xa   : > { %vm1070_vm6 = vcmask (!%p188_p2), 883712   ;;  %v4320_v46 = vld [vmem:[%s5540_s1] sm:$0xff] (!%p188_p2)   ;;  %v4321_v48 = vld [vmem:[%s5540_s1 + $0x38] sm:$0xff] (!%p188_p2)   ;;  %v4322_v50 = vld [vmem:[%s5540_s1 + $0x8] sm:$0xff] (!%p188_p2)   ;;  %vm1223_vm7 = vcmask (!%p188_p2), 752640   ;;  %vm1376_vm8 = vcmask (!%p188_p2), 744448  }
   0xb   : > { %v4323_v52 = vld [vmem:[%s5540_s1 + $0x40] sm:$0xff] (!%p188_p2)   ;;  %v4324_v58 = vld [vmem:[%s5540_s1 + $0x48] sm:$0xff] (!%p188_p2)   ;;  %v4325_v60 = vld [vmem:[%s5540_s1 + $0x50] sm:$0xff] (!%p188_p2)   ;;  %vm1529_vm9 = vcmask (!%p188_p2), 736256   ;;  %s4798_s15 = smov (!%p188_p2), 0  }
   0xd   : > { %s5664_s19 = smov (!%p215_p3, %s3811_s19), 1 }
   0xe   : > { %s4258_s20 = smul.u32 12, %s5664_s19  ;;  %s3956_s21 = sshll.u32 %s5664_s19, 6 }
   0xf   : > { %s4451_s24 = scalar_lea.vmem %s5544_s5, %s3956_s21 }
  0x10   : > { %s219_s27 = scalar_lea.vmem %s5539_s0, %s4258_s20 }
  0x11   : > { %v306_v1 = vld [vmem:[%s219_s27 + $0x8] sm:$0xf]  ;;  %v305_v2 = vld [vmem:[%s219_s27] sm:$0xff] }
  0x12   : > { %v4464_v3 = vpack.c.bf16 %v306_v1, %v306_v1  ;;  %v4466_v4 = vpack.c.bf16 %v305_v2, %v305_v2  ;;  %v308_v5 = vcombine.high %v305_v2, %v305_v2 }
  0x14   : > { %339 = vrot.lane.b32.xlu1 %v4464_v3, %s4380_s28  ;;  %335 = vrot.lane.b32.xlu0 %v4466_v4, %s4380_s28  ;;  %v4470_v6 = vpack.c.bf16 %v308_v5, %v308_v5  ;;  %v480_v38 = vsel %vm351_vm1, %v4466_v4, 0  ;;  %v486_v47 = vsel %vm351_vm1, %v4464_v3, 0 }
  0x18   : > { %605 = vrot.lane.b32.xlu1 %v4466_v4, %s4381_s29  ;;  %337 = vrot.lane.b32.xlu0 %v4470_v6, %s4380_s28 }
  0x1c   : > { %609 = vrot.lane.b32.xlu1 %v4464_v3, %s4381_s29  ;;  %607 = vrot.lane.b32.xlu0 %v4470_v6, %s4381_s29 }
  0x20   : > { %758 = vrot.lane.b32.xlu0 %v4466_v4, %s4382_s30  ;;  %760 = vrot.lane.b32.xlu1 %v4470_v6, %s4382_s30 }
  0x24   : > { %762 = vrot.lane.b32.xlu0 %v4464_v3, %s4382_s30  ;;  %911 = vrot.lane.b32.xlu1 %v4466_v4, %s4383_s6 }
  0x28   : > { %915 = vrot.lane.b32.xlu1 %v4464_v3, %s4383_s6  ;;  %913 = vrot.lane.b32.xlu0 %v4470_v6, %s4383_s6 }
  0x2c   : > { %1064 = vrot.lane.b32.xlu0 %v4466_v4, %s4384_s7  ;;  %1066 = vrot.lane.b32.xlu1 %v4470_v6, %s4384_s7 }
  0x30   : > { %1068 = vrot.lane.b32.xlu0 %v4464_v3, %s4384_s7  ;;  %1217 = vrot.lane.b32.xlu1 %v4466_v4, %s4385_s8 }
  0x34   : > { %1221 = vrot.lane.b32.xlu1 %v4464_v3, %s4385_s8  ;;  %1219 = vrot.lane.b32.xlu0 %v4470_v6, %s4385_s8 }
  0x38   : > { %1370 = vrot.lane.b32.xlu0 %v4466_v4, %s4386_s9  ;;  %1372 = vrot.lane.b32.xlu1 %v4470_v6, %s4386_s9 }
  0x3c   : > { %1374 = vrot.lane.b32.xlu0 %v4464_v3, %s4386_s9  ;;  %1523 = vrot.lane.b32.xlu1 %v4466_v4, %s4387_s10  ;;  %v4326_v4 = vld [vmem:[%s5540_s1 + $0x58] sm:$0xff]  }
  0x40   : > { %1527 = vrot.lane.b32.xlu1 %v4464_v3, %s4387_s10  ;;  %1525 = vrot.lane.b32.xlu0 %v4470_v6, %s4387_s10 }
  0x44   : > { %1667 = vperm.xlu0 %4312, %v1661_v15   ;;  %1672 = vperm.xlu1 %4313, %v1662_v16   ;;  %v4329_v16 = vld [vmem:[%s5540_s1 + $0x70] sm:$0xff]  }
  0x48   : > { %1677 = vperm.xlu1 %4313, %v1663_v24   ;;  %1682 = vperm.xlu0 %4312, %v1664_v25  }
  0x86   : > { %v340_v7 = vpop.permute.xlu1 %339  ;;  %v336_v8 = vpop.permute.xlu0 %335 }
  0x87   : > { %v359_v21 = vsel %vm351_vm1, %v340_v7, 0 }
  0x8a   : > { %v606_v9 = vpop.permute.xlu1 %605  ;;  %v338_v10 = vpop.permute.xlu0 %337 }
  0x8b   : > { %v343_v11 = vsel %vm5548_vm0, %v338_v10, %v340_v7  ;;  %v342_v12 = vsel %vm5548_vm0, %v336_v8, %v338_v10  ;;  %v4327_v8 = vld [vmem:[%s5540_s1 + $0x60] sm:$0xff]  }
  0x8c   : > { %3825 = vmatprep.subr.msk.bf16.mxu1 %vm351_vm1, %v343_v11  ;;  %v353_v13 = vsel %vm351_vm1, %v342_v12, 0 }
  0x8d   : > { %362 = vmatpush1.bf16.msra.mxu1 %v353_v13  ;;  %v4328_v13 = vld [vmem:[%s5540_s1 + $0x68] sm:$0xff]  }
  0x8e   : > { %v4516_v17 = vpop.permute.xlu1 %609  ;;  %4249 = vmatprep.subr.msk.bf16.mxu1 %vm351_vm1, %v340_v7  ;;  %v608_v18 = vpop.permute.xlu0 %607 }
  0x8f   : > { %v613_v19 = vsel %vm611_vm2, %v608_v18, %v4516_v17  ;;  %v612_v20 = vsel %vm611_vm2, %v606_v9, %v608_v18  ;;  %v627_v57 = vsel %vm351_vm1, %v4516_v17, 0 }
  0x90   : > { %3826 = vmatmul.mubr.msk.bf16.vlgmr.msra.gmra.mrb[0].mxu1 %vm344_vm3, %v4315_v14  ;;  %3843 = vmatprep.subr.msk.bf16.mxu0 %vm351_vm1, %v613_v19  ;;  %v621_v22 = vsel %vm351_vm1, %v612_v20, 0  ;;  %v4330_v19 = vld [vmem:[%s5540_s1 + $0x78] sm:$0xff]   ;;  %v4331_v20 = vld [vmem:[%s5540_s1 + $0x80] sm:$0xff]  }
  0x91   : > { %4052 = vmatpush3.bf16.msra.mxu1 %v359_v21  ;;  %630 = vmatpush1.bf16.msra.mxu0 %v621_v22  ;;  %v4332_v22 = vld [vmem:[%s5540_s1 + $0x88] sm:$0xff]  }
  0x92   : > { %403 = vmatprep.mubr.bf16.mxu1 %v4379_v0  ;;  %v759_v26 = vpop.permute.xlu0 %758  ;;  %v761_v27 = vpop.permute.xlu1 %760  ;;  %3832 = vmatprep.subr.msk.bf16.mxu1 %vm351_vm1, %v4470_v6 }
  0x93   : > { %v765_v28 = vsel %vm5546_vm4, %v759_v26, %v761_v27 }
  0x94   : > { %3844 = vmatmul.mubr.msk.bf16.vlgmr.msra.gmra.mrb[0].mxu0 %vm344_vm3, %v4527_v23  ;;  %v774_v30 = vsel %vm351_vm1, %v765_v28, 0 }
  0x95   : > { %671 = vmatprep.mubr.bf16.mxu0 %v4379_v0 }
  0x96   : > { %v4546_v31 = vpop.permute.xlu0 %762  ;;  %v912_v32 = vpop.permute.xlu1 %911 }
  0x97   : > { %v766_v33 = vsel %vm5546_vm4, %v761_v27, %v4546_v31  ;;  %v780_v1 = vsel %vm351_vm1, %v4546_v31, 0 }
  0x98   : > { %3827 = vmatmul.mubr.msk.bf16.gmra.mrb[4].mxu1 %vm344_vm3, %v4317_v29  ;;  %3854 = vmatprep.subr.msk.bf16.mxu0 %vm351_vm1, %v766_v33 }
  0x99   : > { %4053 = vmatprep.mubr.msk.bf16.mxu1 %vm344_vm3, %v4315_v14  ;;  %783 = vmatpush1.bf16.msra.mxu0 %v774_v30 }
  0x9a   : > { %v4558_v35 = vpop.permute.xlu1 %915  ;;  %v914_v36 = vpop.permute.xlu0 %913 }
  0x9b   : > { %v919_v37 = vsel %vm5545_vm5, %v914_v36, %v4558_v35  ;;  %v918_v40 = vsel %vm5545_vm5, %v912_v32, %v914_v36  ;;  %v933_v7 = vsel %vm351_vm1, %v4558_v35, 0  ;;  %v250_v32 = vlaneseq }
  0x9c   : > { %3845 = vmatmul.mubr.msk.bf16.gmra.mrb[4].mxu0 %vm344_vm3, %v4554_v34  ;;  %3865 = vmatprep.subr.msk.bf16.mxu0 %vm351_vm1, %v919_v37  ;;  %v927_v43 = vsel %vm351_vm1, %v918_v40, 0 }
  0x9d   : > { %814 = vmatprep.mubr.bf16.mxu0 %v4379_v0  ;;  %v251_v33 = vand.u32 127, %v250_v32 }
  0x9e   : > { %v1065_v39 = vpop.permute.xlu0 %1064  ;;  %v1067_v42 = vpop.permute.xlu1 %1066 }
  0x9f   : > { %v1071_v51 = vsel %vm1070_vm6, %v1065_v39, %v1067_v42 }
  0xa0   : > { %4054 = vmatmul.mubr.msk.bf16.vlgmr.msra.gmra.mrb[8].mxu1 %vm344_vm3, %v4317_v29  ;;  %v1080_v55 = vsel %vm351_vm1, %v1071_v51, 0 }
  0xa1   : > { %489 = vmatpush1.bf16.msra.mxu1 %v480_v38  ;;  %520 = vmatprep.mubr.bf16.mxu1 %v4379_v0 }
  0xa2   : > { %4250 = vmatprep.subr.msk.bf16.mxu1 %vm351_vm1, %v4464_v3  ;;  %v4577_v44 = vpop.permute.xlu0 %1068  ;;  %v1218_v49 = vpop.permute.xlu1 %1217 }
  0xa3   : > { %v1072_v45 = vsel %vm1070_vm6, %v1067_v42, %v4577_v44  ;;  %v1086_v14 = vsel %vm351_vm1, %v4577_v44, 0 }
  0xa4   : > { %3855 = vmatmul.mubr.msk.bf16.vlgmr.msra.gmra.mrb[0].mxu0 %vm344_vm3, %v4319_v41 }
  0xa5   : > { %824 = vmatprep.mubr.bf16.mxu0 %v4379_v0  ;;  %936 = vmatpush1.bf16.msra.mxu0 %v927_v43 }
  0xa6   : > { %3876 = vmatprep.subr.msk.bf16.mxu0 %vm351_vm1, %v1072_v45  ;;  %v4606_v53 = vpop.permute.xlu1 %1221  ;;  %v1220_v54 = vpop.permute.xlu0 %1219  ;;  %v4724_v45 = vadd.s32 256, %v251_v33 }
  0xa7   : > { %v1225_v56 = vsel %vm1223_vm7, %v1220_v54, %v4606_v53  ;;  %v1224_v61 = vsel %vm1223_vm7, %v1218_v49, %v1220_v54  ;;  %v1239_v18 = vsel %vm351_vm1, %v4606_v53, 0 }
  0xa8   : > { %3833 = vmatmul.mubr.msk.bf16.vlgmr.msra.gmra.mrb[0].mxu1 %vm344_vm3, %v4320_v46  ;;  %v1233_v2 = vsel %vm351_vm1, %v1224_v61, 0 }
  0xa9   : > { %4058 = vmatpush3.bf16.msra.mxu1 %v486_v47  ;;  %530 = vmatprep.mubr.bf16.mxu1 %v4379_v0 }
  0xaa   : > { %4251 = vmatprep.subr.msk.bf16.mxu1 %vm351_vm1, %v4516_v17  ;;  %v1371_v59 = vpop.permute.xlu0 %1370  ;;  %v1373_v62 = vpop.permute.xlu1 %1372 }
  0xab   : > { %v1377_v6 = vsel %vm1376_vm8, %v1371_v59, %v1373_v62 }
  0xac   : > { %3856 = vmatmul.mubr.msk.bf16.gmra.mrb[4].mxu0 %vm344_vm3, %v4321_v48  ;;  %v1386_v11 = vsel %vm351_vm1, %v1377_v6, 0 }
  0xad   : > { %967 = vmatprep.mubr.bf16.mxu0 %v4379_v0 }
  0xae   : > { %v1375_v63 = vpop.permute.xlu0 %1374  ;;  %v1524_v5 = vpop.permute.xlu1 %1523 }
  0xaf   : > { %v1378_v3 = vsel %vm1376_vm8, %v1373_v62, %v1375_v63  ;;  %v1392_v21 = vsel %vm351_vm1, %v1375_v63, 0 }
  0xb0   : > { %3834 = vmatmul.mubr.msk.bf16.gmra.mrb[4].mxu1 %vm344_vm3, %v4322_v50 }
  0xb1   : > { %4059 = vmatprep.mubr.msk.bf16.mxu1 %vm344_vm3, %v4320_v46 }
  0xb2   : > { %v1528_v9 = vpop.permute.xlu1 %1527  ;;  %v1526_v10 = vpop.permute.xlu0 %1525 }
  0xb3   : > { %v1531_v12 = vsel %vm1529_vm9, %v1526_v10, %v1528_v9  ;;  %v1530_v15 = vsel %vm1529_vm9, %v1524_v5, %v1526_v10 }
  0xb4   : > { %3866 = vmatmul.mubr.msk.bf16.vlgmr.msra.gmra.mrb[0].mxu0 %vm344_vm3, %v4323_v52  ;;  %v1539_v17 = vsel %vm351_vm1, %v1530_v15, 0 }
  0xb5   : > { %977 = vmatprep.mubr.bf16.mxu0 %v4379_v0  ;;  %1089 = vmatpush1.bf16.msra.mxu0 %v1080_v55 }
  0xb6   : > { %3887 = vmatprep.subr.msk.bf16.mxu0 %vm351_vm1, %v1225_v56 }
  0xb8   : > { %4060 = vmatmul.mubr.msk.bf16.vlgmr.msra.gmra.mrb[8].mxu1 %vm344_vm3, %v4322_v50  ;;  %v4731_v49 = vmul.u32.u64.low 3817748708, %v4724_v45  ;;  %v4732_v50 = vmul.u32.u64.high 3817748708, %v4724_v45, %v4731_v49 }
  0xb9   : > { %4064 = vmatpush3.bf16.msra.mxu1 %v627_v57  ;;  %4065 = vmatprep.mubr.msk.bf16.mxu1 %vm344_vm3, %v4527_v23  ;;  %v1545_v23 = vsel %vm351_vm1, %v1528_v9, 0 }
  0xba   : > { %4252 = vmatprep.subr.msk.bf16.mxu1 %vm351_vm1, %v4546_v31 }
  0xbc   : > { %3867 = vmatmul.mubr.msk.bf16.gmra.mrb[4].mxu0 %vm344_vm3, %v4324_v58 }
  0xbd   : > { %1120 = vmatprep.mubr.bf16.mxu0 %v4379_v0 }
  0xc4   : > { %4066 = vmatmul.mubr.msk.bf16.vlgmr.msra.gmra.mrb[8].mxu1 %vm344_vm3, %v4554_v34  ;;  %3877 = vmatmul.mubr.msk.bf16.vlgmr.msra.gmra.mrb[0].mxu0 %vm344_vm3, %v4325_v60  ;;  %v252_v34 = vadd.s32 128, %v251_v33 }
  0xc5   : > { %4070 = vmatpush3.bf16.msra.mxu1 %v780_v1  ;;  %1130 = vmatprep.mubr.bf16.mxu0 %v4379_v0  ;;  %v5564_v1 = vmov 0 }
  0xc6   : > { %4253 = vmatprep.subr.msk.bf16.mxu1 %vm351_vm1, %v4558_v35  ;;  %4071 = vmatprep.mubr.msk.bf16.mxu1 %vm344_vm3, %v4319_v41  ;;  %v4716_v35 = vmul.u32.u64.low 3817748708, %v251_v33  ;;  %v4717_v36 = vmul.u32.u64.high 3817748708, %v251_v33, %v4716_v35  ;;  %v4719_v37 = vmul.u32.u64.low 3817748708, %v252_v34  ;;  %v4720_v38 = vmul.u32.u64.high 3817748708, %v252_v34, %v4719_v37 }
  0xc7   : > { %1242 = vmatpush1.bf16.msra.mxu0 %v1233_v2 }
  0xc8   : > { %3898 = vmatprep.subr.msk.bf16.mxu0 %vm351_vm1, %v1378_v3  ;;  %v260_v39 = vshrl.u32 %v4717_v36, 4  ;;  %v271_v40 = vshrl.u32 %v4720_v38, 4 }
  0xca   : > { %v261_v41 = vmul.u32 18, %v260_v39  ;;  %v272_v42 = vmul.u32 18, %v271_v40 }
  0xcc   : > { %3878 = vmatmul.mubr.msk.bf16.gmra.mrb[4].mxu0 %vm344_vm3, %v4326_v4  ;;  %v262_v43 = vsub.s32 %v251_v33, %v261_v41 }
  0xcd   : > { %1273 = vmatprep.mubr.bf16.mxu0 %v4379_v0 }
  0xce   : > { %vm287_vm10 = vcmp.ne.s32.totalorder %v262_v43, 0  ;;  %vm290_vm11 = vcmp.lt.s32.totalorder %v262_v43, 0  ;;  %v296_v46 = vadd.s32 18, %v262_v43 }
  0xcf   : > { %vm4726_vm14 = vmand %vm290_vm11, %vm287_vm10 }
  0xd0   : > { %4072 = vmatmul.mubr.msk.bf16.vlgmr.msra.gmra.mrb[8].mxu1 %vm344_vm3, %v4321_v48  ;;  %v299_v56 = vsel %vm4726_vm14, %v296_v46, %v262_v43 }
  0xd1   : > { %4076 = vmatpush3.bf16.msra.mxu1 %v933_v7  ;;  %4077 = vmatprep.mubr.msk.bf16.mxu1 %vm344_vm3, %v4323_v52 }
  0xd2   : > { %4254 = vmatprep.subr.msk.bf16.mxu1 %vm351_vm1, %v4577_v44  ;;  %v273_v44 = vsub.s32 %v252_v34, %v272_v42 }
  0xd4   : > { %3888 = vmatmul.mubr.msk.bf16.vlgmr.msra.gmra.mrb[0].mxu0 %vm344_vm3, %v4327_v8  ;;  %vm288_vm12 = vcmp.ne.s32.totalorder %v273_v44, 0  ;;  %vm291_vm13 = vcmp.lt.s32.totalorder %v273_v44, 0  ;;  %v297_v48 = vadd.s32 18, %v273_v44 }
  0xd5   : > { %1283 = vmatprep.mubr.bf16.mxu0 %v4379_v0  ;;  %1395 = vmatpush1.bf16.msra.mxu0 %v1386_v11  ;;  %vm4734_vm15 = vmand %vm291_vm13, %vm288_vm12 }
  0xd6   : > { %3909 = vmatprep.subr.msk.bf16.mxu0 %vm351_vm1, %v1531_v12  ;;  %v300_v59 = vsel %vm4734_vm15, %v297_v48, %v273_v44 }
  0xd7   : > { %vm4752_vm2 = vcmp.lt.s32.totalorder %v300_v59, 16 }
  0xdc   : > { %4078 = vmatmul.mubr.msk.bf16.vlgmr.msra.gmra.mrb[8].mxu1 %vm344_vm3, %v4324_v58  ;;  %3889 = vmatmul.mubr.msk.bf16.gmra.mrb[4].mxu0 %vm344_vm3, %v4328_v13 }
  0xdd   : > { %4082 = vmatpush3.bf16.msra.mxu1 %v1086_v14  ;;  %1426 = vmatprep.mubr.bf16.mxu0 %v4379_v0 }
  0xde   : > { %4255 = vmatprep.subr.msk.bf16.mxu1 %vm351_vm1, %v4606_v53  ;;  %4083 = vmatprep.mubr.msk.bf16.mxu1 %vm344_vm3, %v4325_v60  ;;  %v4738_v53 = vpop.permute.xlu0 %1667  ;;  %v4744_v60 = vpop.permute.xlu1 %1672 }
  0xe4   : > { %3899 = vmatmul.mubr.msk.bf16.vlgmr.msra.gmra.mrb[0].mxu0 %vm344_vm3, %v4329_v16 }
  0xe5   : > { %1436 = vmatprep.mubr.bf16.mxu0 %v4379_v0  ;;  %1548 = vmatpush1.bf16.msra.mxu0 %v1539_v17 }
  0xe8   : > { %4084 = vmatmul.mubr.msk.bf16.vlgmr.msra.gmra.mrb[8].mxu1 %vm344_vm3, %v4326_v4  ;;  %v5566_v4 = vmov 0 }
  0xe9   : > { %4088 = vmatpush3.bf16.msra.mxu1 %v1239_v18  ;;  %4089 = vmatprep.mubr.msk.bf16.mxu1 %vm344_vm3, %v4327_v8  ;;  %v5567_v4 = vsel %vm4752_vm2, 4294967295, %v5566_v4 }
  0xea   : > { %4256 = vmatprep.subr.msk.bf16.mxu1 %vm351_vm1, %v1375_v63 }
  0xec   : > { %3900 = vmatmul.mubr.msk.bf16.gmra.mrb[4].mxu0 %vm344_vm3, %v4330_v19 }
  0xed   : > { %1579 = vmatprep.mubr.bf16.mxu0 %v4379_v0 }
  0xf4   : > { %4090 = vmatmul.mubr.msk.bf16.vlgmr.msra.gmra.mrb[8].mxu1 %vm344_vm3, %v4328_v13  ;;  %3910 = vmatmul.mubr.msk.bf16.vlgmr.msra.gmra.mrb[0].mxu0 %vm344_vm3, %v4331_v20 }
  0xf5   : > { %4094 = vmatpush3.bf16.msra.mxu1 %v1392_v21  ;;  %1589 = vmatprep.mubr.bf16.mxu0 %v4379_v0  ;;  %v4388_v0 = vmov 0.0  }
  0xf6   : > { %4257 = vmatprep.subr.msk.bf16.mxu1 %vm351_vm1, %v1528_v9  ;;  %4095 = vmatprep.mubr.msk.bf16.mxu1 %vm344_vm3, %v4329_v16  ;;  %226 = vst [vmem:[#allocation2] sm:$0xff] %v4388_v0  ;;  %230 = vst [vmem:[#allocation2 + $0x20] sm:$0xff] %v4388_v0  ;;  %vm4747_vm1 = vcmp.lt.s32.totalorder %v299_v56, 16  ;;  %v282_v9 = vshrl.u32 %v4732_v50, 4  ;;  %v1678_v16 = vpop.permute.xlu1 %1677 }
  0xf7   : > { %234 = vst [vmem:[#allocation2 + $0x40] sm:$0xff] %v4388_v0  ;;  %238 = vst [vmem:[#allocation2 + $0x60] sm:$0xff] %v4388_v0  ;;  %v5565_v1 = vsel %vm4747_vm1, 4294967295, %v5564_v1 }
  0xf8   : > { %229 = vst [vmem:[#allocation2 + $0x18] sm:$0xff] %v4388_v0  ;;  %233 = vst [vmem:[#allocation2 + $0x38] sm:$0xff] %v4388_v0 }
  0xf9   : > { %237 = vst [vmem:[#allocation2 + $0x58] sm:$0xff] %v4388_v0  ;;  %241 = vst [vmem:[#allocation2 + $0x78] sm:$0xff] %v4388_v0 }
  0xfc   : > { %3911 = vmatmul.mubr.msk.bf16.gmra.mrb[4].mxu0 %vm344_vm3, %v4332_v22 }
 0x100   : > { %4096 = vmatmul.mubr.msk.bf16.vlgmr.msra.gmra.mrb[8].mxu1 %vm344_vm3, %v4330_v19 }
 0x101   : > { %4100 = vmatpush3.bf16.msra.mxu1 %v1545_v23  ;;  %4101 = vmatprep.mubr.msk.bf16.mxu1 %vm344_vm3, %v4331_v20 }
 0x10c   : > { %4102 = vmatmul.mubr.msk.bf16.vlgmr.msra.gmra.mrb[8].mxu1 %vm344_vm3, %v4332_v22 }
 0x17b   : > { %v522_v24 = vpop.f32.mrb[0].mxu1 }
 0x17c   : > { %v524_v25 = vpop.f32.mrb[1].mxu1 }
 0x17d   : > { %v526_v26 = vpop.f32.mrb[2].mxu1 }
 0x17e   : > { %v528_v27 = vpop.f32.mrb[3].mxu1 }
 0x183   : > { %v4708_v28 = vpop.f32.mrb[4].mxu1 }
 0x184   : > { %v4710_v29 = vpop.f32.mrb[5].mxu1 }
 0x185   : > { %v4712_v30 = vpop.f32.mrb[6].mxu1 }
 0x186   : > { %v4714_v31 = vpop.f32.mrb[7].mxu1 }
 0x1c7   : > { %v1581_v52 = vpop.f32.mrb[0].mxu0 }
 0x1c8   : > { %v4121_v54 = vadd.f32 %v1581_v52, %v522_v24  ;;  %v1583_v55 = vpop.f32.mrb[1].mxu0  ;;  %v1683_v24 = vpop.permute.xlu0 %1682 }
 0x1c9   : > { %v4122_v57 = vadd.f32 %v1583_v55, %v524_v25  ;;  %v1585_v58 = vpop.f32.mrb[2].mxu0  ;;  %v283_v25 = vmul.u32 18, %v282_v9 }
 0x1ca   : > { %v4123_v61 = vadd.f32 %v1585_v58, %v526_v26  ;;  %v1685_v62 = vadd.f32 %v4121_v54, %v4738_v53  ;;  %v1587_v63 = vpop.f32.mrb[3].mxu0 }
 0x1cb   : > { %v1686_v2 = vadd.f32 %v4122_v57, %v4738_v53  ;;  %v4124_v3 = vadd.f32 %v1587_v63, %v528_v27  ;;  %v284_v38 = vsub.s32 %v4724_v45, %v283_v25 }
 0x1cc   : > { %vm1697_vm3 = vcmp.ge.f32.partialorder %v1685_v62, 0.0  ;;  %v1709_v5 = vmul.f32 0.1, %v1685_v62  ;;  %v1688_v6 = vadd.f32 %v4123_v61, %v4744_v60 }
 0x1cd   : > { %vm1698_vm6 = vcmp.ge.f32.partialorder %v1686_v2, 0.0  ;;  %v1710_v7 = vmul.f32 0.1, %v1686_v2  ;;  %v1689_v8 = vadd.f32 %v4124_v3, %v4744_v60  ;;  %vm289_vm13 = vcmp.ne.s32.totalorder %v284_v38, 0 }
 0x1ce   : > { %v1721_v10 = vsel %vm1697_vm3, %v1685_v62, %v1709_v5  ;;  %vm1700_vm7 = vcmp.ge.f32.partialorder %v1688_v6, 0.0  ;;  %v1712_v11 = vmul.f32 0.1, %v1688_v6  ;;  %vm292_vm14 = vcmp.lt.s32.totalorder %v284_v38, 0 }
 0x1cf   : > { %v1722_v12 = vsel %vm1698_vm6, %v1686_v2, %v1710_v7  ;;  %v1733_v13 = vsel %vm4747_vm1, %v1721_v10, 0.0  ;;  %vm1701_vm8 = vcmp.ge.f32.partialorder %v1689_v8, 0.0  ;;  %v1713_v14 = vmul.f32 0.1, %v1689_v8  ;;  %v1591_v15 = vpop.f32.mrb[4].mxu0  ;;  %vm295_vm15 = vmand %vm292_vm14, %vm289_vm13 }
 0x1d0   : > { %v1734_v17 = vsel %vm4752_vm2, %v1722_v12, 0.0  ;;  %1745 = vst [vmem:[#allocation2 + $0x8] sm:$0xff] %v1733_v13  ;;  %v1724_v18 = vsel %vm1700_vm7, %v1688_v6, %v1712_v11  ;;  %v4125_v19 = vadd.f32 %v1591_v15, %v4708_v28  ;;  %v1593_v20 = vpop.f32.mrb[5].mxu0  ;;  %v298_v47 = vadd.s32 18, %v284_v38 }
 0x1d1   : > { %1746 = vst [vmem:[#allocation2 + $0x10] sm:$0xff] %v1734_v17  ;;  %v1725_v21 = vsel %vm1701_vm8, %v1689_v8, %v1713_v14  ;;  %v1736_v22 = vsel %vm4747_vm1, %v1724_v18, 0.0  ;;  %v4126_v23 = vadd.f32 %v1593_v20, %v4710_v29  ;;  %v1595_v0 = vpop.f32.mrb[6].mxu0  ;;  %vm5553_vm7 = vcmask 261120  }
 0x1d2   : > { %v1737_v26 = vsel %vm4752_vm2, %v1725_v21, 0.0  ;;  %1749 = vst [vmem:[#allocation2 + $0x28] sm:$0xff] %v1736_v22  ;;  %v1691_v27 = vadd.f32 %v4125_v19, %v1678_v16  ;;  %v4127_v32 = vadd.f32 %v1595_v0, %v4712_v30  ;;  %v1597_v33 = vpop.f32.mrb[7].mxu0  ;;  %v301_v48 = vsel %vm295_vm15, %v298_v47, %v284_v38 }
 0x1d3   : > { %1750 = vst [vmem:[#allocation2 + $0x30] sm:$0xff] %v1737_v26  ;;  %v1692_v28 = vadd.f32 %v4126_v23, %v1678_v16  ;;  %v4128_v34 = vadd.f32 %v1597_v33, %v4714_v31  ;;  %vm4781_vm3 = vcmp.lt.s32.totalorder %v301_v48, 16 }
 0x1d4   : > { %vm1703_vm9 = vcmp.ge.f32.partialorder %v1691_v27, 0.0  ;;  %v1715_v35 = vmul.f32 0.1, %v1691_v27  ;;  %v1694_v36 = vadd.f32 %v4127_v32, %v1683_v24 }
 0x1d5   : > { %vm1704_vm10 = vcmp.ge.f32.partialorder %v1692_v28, 0.0  ;;  %v1716_v29 = vmul.f32 0.1, %v1692_v28  ;;  %v1695_v37 = vadd.f32 %v4128_v34, %v1683_v24 }
 0x1d6   : > { %v1727_v39 = vsel %vm1703_vm9, %v1691_v27, %v1715_v35  ;;  %vm1706_vm11 = vcmp.ge.f32.partialorder %v1694_v36, 0.0  ;;  %v1718_v40 = vmul.f32 0.1, %v1694_v36 }
 0x1d7   : > { %v1728_v41 = vsel %vm1704_vm10, %v1692_v28, %v1716_v29  ;;  %v1739_v30 = vsel %vm4747_vm1, %v1727_v39, 0.0  ;;  %vm1707_vm12 = vcmp.ge.f32.partialorder %v1695_v37, 0.0  ;;  %v1719_v42 = vmul.f32 0.1, %v1695_v37 }
 0x1d8   : > { %v1740_v31 = vsel %vm4752_vm2, %v1728_v41, 0.0  ;;  %1752 = vst [vmem:[#allocation2 + $0x48] sm:$0xff] %v1739_v30  ;;  %v1730_v43 = vsel %vm1706_vm11, %v1694_v36, %v1718_v40 }
 0x1d9   : > { %1753 = vst [vmem:[#allocation2 + $0x50] sm:$0xff] %v1740_v31  ;;  %v1731_v44 = vsel %vm1707_vm12, %v1695_v37, %v1719_v42  ;;  %v1742_v46 = vsel %vm4747_vm1, %v1730_v43, 0.0 }
 0x1da   : > { %v1743_v45 = vsel %vm4752_vm2, %v1731_v44, 0.0  ;;  %1755 = vst [vmem:[#allocation2 + $0x68] sm:$0xff] %v1742_v46 }
 0x1db   : > { %1756 = vst [vmem:[#allocation2 + $0x70] sm:$0xff] %v1743_v45 }
 0x1df   : > { %v4103_v49 = vpop.f32.mrb[8].mxu1 }
 0x1e0   : > { %v1693_v50 = vadd.f32 %v4103_v49, %v1678_v16  ;;  %v1634_v51 = vpop.f32.mrb[9].mxu1 }
 0x1e1   : > { %v1687_v52 = vadd.f32 %v4738_v53, %v1634_v51  ;;  %v4104_v54 = vpop.f32.mrb[10].mxu1 }
 0x1e2   : > { %vm1705_vm6 = vcmp.ge.f32.partialorder %v1693_v50, 0.0  ;;  %v1717_v56 = vmul.f32 0.1, %v1693_v50  ;;  %v1696_v57 = vadd.f32 %v4104_v54, %v1683_v24  ;;  %v1637_v58 = vpop.f32.mrb[11].mxu1 }
 0x1e3   : > { %vm1699_vm8 = vcmp.ge.f32.partialorder %v1687_v52, 0.0  ;;  %v1711_v59 = vmul.f32 0.1, %v1687_v52  ;;  %v1690_v61 = vadd.f32 %v4744_v60, %v1637_v58 }
 0x1e4   : > { %v1729_v62 = vsel %vm1705_vm6, %v1693_v50, %v1717_v56  ;;  %vm1708_vm9 = vcmp.ge.f32.partialorder %v1696_v57, 0.0  ;;  %v1720_v63 = vmul.f32 0.1, %v1696_v57 }
 0x1e5   : > { %v1741_v53 = vsel %vm4781_vm3, %v1729_v62, 0.0  ;;  %v1723_v2 = vsel %vm1699_vm8, %v1687_v52, %v1711_v59  ;;  %vm1702_vm10 = vcmp.ge.f32.partialorder %v1690_v61, 0.0  ;;  %v1714_v3 = vmul.f32 0.1, %v1690_v61 }
 0x1e6   : > { %1754 = vst.msk [vmem:[#allocation2 + $0x58] sm:$0xff] %vm5553_vm7, %v1741_v53  ;;  %v1735_v5 = vsel %vm4781_vm3, %v1723_v2, 0.0  ;;  %v1732_v6 = vsel %vm1708_vm9, %v1696_v57, %v1720_v63 }
 0x1e7   : > { %1748 = vst.msk [vmem:[#allocation2 + $0x18] sm:$0xff] %vm5553_vm7, %v1735_v5  ;;  %v1744_v60 = vsel %vm4781_vm3, %v1732_v6, 0.0  ;;  %v1726_v7 = vsel %vm1702_vm10, %v1690_v61, %v1714_v3 }
 0x1e8   : > { %1757 = vst.msk [vmem:[#allocation2 + $0x78] sm:$0xff] %vm5553_vm7, %v1744_v60  ;;  %v1738_v8 = vsel %vm4781_vm3, %v1726_v7, 0.0 }
 0x1e9   : > { %1751 = vst.msk [vmem:[#allocation2 + $0x38] sm:$0xff] %vm5553_vm7, %v1738_v8 }
 0x1ea LB: >> { %v1765_v9 = vld [vmem:[#allocation2 + $0x8] sm:$0xff]  ;;  %v1764_v11 = vld [vmem:[#allocation2] sm:$0xff]  ;;  %v1766_v14 = vld [vmem:[#allocation2 + $0x10] sm:$0xff]  ;;  %s4389_s16 = smov 19   ;;  %vm5570_vm7 = vcmask 261120   ;;  %s4390_s17 = smov 18   ;;  %vm5574_vm1 = vnez %v5565_v1  ;;  %vm5577_vm2 = vnez %v5567_v4  ;;  %s4377_s15 = sphi %s4798_s15, %s1763_s15  }
 0x1eb   : >> { %v1769_v10 = vld [vmem:[#allocation2 + $0x28] sm:$0xff]  ;;  %v1768_v13 = vld [vmem:[#allocation2 + $0x20] sm:$0xff]  ;;  %v1770_v15 = vld [vmem:[#allocation2 + $0x30] sm:$0xff]  ;;  %s4391_s19 = smov 17   ;;  %s4392_s20 = smov 1   ;;  %v4397_v29 = vmov 0  }
 0x1ec   : >> { %v4803_v12 = vpack.c.bf16 %v1769_v10, %v1765_v9  ;;  %v1780_v16 = vpack.c.bf16 %v1768_v13, %v1764_v11  ;;  %v1773_v17 = vld [vmem:[#allocation2 + $0x48] sm:$0xff]  ;;  %v4807_v19 = vpack.c.bf16 %v1770_v15, %v1766_v14  ;;  %v1774_v20 = vld [vmem:[#allocation2 + $0x50] sm:$0xff]  ;;  %v1772_v25 = vld [vmem:[#allocation2 + $0x40] sm:$0xff]  ;;  %s4393_s21 = smov 127   ;;  %s4394_s22 = smov 111   ;;  %4333 = vset.pattern.permute.xlu0 %v4397_v29  ;;  %4334 = vset.pattern.permute.xlu1 %v4397_v29  ;;  %vm5552_vm11 = vcmask 154624  }
 0x1ed   : >> { %v1777_v18 = vld [vmem:[#allocation2 + $0x68] sm:$0xff]  ;;  %v1778_v21 = vld [vmem:[#allocation2 + $0x70] sm:$0xff]  ;;  %v1775_v24 = vld [vmem:[#allocation2 + $0x58] sm:$0xff]  ;;  %s3957_s23 = smul.u32 96, %s4377_s15  ;;  %s4395_s28 = smov 110   ;;  %vm5551_vm12 = vcmask 146432  }
 0x1ee   : >> { %1832 = vrot.lane.b32.xlu0 %v4803_v12, %s4389_s16  ;;  %1830 = vrot.lane.b32.xlu1 %v1780_v16, %s4389_s16  ;;  %v4810_v22 = vpack.c.bf16 %v1777_v18, %v1773_v17  ;;  %v1767_v23 = vld [vmem:[#allocation2 + $0x18] sm:$0xff]  ;;  %v1776_v26 = vld [vmem:[#allocation2 + $0x60] sm:$0xff]  ;;  %v4818_v28 = vpack.c.bf16 %v1778_v21, %v1774_v20  ;;  %s4396_s6 = smov 109   ;;  %s3958_s8 = sshll.u32 %s4377_s15, 6  ;;  %vm5550_vm13 = vcmask 138240   ;;  %vm5549_vm14 = vcmask 7168  }
 0x1ef   : >> { %v1779_v32 = vld [vmem:[#allocation2 + $0x78] sm:$0xff]  ;;  %v1784_v34 = vpack.c.bf16 %v1776_v26, %v1772_v25  ;;  %s4887_s27 = scalar_lea.vmem %s5542_s3, %s3957_s23  ;;  %s4956_s11 = scalar_lea.vmem %s5543_s4, %s3958_s8  ;;  %vm5571_vm0 = vcmask 1039360   ;;  %vm5547_vm15 = vcmask 908288   ;;  %vm5572_vm4 = vcmask 900096  }
 0x1f0   : >> { %v1771_v0 = vld [vmem:[#allocation2 + $0x38] sm:$0xff]  ;;  %v4814_v33 = vpack.c.bf16 %v1779_v32, %v1775_v24  ;;  %v4337_v35 = vld [vmem:[%s4887_s27 + $0x4] ss:$12 sps:$4 sm:$0xff]   ;;  %v1811_v59 = vld [vmem:[%s4956_s11 + $0x8] sm:$0xff]  ;;  %vm5573_vm5 = vcmask 891904   ;;  %s1763_s15 = sadd.s32 1, %s4377_s15  }
 0x1f1   : >> { %v4812_v27 = vpack.c.bf16 %v1771_v0, %v1767_v23  ;;  %2333 = vmatprep.mubr.bf16.mxu0 %v4337_v35  ;;  %2439 = vmatprep.mubr.bf16.mxu1 %v4337_v35  ;;  %v1810_v58 = vld [vmem:[%s4956_s11] sm:$0xff]  ;;  %v1812_v63 = vld [vmem:[%s4956_s11 + $0x10] sm:$0xff]  ;;  %v1813_v53 = vld [vmem:[%s4956_s11 + $0x18] sm:$0xff]  ;;  %p1760_p4 = scmp.ge.s32.totalorder %s1763_s15, 2  }
 0x1f2   : >> { %1834 = vrot.lane.b32.xlu0 %v4807_v19, %s4389_s16  ;;  %1840 = vrot.lane.b32.xlu1 %v4810_v22, %s4389_s16  ;;  %2029 = vst.msk [vmem:[#allocation5 + $0xe8] sm:$0xff] %vm5570_vm7, %v4814_v33  ;;  %s4398_s12 = smov (%p1760_p4), 124   ;;  %s4399_s13 = smov (%p1760_p4), 122  }
 0x1f3   : >> { %2026 = vst.msk [vmem:[#allocation5 + $0xd0] sm:$0xff] %vm5570_vm7, %v4812_v27  ;;  %s4400_s14 = smov (%p1760_p4), 120   ;;  %s4401_s15 = smov (%p1760_p4), 118  }
 0x1f6   : >> { %1842 = vrot.lane.b32.xlu0 %v4818_v28, %s4389_s16  ;;  %1838 = vrot.lane.b32.xlu1 %v1784_v34, %s4389_s16 }
 0x1fa   : >> { %1883 = vrot.lane.b32.xlu0 %v4803_v12, %s4390_s17  ;;  %1885 = vrot.lane.b32.xlu1 %v4807_v19, %s4390_s17  ;;  %v2217_v36 = vld [vmem:[#allocation5 + $0xd0] sm:$0xff] }
 0x1fb   : >> { %3987 = vmatprep.subr.bf16.mxu1 %v2217_v36 }
 0x1fe   : >> { %1881 = vrot.lane.b32.xlu0 %v1780_v16, %s4390_s17  ;;  %1891 = vrot.lane.b32.xlu1 %v4810_v22, %s4390_s17 }
 0x202   : >> { %1893 = vrot.lane.b32.xlu0 %v4818_v28, %s4390_s17  ;;  %1889 = vrot.lane.b32.xlu1 %v1784_v34, %s4390_s17 }
 0x206   : >> { %1934 = vrot.lane.b32.xlu0 %v4803_v12, %s4391_s19  ;;  %1936 = vrot.lane.b32.xlu1 %v4807_v19, %s4391_s19 }
 0x20a   : >> { %1932 = vrot.lane.b32.xlu0 %v1780_v16, %s4391_s19  ;;  %1942 = vrot.lane.b32.xlu1 %v4810_v22, %s4391_s19 }
 0x20e   : >> { %1944 = vrot.lane.b32.xlu0 %v4818_v28, %s4391_s19  ;;  %1940 = vrot.lane.b32.xlu1 %v1784_v34, %s4391_s19 }
 0x212   : >> { %1985 = vrot.lane.b32.xlu0 %v4803_v12, %s4392_s20  ;;  %1987 = vrot.lane.b32.xlu1 %v4807_v19, %s4392_s20 }
 0x216   : >> { %1983 = vrot.lane.b32.xlu0 %v1780_v16, %s4392_s20  ;;  %1993 = vrot.lane.b32.xlu1 %v4810_v22, %s4392_s20 }
 0x21a   : >> { %1995 = vrot.lane.b32.xlu0 %v4818_v28, %s4392_s20  ;;  %1991 = vrot.lane.b32.xlu1 %v1784_v34, %s4392_s20 }
 0x21e   : >> { %2044 = vrot.lane.b32.xlu0 %v4807_v19, %s4393_s21  ;;  %2046 = vrot.lane.b32.xlu1 %v4812_v27, %s4393_s21 }
 0x222   : >> { %2042 = vrot.lane.b32.xlu0 %v4803_v12, %s4393_s21  ;;  %2050 = vrot.lane.b32.xlu1 %v4818_v28, %s4393_s21 }
 0x226   : >> { %2052 = vrot.lane.b32.xlu0 %v4814_v33, %s4393_s21  ;;  %2048 = vrot.lane.b32.xlu1 %v4810_v22, %s4393_s21 }
 0x22a   : >> { %2084 = vrot.lane.b32.xlu0 %v4807_v19, %s4394_s22  ;;  %2086 = vrot.lane.b32.xlu1 %v4812_v27, %s4394_s22 }
 0x22e   : >> { %2082 = vrot.lane.b32.xlu0 %v4803_v12, %s4394_s22  ;;  %2090 = vrot.lane.b32.xlu1 %v4818_v28, %s4394_s22 }
 0x232   : >> { %2092 = vrot.lane.b32.xlu0 %v4814_v33, %s4394_s22  ;;  %2088 = vrot.lane.b32.xlu1 %v4810_v22, %s4394_s22 }
 0x236   : >> { %2125 = vrot.lane.b32.xlu0 %v4807_v19, %s4395_s28  ;;  %2127 = vrot.lane.b32.xlu1 %v4812_v27, %s4395_s28 }
 0x23a   : >> { %2123 = vrot.lane.b32.xlu0 %v4803_v12, %s4395_s28  ;;  %2131 = vrot.lane.b32.xlu1 %v4818_v28, %s4395_s28 }
 0x23e   : >> { %2133 = vrot.lane.b32.xlu0 %v4814_v33, %s4395_s28  ;;  %2129 = vrot.lane.b32.xlu1 %v4810_v22, %s4395_s28 }
 0x242   : >> { %2165 = vrot.lane.b32.xlu0 %v4807_v19, %s4396_s6  ;;  %2167 = vrot.lane.b32.xlu1 %v4812_v27, %s4396_s6 }
 0x246   : >> { %2163 = vrot.lane.b32.xlu0 %v4803_v12, %s4396_s6  ;;  %2171 = vrot.lane.b32.xlu1 %v4818_v28, %s4396_s6 }
 0x24a   : >> { %2173 = vrot.lane.b32.xlu0 %v4814_v33, %s4396_s6  ;;  %1836 = vrot.lane.b32.xlu1 %v4812_v27, %s4389_s16 }
 0x24e   : >> { %2169 = vrot.lane.b32.xlu0 %v4810_v22, %s4396_s6  ;;  %1844 = vrot.lane.b32.xlu1 %v4814_v33, %s4389_s16 }
 0x252   : >> { %1887 = vrot.lane.b32.xlu0 %v4812_v27, %s4390_s17  ;;  %1895 = vrot.lane.b32.xlu1 %v4814_v33, %s4390_s17 }
 0x256   : >> { %1938 = vrot.lane.b32.xlu0 %v4812_v27, %s4391_s19  ;;  %1946 = vrot.lane.b32.xlu1 %v4814_v33, %s4391_s19 }
 0x25a   : >> { %1989 = vrot.lane.b32.xlu0 %v4812_v27, %s4392_s20  ;;  %1997 = vrot.lane.b32.xlu1 %v4814_v33, %s4392_s20 }
 0x25e   : >> { %2247 = vperm.xlu0 %4333, %v1810_v58   ;;  %2252 = vperm.xlu1 %4334, %v1811_v59  }
 0x260   : >> { %v1833_v37 = vpop.permute.xlu0 %1832  ;;  %v1831_v38 = vpop.permute.xlu1 %1830 }
 0x261   : >> { %v1847_v30 = vsel %vm5552_vm11, %v1831_v38, %v1833_v37 }
 0x262   : >> { %2257 = vperm.xlu1 %4334, %v1812_v63   ;;  %2262 = vperm.xlu0 %4333, %v1813_v53  }
 0x264   : >> { %v4932_v39 = vpop.permute.xlu0 %1834  ;;  %v1841_v41 = vpop.permute.xlu1 %1840 }
 0x265   : >> { %v1848_v40 = vsel %vm5552_vm11, %v1833_v37, %v4932_v39 }
 0x266   : >> { %2301 = vmatprep.subr.bf16.mxu0 %v1848_v40 }
 0x267   : >> { %2302 = vmatpush1.bf16.msra.mxu0 %v1847_v30 }
 0x268   : >> { %v4937_v42 = vpop.permute.xlu0 %1842  ;;  %v1839_v43 = vpop.permute.xlu1 %1838 }
 0x269   : >> { %v1851_v31 = vsel %vm5552_vm11, %v1841_v41, %v4937_v42  ;;  %v1850_v44 = vsel %vm5552_vm11, %v1839_v43, %v1841_v41 }
 0x26a   : >> { %2303 = vmatprep.subr.bf16.mxu0 %v1851_v31 }
 0x26b   : >> { %2304 = vmatpush1.bf16.msra.mxu0 %v1850_v44 }
 0x26c   : >> { %v1884_v46 = vpop.permute.xlu0 %1883  ;;  %v4942_v45 = vpop.permute.xlu1 %1885 }
 0x26d   : >> { %v1899_v47 = vsel %vm5551_vm12, %v1884_v46, %v4942_v45 }
 0x26e   : >> { %2305 = vmatprep.subr.bf16.mxu0 %v1899_v47 }
 0x270   : >> { %v1882_v48 = vpop.permute.xlu0 %1881  ;;  %v1892_v50 = vpop.permute.xlu1 %1891 }
 0x271   : >> { %v1898_v49 = vsel %vm5551_vm12, %v1882_v48, %v1884_v46 }
 0x272   : >> { %2306 = vmatpush1.bf16.msra.mxu0 %v1898_v49 }
 0x274   : >> { %v4947_v51 = vpop.permute.xlu0 %1893  ;;  %v1890_v54 = vpop.permute.xlu1 %1889 }
 0x275   : >> { %v1902_v52 = vsel %vm5551_vm12, %v1892_v50, %v4947_v51  ;;  %v1901_v56 = vsel %vm5551_vm12, %v1890_v54, %v1892_v50  ;;  %v5005_v54 = vld [vmem:[%s4887_s27] ss:$12 sps:$4 sm:$0xff]  }
 0x276   : >> { %2307 = vmatprep.subr.bf16.mxu0 %v1902_v52 }
 0x277   : >> { %2308 = vmatpush1.bf16.msra.mxu0 %v1901_v56  ;;  %v5008_v56 = vld [vmem:[%s4887_s27 + $0x1c] ss:$12 sps:$4 sm:$0xff]  }
 0x278   : >> { %v1935_v57 = vpop.permute.xlu0 %1934  ;;  %v4960_v61 = vpop.permute.xlu1 %1936 }
 0x279   : >> { %v1950_v62 = vsel %vm5550_vm13, %v1935_v57, %v4960_v61 }
 0x27a   : >> { %2309 = vmatprep.subr.bf16.mxu0 %v1950_v62 }
 0x27c   : >> { %v1933_v2 = vpop.permute.xlu0 %1932  ;;  %v1943_v5 = vpop.permute.xlu1 %1942 }
 0x27d   : >> { %v1949_v3 = vsel %vm5550_vm13, %v1933_v2, %v1935_v57  ;;  %v5016_v2 = vld [vmem:[%s4887_s27 + $0x18] ss:$12 sps:$4 sm:$0xff]  }
 0x27e   : >> { %2310 = vmatpush1.bf16.msra.mxu0 %v1949_v3 }
 0x280   : >> { %v4967_v6 = vpop.permute.xlu0 %1944  ;;  %v1941_v7 = vpop.permute.xlu1 %1940 }
 0x281   : >> { %v1953_v60 = vsel %vm5550_vm13, %v1943_v5, %v4967_v6  ;;  %v1952_v8 = vsel %vm5550_vm13, %v1941_v7, %v1943_v5 }
 0x282   : >> { %2311 = vmatprep.subr.bf16.mxu0 %v1953_v60 }
 0x283   : >> { %2312 = vmatpush1.bf16.msra.mxu0 %v1952_v8 }
 0x284   : >> { %v1986_v9 = vpop.permute.xlu0 %1985  ;;  %v4972_v10 = vpop.permute.xlu1 %1987 }
 0x285   : >> { %v2001_v11 = vsel %vm5549_vm14, %v1986_v9, %v4972_v10 }
 0x286   : >> { %2313 = vmatprep.subr.bf16.mxu0 %v2001_v11 }
 0x288   : >> { %v1984_v13 = vpop.permute.xlu0 %1983  ;;  %v1994_v15 = vpop.permute.xlu1 %1993 }
 0x289   : >> { %v2000_v14 = vsel %vm5549_vm14, %v1984_v13, %v1986_v9 }
 0x28a   : >> { %2314 = vmatpush1.bf16.msra.mxu0 %v2000_v14  ;;  %v5029_v14 = vld [vmem:[%s4887_s27 + $0x8] ss:$12 sps:$4 sm:$0xff]  }
 0x28c   : >> { %v4977_v16 = vpop.permute.xlu0 %1995  ;;  %v1992_v18 = vpop.permute.xlu1 %1991 }
 0x28d   : >> { %v2004_v17 = vsel %vm5549_vm14, %v1994_v15, %v4977_v16  ;;  %v2003_v20 = vsel %vm5549_vm14, %v1992_v18, %v1994_v15  ;;  %v2220_v18 = vld [vmem:[#allocation5 + $0xe8] sm:$0xff] }
 0x28e   : >> { %2315 = vmatprep.subr.bf16.mxu0 %v2004_v17 }
 0x28f   : >> { %2316 = vmatpush1.bf16.msra.mxu0 %v2003_v20 }
 0x290   : >> { %v2045_v21 = vpop.permute.xlu0 %2044  ;;  %2317 = vmatprep.subr.bf16.mxu0 %v4807_v19  ;;  %v2047_v23 = vpop.permute.xlu1 %2046 }
 0x291   : >> { %2066 = vst.msk [vmem:[#allocation5 + $0x100] sm:$0xff] %vm5570_vm7, %v2047_v23  ;;  %v2055_v25 = vsel %vm5571_vm0, %v2045_v21, %v2047_v23 }
 0x293   : >> { %2318 = vmatpush1.bf16.msra.mxu0 %v4803_v12 }
 0x294   : >> { %v2043_v0 = vpop.permute.xlu0 %2042  ;;  %2319 = vmatprep.subr.bf16.mxu0 %v4818_v28  ;;  %v2051_v24 = vpop.permute.xlu1 %2050 }
 0x295   : >> { %v2054_v19 = vsel %vm5571_vm0, %v2043_v0, %v2045_v21 }
 0x297   : >> { %2320 = vmatpush1.bf16.msra.mxu0 %v4810_v22 }
 0x298   : >> { %v2053_v26 = vpop.permute.xlu0 %2052  ;;  %2321 = vmatprep.subr.bf16.mxu0 %v2055_v25  ;;  %v2049_v27 = vpop.permute.xlu1 %2048  ;;  %v2223_v25 = vld [vmem:[#allocation5 + $0x100] sm:$0xff] }
 0x299   : >> { %2069 = vst.msk [vmem:[#allocation5 + $0x118] sm:$0xff] %vm5570_vm7, %v2053_v26  ;;  %v2057_v32 = vsel %vm5571_vm0, %v2051_v24, %v2053_v26  ;;  %v2056_v28 = vsel %vm5571_vm0, %v2049_v27, %v2051_v24  ;;  %v4342_v24 = vld [vmem:[%s4887_s27 + $0x20] ss:$12 sps:$4 sm:$0xff]  }
 0x29b   : >> { %2322 = vmatpush1.bf16.msra.mxu0 %v2054_v19 }
 0x29c   : >> { %v2085_v33 = vpop.permute.xlu0 %2084  ;;  %2323 = vmatprep.subr.bf16.mxu0 %v2057_v32  ;;  %v2087_v12 = vpop.permute.xlu1 %2086 }
 0x29d   : >> { %2107 = vst.msk [vmem:[#allocation5 + $0x130] sm:$0xff] %vm5570_vm7, %v2087_v12  ;;  %v2096_v22 = vsel %vm5547_vm15, %v2085_v33, %v2087_v12 }
 0x29f   : >> { %2324 = vmatpush1.bf16.msra.mxu0 %v2056_v28 }
 0x2a0   : >> { %v2083_v34 = vpop.permute.xlu0 %2082  ;;  %2325 = vmatprep.subr.bf16.mxu0 %v2096_v22  ;;  %v2091_v36 = vpop.permute.xlu1 %2090 }
 0x2a1   : >> { %v2095_v35 = vsel %vm5547_vm15, %v2083_v34, %v2085_v33 }
 0x2a3   : >> { %2326 = vmatpush1.bf16.msra.mxu0 %v2095_v35 }
 0x2a4   : >> { %v2093_v37 = vpop.permute.xlu0 %2092  ;;  %v2089_v40 = vpop.permute.xlu1 %2088  ;;  %v2229_v12 = vld [vmem:[#allocation5 + $0x130] sm:$0xff] }
 0x2a5   : >> { %v2098_v38 = vsel %vm5547_vm15, %v2091_v36, %v2093_v37  ;;  %2110 = vst.msk [vmem:[#allocation5 + $0x148] sm:$0xff] %vm5570_vm7, %v2093_v37  ;;  %v2097_v41 = vsel %vm5547_vm15, %v2089_v40, %v2091_v36  ;;  %v2571_v40 = vld [vmem:[#allocation3] sm:$0xff] }
 0x2a6   : >> { %2327 = vmatprep.subr.bf16.mxu0 %v2098_v38  ;;  %2587 = vrot.lane.b32.xlu1 %v2571_v40, %s4389_s16 }
 0x2a7   : >> { %2328 = vmatpush1.bf16.msra.mxu0 %v2097_v41  ;;  %v2575_v41 = vld [vmem:[#allocation3 + $0x20] sm:$0xff] }
 0x2a8   : >> { %v2126_v30 = vpop.permute.xlu0 %2125  ;;  %v2128_v31 = vpop.permute.xlu1 %2127  ;;  %2595 = vrot.lane.b32.xlu0 %v2575_v41, %s4389_s16 }
 0x2a9   : >> { %v2136_v43 = vsel %vm5572_vm4, %v2126_v30, %v2128_v31  ;;  %2147 = vst.msk [vmem:[#allocation5 + $0x160] sm:$0xff] %vm5570_vm7, %v2128_v31 }
 0x2aa   : >> { %2329 = vmatprep.subr.bf16.mxu0 %v2136_v43  ;;  %2637 = vrot.lane.b32.xlu1 %v2571_v40, %s4390_s17 }
 0x2ac   : >> { %v2124_v44 = vpop.permute.xlu0 %2123  ;;  %v2132_v47 = vpop.permute.xlu1 %2131  ;;  %2645 = vrot.lane.b32.xlu0 %v2575_v41, %s4390_s17 }
 0x2ad   : >> { %v2135_v46 = vsel %vm5572_vm4, %v2124_v44, %v2126_v30 }
 0x2ae   : >> { %2330 = vmatpush1.bf16.msra.mxu0 %v2135_v46  ;;  %2687 = vrot.lane.b32.xlu1 %v2571_v40, %s4391_s19 }
 0x2b0   : >> { %v2134_v48 = vpop.permute.xlu0 %2133  ;;  %v2130_v50 = vpop.permute.xlu1 %2129  ;;  %v2235_v34 = vld [vmem:[#allocation5 + $0x160] sm:$0xff]  ;;  %2695 = vrot.lane.b32.xlu0 %v2575_v41, %s4391_s19 }
 0x2b1   : >> { %v2138_v49 = vsel %vm5572_vm4, %v2132_v47, %v2134_v48  ;;  %2150 = vst.msk [vmem:[#allocation5 + $0x178] sm:$0xff] %vm5570_vm7, %v2134_v48  ;;  %v2137_v52 = vsel %vm5572_vm4, %v2130_v50, %v2132_v47 }
 0x2b2   : >> { %2331 = vmatprep.subr.bf16.mxu0 %v2138_v49  ;;  %2737 = vrot.lane.b32.xlu1 %v2571_v40, %s4392_s20 }
 0x2b3   : >> { %2332 = vmatpush1.bf16.msra.mxu0 %v2137_v52 }
 0x2b4   : >> { %v2166_v57 = vpop.permute.xlu0 %2165  ;;  %v2168_v58 = vpop.permute.xlu1 %2167  ;;  %2745 = vrot.lane.b32.xlu0 %v2575_v41, %s4392_s20 }
 0x2b5   : >> { %v2176_v59 = vsel %vm5573_vm5, %v2166_v57, %v2168_v58  ;;  %2187 = vst.msk [vmem:[#allocation5 + $0x190] sm:$0xff] %vm5570_vm7, %v2168_v58 }
 0x2b6   : >> { %2334 = vmatmul.mubr.bf16.vlgmr.msra.gmra.mrb[0].mxu0 %v5005_v54  ;;  %2354 = vmatprep.subr.bf16.mxu0 %v2176_v59 }
 0x2b7   : >> { %2343 = vmatprep.mubr.bf16.mxu0 %v5008_v56 }
 0x2b8   : >> { %v2164_v62 = vpop.permute.xlu0 %2163  ;;  %v2172_v53 = vpop.permute.xlu1 %2171  ;;  %v2238_v35 = vld [vmem:[#allocation5 + $0x178] sm:$0xff] }
 0x2b9   : >> { %v2175_v63 = vsel %vm5573_vm5, %v2164_v62, %v2166_v57 }
 0x2ba   : >> { %2355 = vmatpush1.bf16.msra.mxu0 %v2175_v63 }
 0x2bc   : >> { %v2174_v3 = vpop.permute.xlu0 %2173  ;;  %v1837_v60 = vpop.permute.xlu1 %1836  ;;  %v2241_v37 = vld [vmem:[#allocation5 + $0x190] sm:$0xff] }
 0x2bd   : >> { %v2178_v5 = vsel %vm5573_vm5, %v2172_v53, %v2174_v3  ;;  %2190 = vst.msk [vmem:[#allocation5 + $0x1a8] sm:$0xff] %vm5570_vm7, %v2174_v3  ;;  %v1849_v7 = vsel %vm5552_vm11, %v4932_v39, %v1837_v60 }
 0x2be   : >> { %2344 = vmatmul.mubr.bf16.gmra.mrb[4].mxu0 %v5016_v2  ;;  %2356 = vmatprep.subr.bf16.mxu0 %v2178_v5  ;;  %1861 = vst.msk [vmem:[#allocation5 + $0x10] sm:$0xff] %vm5570_vm7, %v1849_v7 }
 0x2bf   : >> { %2386 = vmatprep.mubr.bf16.mxu0 %v4397_v29 }
 0x2c0   : >> { %v2170_v8 = vpop.permute.xlu0 %2169  ;;  %v1845_v11 = vpop.permute.xlu1 %1844 }
 0x2c1   : >> { %v2177_v9 = vsel %vm5573_vm5, %v2170_v8, %v2172_v53  ;;  %v1852_v13 = vsel %vm5552_vm11, %v4937_v42, %v1845_v11 }
 0x2c2   : >> { %2357 = vmatpush1.bf16.msra.mxu0 %v2177_v9  ;;  %1864 = vst.msk [vmem:[#allocation5 + $0x28] sm:$0xff] %vm5570_vm7, %v1852_v13 }
 0x2c4   : >> { %v1888_v39 = vpop.permute.xlu0 %1887  ;;  %v1896_v17 = vpop.permute.xlu1 %1895  ;;  %v2244_v38 = vld [vmem:[#allocation5 + $0x1a8] sm:$0xff] }
 0x2c5   : >> { %v1900_v15 = vsel %vm5551_vm12, %v4942_v45, %v1888_v39  ;;  %v1903_v20 = vsel %vm5551_vm12, %v4947_v51, %v1896_v17  ;;  %v2193_v21 = vld [vmem:[#allocation5 + $0x10] sm:$0xff] }
 0x2c6   : >> { %1912 = vst.msk [vmem:[#allocation5 + $0x40] sm:$0xff] %vm5570_vm7, %v1900_v15  ;;  %3924 = vmatmul.mubr.msk.bf16.vlgmr.msra.gmra.mrb[0].mxu0 %vm5570_vm7, %v5029_v14  ;;  %1915 = vst.msk [vmem:[#allocation5 + $0x58] sm:$0xff] %vm5570_vm7, %v1903_v20  ;;  %3988 = vmatpush3.bf16.msra.mxu1 %v2193_v21  ;;  %v5584_v15 = vmov 0 }
 0x2c7   : >> { %2396 = vmatprep.mubr.bf16.mxu0 %v4397_v29  ;;  %3989 = vmatprep.subr.bf16.mxu1 %v2220_v18 }
 0x2c8   : >> { %v1939_v42 = vpop.permute.xlu0 %1938  ;;  %v1947_v23 = vpop.permute.xlu1 %1946 }
 0x2c9   : >> { %v1951_v45 = vsel %vm5550_vm13, %v4960_v61, %v1939_v42  ;;  %v1954_v51 = vsel %vm5550_vm13, %v4967_v6, %v1947_v23  ;;  %v2196_v0 = vld [vmem:[#allocation5 + $0x28] sm:$0xff]  ;;  %v2226_v6 = vld [vmem:[#allocation5 + $0x118] sm:$0xff]  ;;  %v5588_v42 = vmov 0 }
 0x2ca   : >> { %1963 = vst.msk [vmem:[#allocation5 + $0x70] sm:$0xff] %vm5570_vm7, %v1951_v45  ;;  %1966 = vst.msk [vmem:[#allocation5 + $0x88] sm:$0xff] %vm5570_vm7, %v1954_v51  ;;  %3990 = vmatpush3.bf16.msra.mxu1 %v2196_v0 }
 0x2cb   : >> { %3991 = vmatprep.subr.bf16.mxu1 %v2223_v25 }
 0x2cc   : >> { %v1990_v26 = vpop.permute.xlu0 %1989  ;;  %v1998_v19 = vpop.permute.xlu1 %1997 }
 0x2cd   : >> { %v2002_v27 = vsel %vm5549_vm14, %v4972_v10, %v1990_v26  ;;  %v2199_v32 = vld [vmem:[#allocation5 + $0x40] sm:$0xff]  ;;  %v2005_v61 = vsel %vm5549_vm14, %v4977_v16, %v1998_v19  ;;  %v2202_v33 = vld [vmem:[#allocation5 + $0x58] sm:$0xff]  ;;  %v2232_v10 = vld [vmem:[#allocation5 + $0x148] sm:$0xff] }
 0x2ce   : >> { %2014 = vst.msk [vmem:[#allocation5 + $0xa0] sm:$0xff] %vm5570_vm7, %v2002_v27  ;;  %3925 = vmatmul.mubr.msk.bf16.gmra.mrb[4].mxu0 %vm5570_vm7, %v4342_v24  ;;  %2017 = vst.msk [vmem:[#allocation5 + $0xb8] sm:$0xff] %vm5570_vm7, %v2005_v61  ;;  %3992 = vmatpush3.bf16.msra.mxu1 %v2199_v32 }
 0x2cf   : >> { %3993 = vmatprep.subr.bf16.mxu1 %v2226_v6 }
 0x2d1   : >> { %v2205_v28 = vld [vmem:[#allocation5 + $0x70] sm:$0xff]  ;;  %v2208_v22 = vld [vmem:[#allocation5 + $0x88] sm:$0xff] }
 0x2d2   : >> { %3994 = vmatpush3.bf16.msra.mxu1 %v2202_v33 }
 0x2d3   : >> { %3995 = vmatprep.subr.bf16.mxu1 %v2229_v12 }
 0x2d5   : >> { %v2211_v16 = vld [vmem:[#allocation5 + $0xa0] sm:$0xff]  ;;  %v2214_v36 = vld [vmem:[#allocation5 + $0xb8] sm:$0xff] }
 0x2d6   : >> { %3996 = vmatpush3.bf16.msra.mxu1 %v2205_v28 }
 0x2d7   : >> { %3997 = vmatprep.subr.bf16.mxu1 %v2232_v10 }
 0x2da   : >> { %3998 = vmatpush3.bf16.msra.mxu1 %v2208_v22 }
 0x2db   : >> { %3999 = vmatprep.subr.bf16.mxu1 %v2235_v34 }
 0x2dd   : >> { %v5069_v30 = vpop.permute.xlu0 %2247  ;;  %v5071_v43 = vpop.permute.xlu1 %2252 }
 0x2de   : >> { %4000 = vmatpush3.bf16.msra.mxu1 %v2211_v16 }
 0x2df   : >> { %4001 = vmatprep.subr.bf16.mxu1 %v2238_v35 }
 0x2e1   : >> { %v2258_v62 = vpop.permute.xlu1 %2257  ;;  %v2263_v60 = vpop.permute.xlu0 %2262 }
 0x2e2   : >> { %4002 = vmatpush3.bf16.msra.mxu1 %v2214_v36 }
 0x2e3   : >> { %4105 = vmatprep.subr.bf16.mxu1 %v2241_v37 }
 0x2e5   : >> { %2440 = vmatmul.mubr.bf16.vlgmr.msra.gmra.mrb[0].mxu1 %v5005_v54 }
 0x2e6   : >> { %4106 = vmatpush3.bf16.msra.mxu1 %v2241_v37  ;;  %2447 = vmatprep.mubr.bf16.mxu1 %v5008_v56 }
 0x2e7   : >> { %4107 = vmatprep.subr.bf16.mxu1 %v2244_v38 }
 0x2ea   : >> { %4108 = vmatpush3.bf16.msra.mxu1 %v2244_v38 }
 0x2ed   : >> { %2448 = vmatmul.mubr.bf16.gmra.mrb[4].mxu1 %v5016_v2 }
 0x2ee   : >> { %4109 = vmatprep.mubr.msk.bf16.mxu1 %vm5570_vm7, %v5029_v14 }
 0x2f5   : >> { %4110 = vmatmul.mubr.msk.bf16.vlgmr.msra.gmra.mrb[8].mxu1 %vm5570_vm7, %v4342_v24 }
 0x399   : >> { %v2388_v31 = vpop.f32.mrb[0].mxu0 }
 0x39a   : >> { %v5074_v44 = vadd.f32 %v2388_v31, %v5069_v30  ;;  %v2390_v46 = vpop.f32.mrb[1].mxu0 }
 0x39b   : >> { %v5077_v47 = vadd.f32 %v2390_v46, %v5069_v30  ;;  %v2392_v48 = vpop.f32.mrb[2].mxu0 }
 0x39c   : >> { %vm2505_vm6 = vcmp.gt.f32.partialorder %v5074_v44, 0.0  ;;  %v5081_v49 = vadd.f32 %v2392_v48, %v5071_v43  ;;  %v2394_v50 = vpop.f32.mrb[3].mxu0 }
 0x39d   : >> { %vm5085_vm8 = vmand %vm5574_vm1, %vm2505_vm6  ;;  %vm2506_vm9 = vcmp.gt.f32.partialorder %v5077_v47, 0.0  ;;  %v5091_v54 = vadd.f32 %v2394_v50, %v5071_v43 }
 0x39e   : >> { %v2529_v56 = vsel %vm5085_vm8, %v5074_v44, 0.0  ;;  %vm5098_vm10 = vmand %vm5577_vm2, %vm2506_vm9  ;;  %vm2508_vm6 = vcmp.gt.f32.partialorder %v5081_v49, 0.0  ;;  %v4355_v57 = vpack.c.bf16 %v5081_v49, %v5074_v44 }
 0x39f   : >> { %v2530_v58 = vsel %vm5098_vm10, %v5077_v47, 0.0  ;;  %vm5108_vm5 = vmand %vm5574_vm1, %vm2508_vm6  ;;  %vm2509_vm4 = vcmp.gt.f32.partialorder %v5091_v54, 0.0 }
 0x3a0   : >> { %v2532_v63 = vsel %vm5108_vm5, %v5081_v49, 0.0  ;;  %vm5118_vm9 = vmand %vm5577_vm2, %vm2509_vm4 }
 0x3a1   : >> { %v5122_v2 = vpack.c.bf16 %v2532_v63, %v2529_v56  ;;  %v2533_v3 = vsel %vm5118_vm9, %v5091_v54, 0.0  ;;  %v2398_v5 = vpop.f32.mrb[4].mxu0 }
 0x3a2   : >> { %v5127_v7 = vpack.c.bf16 %v2533_v3, %v2530_v58  ;;  %v5129_v8 = vadd.f32 %v2398_v5, %v2258_v62  ;;  %v2400_v9 = vpop.f32.mrb[5].mxu0 }
 0x3a3   : >> { %v5131_v11 = vadd.f32 %v2400_v9, %v2258_v62  ;;  %v2402_v13 = vpop.f32.mrb[6].mxu0  ;;  %2589 = vrot.lane.b32.xlu1 %v5122_v2, %s4389_s16  ;;  %v2588_v9 = vpop.permute.xlu1 %2587 }
 0x3a4   : >> { %vm2511_vm4 = vcmp.gt.f32.partialorder %v5129_v8, 0.0  ;;  %v5136_v14 = vadd.f32 %v2402_v13, %v2263_v60  ;;  %v2404_v39 = vpop.f32.mrb[7].mxu0  ;;  %2591 = vrot.lane.b32.xlu0 %v5127_v7, %s4389_s16  ;;  %v2596_v13 = vpop.permute.xlu0 %2595 }
 0x3a5   : >> { %vm5142_vm6 = vmand %vm5574_vm1, %vm2511_vm4  ;;  %vm2512_vm15 = vcmp.gt.f32.partialorder %v5131_v11, 0.0  ;;  %v5147_v17 = vadd.f32 %v2404_v39, %v2263_v60 }
 0x3a6   : >> { %v5585_v15 = vsel %vm5142_vm6, 4294967295, %v5584_v15  ;;  %v2535_v18 = vsel %vm5142_vm6, %v5129_v8, 0.0  ;;  %vm5154_vm0 = vmand %vm5577_vm2, %vm2512_vm15  ;;  %vm2514_vm14 = vcmp.gt.f32.partialorder %v5136_v14, 0.0  ;;  %v4361_v49 = vpack.c.bf16 %v5136_v14, %v5129_v8 }
 0x3a7   : >> { %v2536_v21 = vsel %vm5154_vm0, %v5131_v11, 0.0  ;;  %vm5164_vm4 = vmand %vm5574_vm1, %vm2514_vm14  ;;  %vm2515_vm13 = vcmp.gt.f32.partialorder %v5147_v17, 0.0  ;;  %2639 = vrot.lane.b32.xlu1 %v5122_v2, %s4390_s17  ;;  %v2638_v39 = vpop.permute.xlu1 %2637  ;;  %v4358_v52 = vpack.c.bf16 %v5147_v17, %v5131_v11 }
 0x3a8   : >> { %v5589_v42 = vsel %vm5164_vm4, 4294967295, %v5588_v42  ;;  %v2538_v45 = vsel %vm5164_vm4, %v5136_v14, 0.0  ;;  %vm5176_vm15 = vmand %vm5577_vm2, %vm2515_vm13  ;;  %2641 = vrot.lane.b32.xlu0 %v5127_v7, %s4390_s17 }
 0x3a9   : >> { %v5182_v51 = vpack.c.bf16 %v2538_v45, %v2535_v18  ;;  %v2539_v0 = vsel %vm5176_vm15, %v5147_v17, 0.0  ;;  %v5258_v18 = vpop.permute.xlu0 %2645  ;;  %v4345_v45 = vld [vmem:[%s4887_s27 + $0x34] ss:$12 sps:$4 sm:$0xff]  }
 0x3aa   : >> { %v5187_v24 = vpack.c.bf16 %v2539_v0, %v2536_v21  ;;  %3085 = vmatprep.mubr.bf16.mxu1 %v4345_v45  ;;  %3191 = vmatprep.mubr.bf16.mxu0 %v4345_v45 }
 0x3ab   : >> { %2689 = vrot.lane.b32.xlu1 %v5122_v2, %s4391_s19  ;;  %v2688_v21 = vpop.permute.xlu1 %2687 }
 0x3ac   : >> { %2691 = vrot.lane.b32.xlu0 %v5127_v7, %s4391_s19 }
 0x3ad   : >> { %v5265_v0 = vpop.permute.xlu0 %2695 }
 0x3af   : >> { %2739 = vrot.lane.b32.xlu1 %v5122_v2, %s4392_s20 }
 0x3b0   : >> { %2741 = vrot.lane.b32.xlu0 %v5127_v7, %s4392_s20 }
 0x3b3   : >> { %2797 = vrot.lane.b32.xlu1 %v5127_v7, %s4393_s21 }
 0x3b4   : >> { %2597 = vrot.lane.b32.xlu0 %v5182_v51, %s4389_s16 }
 0x3b7   : >> { %2599 = vrot.lane.b32.xlu1 %v5187_v24, %s4389_s16 }
 0x3b8   : >> { %v4003_v25 = vpop.f32.mrb[0].mxu1 }
 0x3b9   : >> { %v4004_v26 = vpop.f32.mrb[1].mxu1 }
 0x3ba   : >> { %v4005_v27 = vadd.f32 %v4004_v26, %v4003_v25  ;;  %v4006_v19 = vpop.f32.mrb[2].mxu1  ;;  %v2738_v25 = vpop.permute.xlu1 %2737 }
 0x3bb   : >> { %v4007_v32 = vpop.f32.mrb[3].mxu1  ;;  %v5273_v26 = vpop.permute.xlu0 %2745 }
 0x3bc   : >> { %v4008_v61 = vadd.f32 %v4007_v32, %v4006_v19  ;;  %v2442_v35 = vadd.f32 %v4005_v27, %v5069_v30 }
 0x3be   : >> { %v2445_v31 = vadd.f32 %v4008_v61, %v5071_v43 }
 0x3c0   : >> { %v4009_v6 = vpop.f32.mrb[4].mxu1 }
 0x3c1   : >> { %v4010_v33 = vpop.f32.mrb[5].mxu1 }
 0x3c2   : >> { %v4011_v12 = vadd.f32 %v4010_v33, %v4009_v6  ;;  %v4012_v28 = vpop.f32.mrb[6].mxu1 }
 0x3c3   : >> { %v4013_v10 = vpop.f32.mrb[7].mxu1 }
 0x3c4   : >> { %v4014_v22 = vadd.f32 %v4013_v10, %v4012_v28  ;;  %v2450_v34 = vadd.f32 %v4011_v12, %v2258_v62 }
 0x3c6   : >> { %v2453_v38 = vadd.f32 %v4014_v22, %v2263_v60 }
 0x3c8   : >> { %v4111_v16 = vpop.f32.mrb[8].mxu1 }
 0x3c9   : >> { %v2499_v36 = vadd.f32 %v4111_v16, %v2450_v34  ;;  %v2490_v37 = vpop.f32.mrb[9].mxu1 }
 0x3ca   : >> { %v2491_v40 = vadd.f32 %v2490_v37, %v2442_v35  ;;  %v4112_v41 = vpop.f32.mrb[10].mxu1  ;;  %v3940_v35 = vld [vmem:[%s4956_s11 + $0x20] sm:$0xff] }
 0x3cb   : >> { %vm2513_vm13 = vcmp.gt.f32.partialorder %v2499_v36, 0.0  ;;  %v2502_v46 = vadd.f32 %v4112_v41, %v2453_v38  ;;  %v2493_v48 = vpop.f32.mrb[11].mxu1  ;;  %v3941_v38 = vld [vmem:[%s4956_s11 + $0x28] sm:$0xff] }
 0x3cc   : >> { %vm2525_vm14 = vmand %vm4781_vm3, %vm2513_vm13  ;;  %vm2507_vm12 = vcmp.gt.f32.partialorder %v2491_v40, 0.0  ;;  %v2494_v50 = vadd.f32 %v2493_v48, %v2445_v31  ;;  %vm5592_vm13 = vcmask 261120  }
 0x3cd   : >> { %vm2519_vm11 = vmand %vm4781_vm3, %vm2507_vm12  ;;  %vm2516_vm7 = vcmp.gt.f32.partialorder %v2502_v46, 0.0  ;;  %v2537_v30 = vsel %vm2525_vm14, %v2499_v36, 0.0 }
 0x3ce   : >> { %vm2528_vm2 = vmand %vm4781_vm3, %vm2516_vm7  ;;  %vm2510_vm1 = vcmp.gt.f32.partialorder %v2494_v50, 0.0  ;;  %v2531_v43 = vsel %vm2519_vm11, %v2491_v40, 0.0  ;;  %vm5598_vm11 = vcmask 146432  }
 0x3cf   : >> { %v2540_v56 = vsel %vm2528_vm2, %v2502_v46, 0.0  ;;  %vm2522_vm4 = vmand %vm4781_vm3, %vm2510_vm1  ;;  %vm5596_vm1 = vcmask 154624   ;;  %v3943_v46 = vld [vmem:[%s4956_s11 + $0x38] sm:$0xff] }
 0x3d0   : >> { %v2546_v58 = vpack.c.bf16 %v2540_v56, %v2537_v30  ;;  %v2534_v62 = vsel %vm2522_vm4, %v2494_v50, 0.0  ;;  %vm5593_vm6 = vmmov %vm5592_vm13  ;;  %vm5600_vm4 = vcmask 138240  }
 0x3d1   : >> { %v2543_v63 = vpack.c.bf16 %v2534_v62, %v2531_v43  ;;  %vm5594_vm12 = vmmov %vm5593_vm6 }
 0x3d2   : >> { %2552 = vst.msk [vmem:[#allocation3 + $0x38] sm:$0xff] %vm5592_vm13, %v2546_v58  ;;  %vm5595_vm2 = vmmov %vm5593_vm6  ;;  %vm5602_vm13 = vcmask 7168  }
 0x3d3   : >> { %2549 = vst.msk [vmem:[#allocation3 + $0x18] sm:$0xff] %vm5593_vm6, %v2543_v63  ;;  %vm5597_vm7 = vmmov %vm5596_vm1 }
 0x3d4   : >> { %vm5599_vm6 = vmmov %vm5598_vm11 }
 0x3d5   : >> { %vm5601_vm14 = vmmov %vm5600_vm4 }
 0x3d9   : >> { %v5215_v3 = vld [vmem:[#allocation3 + $0x38] sm:$0xff] }
 0x3da   : >> { %v2785_v5 = vld [vmem:[#allocation3 + $0x18] sm:$0xff]  ;;  %2782 = vst.msk [vmem:[#allocation5 + $0xe8] sm:$0xff] %vm5594_vm12, %v5215_v3  ;;  %vm5603_vm12 = vmmov %vm5602_vm13 }
 0x3db   : >> { %2799 = vrot.lane.b32.xlu0 %v2785_v5, %s4393_s21  ;;  %2593 = vrot.lane.b32.xlu1 %v2785_v5, %s4389_s16  ;;  %2779 = vst.msk [vmem:[#allocation5 + $0xd0] sm:$0xff] %vm5595_vm2, %v2785_v5  ;;  %vm5604_vm2 = vmmov %vm5596_vm1 }
 0x3df   : >> { %2647 = vrot.lane.b32.xlu0 %v5182_v51, %s4390_s17  ;;  %2649 = vrot.lane.b32.xlu1 %v5187_v24, %s4390_s17 }
 0x3e2   : >> { %v2969_v60 = vld [vmem:[#allocation5 + $0xd0] sm:$0xff] }
 0x3e3   : >> { %4019 = vmatprep.subr.bf16.mxu0 %v2969_v60  ;;  %2697 = vrot.lane.b32.xlu0 %v5182_v51, %s4391_s19 }
 0x3e4   : >> { %2601 = vrot.lane.b32.xlu1 %v5215_v3, %s4389_s16  ;;  %s4403_s16 = smov (%p1760_p4), 114  }
 0x3e7   : >> { %2747 = vrot.lane.b32.xlu0 %v5182_v51, %s4392_s20 }
 0x3e8   : >> { %2699 = vrot.lane.b32.xlu1 %v5187_v24, %s4391_s19 }
 0x3eb   : >> { %2795 = vrot.lane.b32.xlu0 %v5122_v2, %s4393_s21 }
 0x3ec   : >> { %2837 = vrot.lane.b32.xlu1 %v5127_v7, %s4394_s22 }
 0x3ef   : >> { %2805 = vrot.lane.b32.xlu0 %v5215_v3, %s4393_s21 }
 0x3f0   : >> { %2749 = vrot.lane.b32.xlu1 %v5187_v24, %s4392_s20 }
 0x3f3   : >> { %2801 = vrot.lane.b32.xlu0 %v5182_v51, %s4393_s21 }
 0x3f4   : >> { %2643 = vrot.lane.b32.xlu1 %v2785_v5, %s4390_s17 }
 0x3f7   : >> { %2839 = vrot.lane.b32.xlu0 %v2785_v5, %s4394_s22 }
 0x3f8   : >> { %2651 = vrot.lane.b32.xlu1 %v5215_v3, %s4390_s17  ;;  %s4404_s17 = smov (%p1760_p4), 112  }
 0x3fb   : >> { %2835 = vrot.lane.b32.xlu0 %v5122_v2, %s4394_s22 }
 0x3fc   : >> { %2877 = vrot.lane.b32.xlu1 %v5127_v7, %s4395_s28 }
 0x3ff   : >> { %2845 = vrot.lane.b32.xlu0 %v5215_v3, %s4394_s22 }
 0x400   : >> { %2803 = vrot.lane.b32.xlu1 %v5187_v24, %s4393_s21  ;;  %s4407_s21 = smov (%p1760_p4), 102  }
 0x403   : >> { %2841 = vrot.lane.b32.xlu0 %v5182_v51, %s4394_s22 }
 0x404   : >> { %2693 = vrot.lane.b32.xlu1 %v2785_v5, %s4391_s19 }
 0x407   : >> { %2879 = vrot.lane.b32.xlu0 %v2785_v5, %s4395_s28 }
 0x408   : >> { %2843 = vrot.lane.b32.xlu1 %v5187_v24, %s4394_s22 }
 0x40b   : >> { %2875 = vrot.lane.b32.xlu0 %v5122_v2, %s4395_s28 }
 0x40c   : >> { %2701 = vrot.lane.b32.xlu1 %v5215_v3, %s4391_s19  ;;  %s4405_s19 = smov (%p1760_p4), 106  }
 0x40f   : >> { %2885 = vrot.lane.b32.xlu0 %v5215_v3, %s4395_s28 }
 0x410   : >> { %2883 = vrot.lane.b32.xlu1 %v5187_v24, %s4395_s28 }
 0x413   : >> { %2881 = vrot.lane.b32.xlu0 %v5182_v51, %s4395_s28 }
 0x414   : >> { %2743 = vrot.lane.b32.xlu1 %v2785_v5, %s4392_s20 }
 0x415   : >> { %v2590_v27 = vpop.permute.xlu1 %2589 }
 0x416   : >> { %v2603_v19 = vsel %vm5596_vm1, %v2588_v9, %v2590_v27  ;;  %v2592_v32 = vpop.permute.xlu0 %2591 }
 0x417   : >> { %v2604_v61 = vsel %vm5597_vm7, %v2590_v27, %v2592_v32  ;;  %2751 = vrot.lane.b32.xlu0 %v5215_v3, %s4392_s20  ;;  %vm5605_vm7 = vcmask 1039360   ;;  %s4406_s20 = smov (%p1760_p4), 104  }
 0x418   : >> { %3053 = vmatprep.subr.bf16.mxu1 %v2604_v61  ;;  %2917 = vrot.lane.b32.xlu1 %v5127_v7, %s4396_s6 }
 0x419   : >> { %v2640_v6 = vpop.permute.xlu1 %2639  ;;  %3054 = vmatpush1.bf16.msra.mxu1 %v2603_v19 }
 0x41a   : >> { %v2653_v33 = vsel %vm5598_vm11, %v2638_v39, %v2640_v6  ;;  %v5287_v12 = vpop.permute.xlu0 %2641  ;;  %vm5606_vm11 = vcmask 261120  }
 0x41b   : >> { %v2654_v28 = vsel %vm5599_vm6, %v2640_v6, %v5287_v12  ;;  %2919 = vrot.lane.b32.xlu0 %v2785_v5, %s4396_s6  ;;  %vm5607_vm6 = vmmov %vm5596_vm1 }
 0x41c   : >> { %2915 = vrot.lane.b32.xlu1 %v5122_v2, %s4396_s6 }
 0x41d   : >> { %v2690_v10 = vpop.permute.xlu1 %2689 }
 0x41e   : >> { %v2703_v22 = vsel %vm5600_vm4, %v2688_v21, %v2690_v10  ;;  %v5295_v7 = vpop.permute.xlu0 %2691  ;;  %vm5608_vm4 = vmmov %vm5606_vm11  ;;  %v2972_v21 = vld [vmem:[#allocation5 + $0xe8] sm:$0xff] }
 0x41f   : >> { %v2704_v34 = vsel %vm5601_vm14, %v2690_v10, %v5295_v7  ;;  %2923 = vrot.lane.b32.xlu0 %v5187_v24, %s4396_s6  ;;  %v3942_v24 = vld [vmem:[%s4956_s11 + $0x30] sm:$0xff]  ;;  %vm5609_vm14 = vcmask 146432  }
 0x420   : >> { %2925 = vrot.lane.b32.xlu1 %v5215_v3, %s4396_s6 }
 0x421   : >> { %v2740_v16 = vpop.permute.xlu1 %2739 }
 0x422   : >> { %v2753_v2 = vsel %vm5602_vm13, %v2738_v25, %v2740_v16  ;;  %v5305_v36 = vpop.permute.xlu0 %2741  ;;  %vm5610_vm13 = vmmov %vm5609_vm14 }
 0x423   : >> { %v2754_v37 = vsel %vm5603_vm12, %v2740_v16, %v5305_v36  ;;  %2921 = vrot.lane.b32.xlu0 %v5182_v51, %s4396_s6  ;;  %vm5611_vm12 = vcmask 138240  }
 0x424   : >> { %2999 = vperm.xlu1 %4334, %v3940_v35  }
 0x425   : >> { %v2798_v40 = vpop.permute.xlu1 %2797 }
 0x426   : >> { %v2598_v41 = vpop.permute.xlu0 %2597 }
 0x427   : >> { %v2606_v31 = vsel %vm5604_vm2, %v2596_v13, %v2598_v41  ;;  %3004 = vperm.xlu0 %4333, %v3941_v38   ;;  %vm5612_vm2 = vmmov %vm5596_vm1 }
 0x428   : >> { %3009 = vperm.xlu1 %4334, %v3942_v24  }
 0x429   : >> { %v2600_v48 = vpop.permute.xlu1 %2599 }
 0x42a   : >> { %v2607_v50 = vsel %vm5596_vm1, %v2598_v41, %v2600_v48  ;;  %vm5613_vm1 = vmmov %vm5608_vm4 }
 0x42b   : >> { %3055 = vmatprep.subr.bf16.mxu1 %v2607_v50  ;;  %3014 = vperm.xlu0 %4333, %v3943_v46  }
 0x42c   : >> { %3056 = vmatpush1.bf16.msra.mxu1 %v2606_v31 }
 0x42d   : >> { %3057 = vmatprep.subr.bf16.mxu1 %v2654_v28 }
 0x430   : >> { %3058 = vmatpush1.bf16.msra.mxu1 %v2653_v33 }
 0x44d   : >> { %v2800_v30 = vpop.permute.xlu0 %2799  ;;  %v2594_v51 = vpop.permute.xlu1 %2593 }
 0x44e   : >> { %v5317_v56 = vsel %vm5605_vm7, %v2798_v40, %v2800_v30  ;;  %2819 = vst.msk [vmem:[#allocation5 + $0x100] sm:$0xff] %vm5606_vm11, %v2800_v30  ;;  %v2605_v43 = vsel %vm5607_vm6, %v2592_v32, %v2594_v51  ;;  %vm5614_vm7 = vcmask 7168   ;;  %vm5615_vm11 = vmmov %vm5611_vm12  ;;  %vm5616_vm6 = vcmask 1039360  }
 0x44f   : >> { %2617 = vst.msk [vmem:[#allocation5 + $0x10] sm:$0xff] %vm5608_vm4, %v2605_v43  ;;  %vm5617_vm4 = vmmov %vm5613_vm1 }
 0x451   : >> { %v2648_v58 = vpop.permute.xlu0 %2647  ;;  %v2650_v62 = vpop.permute.xlu1 %2649 }
 0x452   : >> { %v2656_v63 = vsel %vm5609_vm14, %v5258_v18, %v2648_v58  ;;  %v2657_v3 = vsel %vm5610_vm13, %v2648_v58, %v2650_v62  ;;  %vm5618_vm14 = vmmov %vm5614_vm7 }
 0x453   : >> { %3059 = vmatprep.subr.bf16.mxu1 %v2657_v3  ;;  %vm4351_vm13 = vmpackc.low %vm5118_vm9, %vm5098_vm10  ;;  %vm5621_vm10 = vcmask 908288  }
 0x454   : >> { %3060 = vmatpush1.bf16.msra.mxu1 %v2656_v63 }
 0x455   : >> { %v2698_v5 = vpop.permute.xlu0 %2697  ;;  %3061 = vmatprep.subr.bf16.mxu1 %v2704_v34  ;;  %v2975_v6 = vld [vmem:[#allocation5 + $0x100] sm:$0xff]  ;;  %v4352_v34 = vpack.c.bf16 %v5091_v54, %v5077_v47 }
 0x456   : >> { %v2706_v60 = vsel %vm5611_vm12, %v5265_v0, %v2698_v5  ;;  %v2602_v9 = vpop.permute.xlu1 %2601  ;;  %v2945_v13 = vld [vmem:[#allocation5 + $0x10] sm:$0xff]  ;;  %vm5619_vm12 = vcmask 146432  }
 0x457   : >> { %v2608_v39 = vsel %vm5612_vm2, %v2600_v48, %v2602_v9  ;;  %4020 = vmatpush3.bf16.msra.mxu0 %v2945_v13  ;;  %vm5620_vm2 = vmmov %vm5613_vm1 }
 0x458   : >> { %2620 = vst.msk [vmem:[#allocation5 + $0x28] sm:$0xff] %vm5613_vm1, %v2608_v39  ;;  %4021 = vmatprep.subr.bf16.mxu0 %v2972_v21  ;;  %3062 = vmatpush1.bf16.msra.mxu1 %v2703_v22  ;;  %vm4354_vm1 = vmpackc.low %vm5108_vm5, %vm5085_vm8  ;;  %vm5625_vm8 = vnez %v5585_v15  ;;  %v4346_v39 = vld [vmem:[%s4887_s27 + $0x4c] ss:$12 sps:$4 sm:$0xff]  }
 0x459   : >> { %v2748_v18 = vpop.permute.xlu0 %2747  ;;  %vm5622_vm9 = vmmov %vm5620_vm2 }
 0x45a   : >> { %v2756_v45 = vsel %vm5614_vm7, %v5273_v26, %v2748_v18  ;;  %v5331_v25 = vpop.permute.xlu1 %2699  ;;  %vm4357_vm7 = vmpackc.low %vm5176_vm15, %vm5154_vm0  ;;  %vm5629_vm15 = vcmask 1039360  }
 0x45b   : >> { %v2707_v27 = vsel %vm5615_vm11, %v2698_v5, %v5331_v25  ;;  %vm5623_vm11 = vmmov %vm5619_vm12 }
 0x45c   : >> { %3063 = vmatprep.subr.bf16.mxu1 %v2707_v27  ;;  %vm5624_vm5 = vmmov %vm5620_vm2 }
 0x45d   : >> { %v2796_v0 = vpop.permute.xlu0 %2795  ;;  %3064 = vmatpush1.bf16.msra.mxu1 %v2706_v60  ;;  %vm5628_vm0 = vmmov %vm5620_vm2  ;;  %v4343_v60 = vld [vmem:[%s4887_s27 + $0x30] ss:$12 sps:$4 sm:$0xff]  }
 0x45e   : >> { %v2807_v19 = vsel %vm5616_vm6, %v2796_v0, %v2798_v40  ;;  %v2838_v32 = vpop.permute.xlu1 %2837  ;;  %3065 = vmatprep.subr.bf16.mxu1 %v2754_v37  ;;  %vm5626_vm6 = vnez %v5589_v42 }
 0x45f   : >> { %v2948_v61 = vld [vmem:[#allocation5 + $0x28] sm:$0xff] }
 0x460   : >> { %4022 = vmatpush3.bf16.msra.mxu0 %v2948_v61 }
 0x461   : >> { %4023 = vmatprep.subr.bf16.mxu0 %v2975_v6  ;;  %v2806_v33 = vpop.permute.xlu0 %2805  ;;  %3066 = vmatpush1.bf16.msra.mxu1 %v2753_v2 }
 0x462   : >> { %2822 = vst.msk [vmem:[#allocation5 + $0x118] sm:$0xff] %vm5617_vm4, %v2806_v33  ;;  %v5337_v26 = vpop.permute.xlu1 %2749  ;;  %vm4360_vm4 = vmpackc.low %vm5626_vm6, %vm5625_vm8 }
 0x463   : >> { %v2757_v28 = vsel %vm5618_vm14, %v2748_v18, %v5337_v26  ;;  %vm5627_vm14 = vmmov %vm5621_vm10 }
 0x464   : >> { %3067 = vmatprep.subr.bf16.mxu1 %v2757_v28  ;;  %vm5639_vm8 = vmmov %vm5628_vm0 }
 0x465   : >> { %v2802_v10 = vpop.permute.xlu0 %2801  ;;  %3068 = vmatpush1.bf16.msra.mxu1 %v2756_v45  ;;  %vm5640_vm6 = vmmov %vm5628_vm0 }
 0x466   : >> { %v2644_v22 = vpop.permute.xlu1 %2643  ;;  %4353 = vmatprep.subr.msk.bf16.mxu1 %vm4351_vm13, %v4352_v34  ;;  %vm5630_vm13 = vmmov %vm5629_vm15 }
 0x467   : >> { %v2655_v16 = vsel %vm5619_vm12, %v5287_v12, %v2644_v22  ;;  %vm5631_vm12 = vcmask 138240  }
 0x468   : >> { %2667 = vst.msk [vmem:[#allocation5 + $0x40] sm:$0xff] %vm5620_vm2, %v2655_v16  ;;  %vm5632_vm2 = vmmov %vm5628_vm0 }
 0x469   : >> { %v2840_v35 = vpop.permute.xlu0 %2839  ;;  %4356 = vmatpush1.bf16.msk.msra.mxu1 %vm4354_vm1, %v4355_v57  ;;  %v2978_v17 = vld [vmem:[#allocation5 + $0x118] sm:$0xff]  ;;  %vm5633_vm1 = vcmask 900096  }
 0x46a   : >> { %v2848_v53 = vsel %vm5621_vm10, %v2838_v32, %v2840_v35  ;;  %2859 = vst.msk [vmem:[#allocation5 + $0x130] sm:$0xff] %vm5622_vm9, %v2840_v35  ;;  %v2652_v47 = vpop.permute.xlu1 %2651  ;;  %4359 = vmatprep.subr.msk.bf16.mxu1 %vm4357_vm7, %v4358_v52  ;;  %vm5634_vm10 = vmmov %vm5628_vm0  ;;  %v4349_v35 = vld [vmem:[%s4887_s27 + $0x38] ss:$12 sps:$4 sm:$0xff]  }
 0x46b   : >> { %v2658_v54 = vsel %vm5623_vm11, %v2650_v62, %v2652_v47  ;;  %vm5635_vm9 = vmmov %vm5627_vm14 }
 0x46c   : >> { %2670 = vst.msk [vmem:[#allocation5 + $0x58] sm:$0xff] %vm5624_vm5, %v2658_v54  ;;  %vm5636_vm7 = vmmov %vm5635_vm9 }
 0x46d   : >> { %v2836_v44 = vpop.permute.xlu0 %2835  ;;  %4362 = vmatpush1.bf16.msk.msra.mxu1 %vm4360_vm4, %v4361_v49  ;;  %vm5637_vm11 = vmmov %vm5633_vm1 }
 0x46e   : >> { %v2847_v59 = vsel %vm5627_vm14, %v2836_v44, %v2838_v32  ;;  %v2878_v20 = vpop.permute.xlu1 %2877  ;;  %3073 = vmatprep.subr.bf16.mxu1 %v5317_v56  ;;  %vm5638_vm5 = vmmov %vm5631_vm12 }
 0x46f   : >> { %v2951_v11 = vld [vmem:[#allocation5 + $0x40] sm:$0xff]  ;;  %vm5641_vm4 = vmmov %vm5633_vm1 }
 0x470   : >> { %4024 = vmatpush3.bf16.msra.mxu0 %v2951_v11  ;;  %vm5642_vm14 = vmmov %vm5633_vm1 }
 0x471   : >> { %4025 = vmatprep.subr.bf16.mxu0 %v2978_v17  ;;  %v2846_v23 = vpop.permute.xlu0 %2845  ;;  %3074 = vmatpush1.bf16.msra.mxu1 %v2807_v19  ;;  %v2981_v14 = vld [vmem:[#allocation5 + $0x130] sm:$0xff] }
 0x472   : >> { %2862 = vst.msk [vmem:[#allocation5 + $0x148] sm:$0xff] %vm5628_vm0, %v2846_v23  ;;  %v2804_v15 = vpop.permute.xlu1 %2803  ;;  %vm5643_vm0 = vcmask 7168   ;;  %v4348_v19 = vld [vmem:[%s4887_s27 + $0x48] ss:$12 sps:$4 sm:$0xff]  }
 0x473   : >> { %v2809_v42 = vsel %vm5629_vm15, %v2802_v10, %v2804_v15  ;;  %v2810_v12 = vsel %vm5630_vm13, %v2804_v15, %v2806_v33  ;;  %v2954_v8 = vld [vmem:[#allocation5 + $0x58] sm:$0xff]  ;;  %vm5644_vm15 = vmmov %vm5632_vm2 }
 0x474   : >> { %4026 = vmatpush3.bf16.msra.mxu0 %v2954_v8  ;;  %3075 = vmatprep.subr.bf16.mxu1 %v2810_v12  ;;  %vm5645_vm13 = vmmov %vm5643_vm0  ;;  %v3258_v12 = vld [vmem:[#allocation2 + $0x10] sm:$0xff] }
 0x475   : >> { %4027 = vmatprep.subr.bf16.mxu0 %v2981_v14  ;;  %v2842_v2 = vpop.permute.xlu0 %2841  ;;  %3076 = vmatpush1.bf16.msra.mxu1 %v2809_v42 }
 0x476   : >> { %v2694_v37 = vpop.permute.xlu1 %2693  ;;  %3077 = vmatprep.subr.bf16.mxu1 %v2848_v53  ;;  %v4350_v53 = vld [vmem:[%s4887_s27 + $0x50] ss:$12 sps:$4 sm:$0xff]  }
 0x477   : >> { %v2705_v38 = vsel %vm5631_vm12, %v5295_v7, %v2694_v37  ;;  %vm5646_vm12 = vmmov %vm5632_vm2  ;;  %v3260_v37 = vld [vmem:[#allocation2 + $0x28] sm:$0xff] }
 0x478   : >> { %2717 = vst.msk [vmem:[#allocation5 + $0x70] sm:$0xff] %vm5632_vm2, %v2705_v38  ;;  %vm5647_vm2 = vcmask 891904  }
 0x479   : >> { %v2880_v40 = vpop.permute.xlu0 %2879  ;;  %3078 = vmatpush1.bf16.msra.mxu1 %v2847_v59  ;;  %v2984_v56 = vld [vmem:[#allocation5 + $0x148] sm:$0xff] }
 0x47a   : >> { %v2888_v24 = vsel %vm5633_vm1, %v2878_v20, %v2880_v40  ;;  %2899 = vst.msk [vmem:[#allocation5 + $0x160] sm:$0xff] %vm5634_vm10, %v2880_v40  ;;  %v2844_v41 = vpop.permute.xlu1 %2843  ;;  %vm5648_vm1 = vmmov %vm5640_vm6 }
 0x47b   : >> { %v2849_v31 = vsel %vm5635_vm9, %v2842_v2, %v2844_v41  ;;  %v2850_v46 = vsel %vm5636_vm7, %v2844_v41, %v2846_v23  ;;  %vm5649_vm10 = vmmov %vm5647_vm2 }
 0x47c   : >> { %3079 = vmatprep.subr.bf16.mxu1 %v2850_v46  ;;  %vm5650_vm9 = vmmov %vm5647_vm2 }
 0x47d   : >> { %v2876_v48 = vpop.permute.xlu0 %2875  ;;  %3080 = vmatpush1.bf16.msra.mxu1 %v2849_v31  ;;  %vm5651_vm7 = vmmov %vm5648_vm1  ;;  %v3261_v31 = vld [vmem:[#allocation2 + $0x30] sm:$0xff] }
 0x47e   : >> { %v2887_v50 = vsel %vm5637_vm11, %v2876_v48, %v2878_v20  ;;  %v2702_v30 = vpop.permute.xlu1 %2701  ;;  %3081 = vmatprep.subr.bf16.mxu1 %v2888_v24  ;;  %vm5652_vm11 = vmmov %vm5647_vm2 }
 0x47f   : >> { %v2708_v7 = vsel %vm5638_vm5, %v5331_v25, %v2702_v30  ;;  %v2957_v51 = vld [vmem:[#allocation5 + $0x70] sm:$0xff]  ;;  %vm5653_vm5 = vmmov %vm5648_vm1 }
 0x480   : >> { %2720 = vst.msk [vmem:[#allocation5 + $0x88] sm:$0xff] %vm5639_vm8, %v2708_v7  ;;  %4028 = vmatpush3.bf16.msra.mxu0 %v2957_v51  ;;  %vm5654_vm8 = vmmov %vm5648_vm1 }
 0x481   : >> { %4029 = vmatprep.subr.bf16.mxu0 %v2984_v56  ;;  %v2886_v43 = vpop.permute.xlu0 %2885  ;;  %3082 = vmatpush1.bf16.msra.mxu1 %v2887_v50  ;;  %v2987_v21 = vld [vmem:[#allocation5 + $0x160] sm:$0xff] }
 0x482   : >> { %2902 = vst.msk [vmem:[#allocation5 + $0x178] sm:$0xff] %vm5640_vm6, %v2886_v43  ;;  %v2884_v58 = vpop.permute.xlu1 %2883  ;;  %vm5655_vm6 = vmmov %vm5648_vm1 }
 0x483   : >> { %v2890_v62 = vsel %vm5641_vm4, %v2884_v58, %v2886_v43  ;;  %vm5656_vm4 = vmmov %vm5648_vm1 }
 0x484   : >> { %3083 = vmatprep.subr.bf16.mxu1 %v2890_v62 }
 0x485   : >> { %v2882_v63 = vpop.permute.xlu0 %2881 }
 0x486   : >> { %v2889_v3 = vsel %vm5642_vm14, %v2882_v63, %v2884_v58  ;;  %v2744_v5 = vpop.permute.xlu1 %2743  ;;  %vm5657_vm14 = vnez %v5565_v1 }
 0x487   : >> { %v2755_v9 = vsel %vm5643_vm0, %v5305_v36, %v2744_v5  ;;  %v2960_v13 = vld [vmem:[#allocation5 + $0x88] sm:$0xff]  ;;  %3084 = vmatpush1.bf16.msra.mxu1 %v2889_v3  ;;  %vm5658_vm0 = vnez %v5567_v4 }
 0x488   : >> { %2767 = vst.msk [vmem:[#allocation5 + $0xa0] sm:$0xff] %vm5644_vm15, %v2755_v9  ;;  %4030 = vmatpush3.bf16.msra.mxu0 %v2960_v13  ;;  %v3263_v9 = vld [vmem:[#allocation2 + $0x48] sm:$0xff]  ;;  %vm5659_vm15 = vmmov %vm5648_vm1 }
 0x489   : >> { %4031 = vmatprep.subr.bf16.mxu0 %v2987_v21  ;;  %v2752_v18 = vpop.permute.xlu0 %2751  ;;  %v2990_v6 = vld [vmem:[#allocation5 + $0x178] sm:$0xff] }
 0x48a   : >> { %v2758_v45 = vsel %vm5645_vm13, %v5337_v26, %v2752_v18  ;;  %v2918_v25 = vpop.permute.xlu1 %2917  ;;  %3086 = vmatmul.mubr.bf16.vlgmr.msra.gmra.mrb[12].mxu1 %v4343_v60  ;;  %v3264_v18 = vld [vmem:[#allocation2 + $0x50] sm:$0xff]  ;;  %vm5660_vm13 = vmmov %vm5648_vm1 }
 0x48b   : >> { %2770 = vst.msk [vmem:[#allocation5 + $0xb8] sm:$0xff] %vm5646_vm12, %v2758_v45  ;;  %3095 = vmatprep.mubr.bf16.mxu1 %v4346_v39  ;;  %vm5661_vm12 = vmmov %vm5648_vm1 }
 0x48d   : >> { %v2920_v27 = vpop.permute.xlu0 %2919 }
 0x48e   : >> { %v2928_v36 = vsel %vm5647_vm2, %v2918_v25, %v2920_v27  ;;  %2939 = vst.msk [vmem:[#allocation5 + $0x190] sm:$0xff] %vm5648_vm1, %v2920_v27  ;;  %v2916_v0 = vpop.permute.xlu1 %2915  ;;  %vm5662_vm2 = vmmov %vm5648_vm1  ;;  %vm3309_vm1 = vcmask (%p1760_p4), 130048  }
 0x48f   : >> { %v2927_v32 = vsel %vm5649_vm10, %v2916_v0, %v2918_v25  ;;  %v2963_v61 = vld [vmem:[#allocation5 + $0xa0] sm:$0xff]  ;;  %3106 = vmatprep.subr.bf16.mxu1 %v2928_v36  ;;  %v3266_v36 = vld [vmem:[#allocation2 + $0x68] sm:$0xff]  ;;  %vm3359_vm10 = vcmask (%p1760_p4), 392448  }
 0x490   : >> { %4032 = vmatpush3.bf16.msra.mxu0 %v2963_v61  ;;  %3107 = vmatpush1.bf16.msra.mxu1 %v2927_v32 }
 0x491   : >> { %4033 = vmatprep.subr.bf16.mxu0 %v2990_v6  ;;  %v2924_v33 = vpop.permute.xlu0 %2923 }
 0x492   : >> { %v2926_v26 = vpop.permute.xlu1 %2925  ;;  %v2966_v28 = vld [vmem:[#allocation5 + $0xb8] sm:$0xff]  ;;  %3096 = vmatmul.mubr.bf16.gmra.mrb[16].mxu1 %v4348_v19 }
 0x493   : >> { %v2930_v10 = vsel %vm5650_vm9, %v2924_v33, %v2926_v26  ;;  %2942 = vst.msk [vmem:[#allocation5 + $0x1a8] sm:$0xff] %vm5651_vm7, %v2926_v26  ;;  %3138 = vmatprep.mubr.bf16.mxu1 %v4397_v29  ;;  %vm3384_vm9 = vcmask (%p1760_p4), 523648   ;;  %vm3409_vm7 = vcmask (%p1760_p4), 654848  }
 0x494   : >> { %4034 = vmatpush3.bf16.msra.mxu0 %v2966_v28  ;;  %3108 = vmatprep.subr.bf16.mxu1 %v2930_v10 }
 0x495   : >> { %v2922_v22 = vpop.permute.xlu0 %2921  ;;  %v2993_v34 = vld [vmem:[#allocation5 + $0x190] sm:$0xff] }
 0x496   : >> { %v2929_v16 = vsel %vm5652_vm11, %v2922_v22, %v2924_v33  ;;  %4113 = vmatprep.subr.bf16.mxu0 %v2993_v34  ;;  %v3267_v33 = vld [vmem:[#allocation2 + $0x70] sm:$0xff]  ;;  %vm3434_vm11 = vcmask (%p1760_p4), 786048  }
 0x497   : >> { %3192 = vmatmul.mubr.bf16.vlgmr.msra.gmra.mrb[8].mxu0 %v4343_v60  ;;  %3109 = vmatpush1.bf16.msra.mxu1 %v2929_v16  ;;  %v3265_v16 = vld [vmem:[#allocation2 + $0x58] sm:$0xff] }
 0x498   : >> { %4114 = vmatpush3.bf16.msra.mxu0 %v2993_v34  ;;  %3199 = vmatprep.mubr.bf16.mxu0 %v4346_v39 }
 0x49a   : >> { %v2996_v57 = vld [vmem:[#allocation5 + $0x1a8] sm:$0xff]  ;;  %3950 = vmatmul.mubr.msk.bf16.vlgmr.msra.gmra.mrb[12].mxu1 %vm5653_vm5, %v4349_v35  ;;  %vm3459_vm5 = vcmask (%p1760_p4), 917248  }
 0x49b   : >> { %4115 = vmatprep.subr.bf16.mxu0 %v2996_v57  ;;  %3148 = vmatprep.mubr.bf16.mxu1 %v4397_v29  ;;  %v3257_v29 = vld [vmem:[#allocation2 + $0x8] sm:$0xff] }
 0x49c   : >> { %4116 = vmatpush3.bf16.msra.mxu0 %v2996_v57 }
 0x49f   : >> { %3200 = vmatmul.mubr.bf16.gmra.mrb[12].mxu0 %v4348_v19 }
 0x4a0   : >> { %4117 = vmatprep.mubr.msk.bf16.mxu0 %vm5654_vm8, %v4349_v35  ;;  %vm3496_vm8 = vcmask (%p1760_p4), 932864  }
 0x4a2   : >> { %3951 = vmatmul.mubr.msk.bf16.gmra.mrb[16].mxu1 %vm5655_vm6, %v4350_v53  ;;  %vm3505_vm6 = vcmask (%p1760_p4), 1048448  }
 0x4a3   : >> { %v3000_v54 = vpop.permute.xlu1 %2999 }
 0x4a6   : >> { %v3005_v15 = vpop.permute.xlu0 %3004 }
 0x4a7   : >> { %4118 = vmatmul.mubr.msk.bf16.vlgmr.msra.gmra.mrb[16].mxu0 %vm5656_vm4, %v4350_v53  ;;  %v3010_v56 = vpop.permute.xlu1 %3009  ;;  %vm3686_vm4 = vcmask (%p1760_p4), 818176  }
 0x4aa   : >> { %v3015_v39 = vpop.permute.xlu0 %3014 }
 0x56a   : >> { %v4035_v47 = vpop.f32.mrb[8].mxu0 }
 0x56b   : >> { %v4036_v52 = vpop.f32.mrb[9].mxu0 }
 0x56c   : >> { %v4037_v44 = vadd.f32 %v4036_v52, %v4035_v47  ;;  %v4038_v49 = vpop.f32.mrb[10].mxu0 }
 0x56d   : >> { %v4039_v59 = vpop.f32.mrb[11].mxu0  ;;  %v3140_v20 = vpop.f32.mrb[12].mxu1 }
 0x56e   : >> { %v5414_v11 = vadd.f32 %v4039_v59, %v4038_v49  ;;  %v4225_v17 = vadd.f32 %v3140_v20, %v3000_v54  ;;  %v3142_v23 = vpop.f32.mrb[13].mxu1  ;;  %v3194_v28 = vadd.f32 %v4037_v44, %v3000_v54  ;;  %v3259_v49 = vld [vmem:[#allocation2 + $0x18] sm:$0xff] }
 0x56f   : >> { %v4226_v42 = vadd.f32 %v3142_v23, %v3000_v54  ;;  %v3144_v8 = vpop.f32.mrb[14].mxu1 }
 0x570   : >> { %v3269_v14 = vsel %vm5657_vm14, %v4225_v17, 0.0  ;;  %v4227_v2 = vadd.f32 %v3144_v8, %v3005_v15  ;;  %v3146_v38 = vpop.f32.mrb[15].mxu1  ;;  %v3197_v20 = vadd.f32 %v5414_v11, %v3005_v15 }
 0x571   : >> { %v3281_v40 = vadd.f32 %v3269_v14, %v3257_v29  ;;  %v3270_v24 = vsel %vm5658_vm0, %v4226_v42, 0.0  ;;  %v4228_v41 = vadd.f32 %v3146_v38, %v3005_v15  ;;  %v3268_v29 = vld [vmem:[#allocation2 + $0x78] sm:$0xff] }
 0x572   : >> { %v4041_v46 = vpop.f32.mrb[12].mxu0  ;;  %v3282_v48 = vadd.f32 %v3270_v24, %v3258_v12  ;;  %v3272_v50 = vsel %vm5657_vm14, %v4227_v2, 0.0  ;;  %v3262_v14 = vld [vmem:[#allocation2 + $0x38] sm:$0xff] }
 0x573   : >> { %v4042_v30 = vpop.f32.mrb[13].mxu0  ;;  %3293 = vst [vmem:[#allocation2 + $0x8] sm:$0xff] %v3281_v40  ;;  %v3284_v7 = vadd.f32 %v3272_v50, %v3260_v37  ;;  %v3273_v51 = vsel %vm5658_vm0, %v4228_v41, 0.0 }
 0x574   : >> { %v4043_v43 = vadd.f32 %v4042_v30, %v4041_v46  ;;  %v4044_v58 = vpop.f32.mrb[14].mxu0  ;;  %3294 = vst [vmem:[#allocation2 + $0x10] sm:$0xff] %v3282_v48  ;;  %v3285_v62 = vadd.f32 %v3273_v51, %v3261_v31 }
 0x575   : >> { %v4045_v63 = vpop.f32.mrb[15].mxu0  ;;  %3296 = vst [vmem:[#allocation2 + $0x28] sm:$0xff] %v3284_v7  ;;  %v3150_v3 = vpop.f32.mrb[16].mxu1 }
 0x576   : >> { %v4046_v5 = vadd.f32 %v4045_v63, %v4044_v58  ;;  %3297 = vst [vmem:[#allocation2 + $0x30] sm:$0xff] %v3285_v62  ;;  %v4229_v60 = vadd.f32 %v3150_v3, %v3010_v56  ;;  %v3152_v13 = vpop.f32.mrb[17].mxu1  ;;  %v3202_v19 = vadd.f32 %v4043_v43, %v3010_v56 }
 0x577   : >> { %v4230_v21 = vadd.f32 %v3152_v13, %v3010_v56  ;;  %v3154_v45 = vpop.f32.mrb[18].mxu1 }
 0x578   : >> { %v3275_v25 = vsel %vm5657_vm14, %v4229_v60, 0.0  ;;  %v4231_v27 = vadd.f32 %v3154_v45, %v3015_v39  ;;  %v3156_v0 = vpop.f32.mrb[19].mxu1  ;;  %v3205_v57 = vadd.f32 %v4046_v5, %v3015_v39 }
 0x579   : >> { %v3287_v32 = vadd.f32 %v3275_v25, %v3263_v9  ;;  %v3276_v61 = vsel %vm5658_vm0, %v4230_v21, 0.0  ;;  %v4232_v6 = vadd.f32 %v3156_v0, %v3015_v39 }
 0x57a   : >> { %v4119_v26 = vpop.f32.mrb[16].mxu0  ;;  %v3288_v10 = vadd.f32 %v3276_v61, %v3264_v18  ;;  %v3278_v22 = vsel %vm5657_vm14, %v4231_v27, 0.0  ;;  %v3314_v24 = vld [vmem:[#allocation2 + $0x8] sm:$0xff] (%p1760_p4) }
 0x57b   : >> { %v3251_v34 = vadd.f32 %v4119_v26, %v3202_v19  ;;  %v3242_v35 = vpop.f32.mrb[17].mxu0  ;;  %3299 = vst [vmem:[#allocation2 + $0x48] sm:$0xff] %v3287_v32  ;;  %v3290_v53 = vadd.f32 %v3278_v22, %v3266_v36  ;;  %v3279_v47 = vsel %vm5658_vm0, %v4232_v6, 0.0  ;;  %3322 = vrot.lane.b32.xlu0 (%p1760_p4), %v3314_v24, %s4381_s29  ;;  %3310 = vst.msk [vmem:[#allocation6] sm:$0xff] (%p1760_p4), %vm3309_vm1, %v3314_v24  ;;  %v3465_v1 = vld [vmem:[#allocation2 + $0x10] sm:$0xff] (%p1760_p4) }
 0x57c   : >> { %v3243_v52 = vadd.f32 %v3242_v35, %v3194_v28  ;;  %v4120_v59 = vpop.f32.mrb[18].mxu0  ;;  %3300 = vst [vmem:[#allocation2 + $0x50] sm:$0xff] %v3288_v10  ;;  %v3291_v54 = vadd.f32 %v3279_v47, %v3267_v33  ;;  %v3315_v31 = vld [vmem:[#allocation2 + $0x28] sm:$0xff] (%p1760_p4) }
 0x57d   : >> { %v3277_v44 = vsel %vm4781_vm3, %v3251_v34, 0.0  ;;  %v3254_v17 = vadd.f32 %v4120_v59, %v3205_v57  ;;  %v3245_v23 = vpop.f32.mrb[19].mxu0  ;;  %3302 = vst [vmem:[#allocation2 + $0x68] sm:$0xff] %v3290_v53  ;;  %3311 = vst.msk [vmem:[#allocation6 + $0x10] sm:$0xff] (%p1760_p4), %vm3309_vm1, %v3315_v31  ;;  %v3467_v4 = vld [vmem:[#allocation2 + $0x30] sm:$0xff] (%p1760_p4) }
 0x57e   : >> { %v3289_v42 = vadd.f32 %v3277_v44, %v3265_v16  ;;  %v3271_v12 = vsel %vm4781_vm3, %v3243_v52, 0.0  ;;  %v3246_v8 = vadd.f32 %v3245_v23, %v3197_v20  ;;  %3303 = vst [vmem:[#allocation2 + $0x70] sm:$0xff] %v3291_v54 }
 0x57f   : >> { %v3283_v2 = vadd.f32 %v3271_v12, %v3259_v49  ;;  %v3280_v11 = vsel %vm4781_vm3, %v3254_v17, 0.0  ;;  %3324 = vrot.lane.b32.xlu0 (%p1760_p4), %v3315_v31, %s4381_s29 }
 0x580   : >> { %3301 = vst.msk [vmem:[#allocation2 + $0x58] sm:$0xff] %vm5659_vm15, %v3289_v42  ;;  %v3292_v15 = vadd.f32 %v3280_v11, %v3268_v29  ;;  %v3274_v37 = vsel %vm4781_vm3, %v3246_v8, 0.0  ;;  %1762 = sbr.rel (!%p1760_p4) target bundleno = 490 (0x1ea), region = 89  ;;  %vm3334_vm3 = vcmask (%p1760_p4), 261248  }
 0x581   : >> { %3295 = vst.msk [vmem:[#allocation2 + $0x18] sm:$0xff] %vm5660_vm13, %v3283_v2  ;;  %v3286_v38 = vadd.f32 %v3274_v37, %v3262_v14 }
 0x582   : >> { %3304 = vst.msk [vmem:[#allocation2 + $0x78] sm:$0xff] %vm5661_vm12, %v3292_v15  ;;  %v3316_v40 = vld [vmem:[#allocation2 + $0x48] sm:$0xff] (%p1760_p4) }
 0x583   : >> { %3298 = vst.msk [vmem:[#allocation2 + $0x38] sm:$0xff] %vm5662_vm2, %v3286_v38  ;;  %3326 = vrot.lane.b32.xlu1 (%p1760_p4), %v3316_v40, %s4381_s29  ;;  %3347 = vrot.lane.b32.xlu0 (%p1760_p4), %v3314_v24, %s4398_s12  ;;  %v3469_v55 = vld [vmem:[#allocation2 + $0x50] sm:$0xff] (%p1760_p4) }
 0x584   : > { %v3317_v41 = vld [vmem:[#allocation2 + $0x68] sm:$0xff] (%p1760_p4)  ;;  %3312 = vst.msk [vmem:[#allocation6 + $0x20] sm:$0xff] (%p1760_p4), %vm3309_vm1, %v3316_v40 }
 0x585   : > { %3313 = vst.msk [vmem:[#allocation6 + $0x30] sm:$0xff] (%p1760_p4), %vm3309_vm1, %v3317_v41  ;;  %v3471_v46 = vld [vmem:[#allocation2 + $0x70] sm:$0xff] (%p1760_p4) }
 0x587   : > { %3328 = vrot.lane.b32.xlu1 %v3317_v41, %s4381_s29  ;;  %3351 = vrot.lane.b32.xlu0 %v3316_v40, %s4398_s12  ;;  %s4402_s29 = smov 116   ;;  %v3659_v51 = vld [vmem:[#allocation2 + $0x58] sm:$0xff] }
 0x588   : > { %v3655_v48 = vld [vmem:[#allocation2 + $0x18] sm:$0xff] }
 0x589   : > { %v3661_v58 = vld [vmem:[#allocation2 + $0x78] sm:$0xff] }
 0x58a   : > { %v3657_v50 = vld [vmem:[#allocation2 + $0x38] sm:$0xff] }
 0x58b   : > { %3349 = vrot.lane.b32.xlu1 %v3315_v31, %s4398_s12  ;;  %3372 = vrot.lane.b32.xlu0 %v3314_v24, %s4399_s13 }
 0x58f   : > { %3353 = vrot.lane.b32.xlu1 %v3317_v41, %s4398_s12  ;;  %3376 = vrot.lane.b32.xlu0 %v3316_v40, %s4399_s13 }
 0x593   : > { %3374 = vrot.lane.b32.xlu1 %v3315_v31, %s4399_s13  ;;  %3397 = vrot.lane.b32.xlu0 %v3314_v24, %s4400_s14 }
 0x597   : > { %3378 = vrot.lane.b32.xlu1 %v3317_v41, %s4399_s13  ;;  %3401 = vrot.lane.b32.xlu0 %v3316_v40, %s4400_s14 }
 0x59b   : > { %3399 = vrot.lane.b32.xlu1 %v3315_v31, %s4400_s14  ;;  %3422 = vrot.lane.b32.xlu0 %v3314_v24, %s4401_s15 }
 0x59f   : > { %3403 = vrot.lane.b32.xlu1 %v3317_v41, %s4400_s14  ;;  %3426 = vrot.lane.b32.xlu0 %v3316_v40, %s4401_s15 }
 0x5a3   : > { %3424 = vrot.lane.b32.xlu1 %v3315_v31, %s4401_s15  ;;  %3447 = vrot.lane.b32.xlu0 %v3314_v24, %s4402_s29 }
 0x5a7   : > { %3428 = vrot.lane.b32.xlu1 %v3317_v41, %s4401_s15  ;;  %3451 = vrot.lane.b32.xlu0 %v3316_v40, %s4402_s29 }
 0x5ab   : > { %3449 = vrot.lane.b32.xlu1 %v3315_v31, %s4402_s29  ;;  %3480 = vrot.lane.b32.xlu0 %v3314_v24, %s4403_s16 }
 0x5af   : > { %3453 = vrot.lane.b32.xlu1 %v3317_v41, %s4402_s29  ;;  %3484 = vrot.lane.b32.xlu0 %v3315_v31, %s4403_s16 }
 0x5b3   : > { %3482 = vrot.lane.b32.xlu1 %v3465_v1, %s4403_s16  ;;  %3488 = vrot.lane.b32.xlu0 %v3316_v40, %s4403_s16 }
 0x5b7   : > { %3486 = vrot.lane.b32.xlu1 %v3467_v4, %s4403_s16  ;;  %3492 = vrot.lane.b32.xlu0 %v3317_v41, %s4403_s16 }
 0x5bb   : > { %3490 = vrot.lane.b32.xlu1 %v3469_v55, %s4403_s16  ;;  %3518 = vrot.lane.b32.xlu0 %v3465_v1, %s4404_s17 }
 0x5bf   : > { %3494 = vrot.lane.b32.xlu1 %v3471_v46, %s4403_s16  ;;  %3522 = vrot.lane.b32.xlu0 %v3469_v55, %s4404_s17 }
 0x5c3   : > { %3520 = vrot.lane.b32.xlu1 %v3467_v4, %s4404_s17  ;;  %3542 = vrot.lane.b32.xlu0 %v3465_v1, %s4382_s30 }
 0x5c7   : > { %3524 = vrot.lane.b32.xlu1 %v3471_v46, %s4404_s17  ;;  %3546 = vrot.lane.b32.xlu0 %v3469_v55, %s4382_s30 }
 0x5cb   : > { %3544 = vrot.lane.b32.xlu1 %v3467_v4, %s4382_s30  ;;  %3566 = vrot.lane.b32.xlu0 %v3465_v1, %s4384_s7 }
 0x5cf   : > { %3548 = vrot.lane.b32.xlu1 %v3471_v46, %s4382_s30  ;;  %3570 = vrot.lane.b32.xlu0 %v3469_v55, %s4384_s7  ;;  %s4408_s30 = smov 100  }
 0x5d3   : > { %3568 = vrot.lane.b32.xlu1 %v3467_v4, %s4384_s7  ;;  %3590 = vrot.lane.b32.xlu0 %v3465_v1, %s4405_s19 }
 0x5d7   : > { %3572 = vrot.lane.b32.xlu1 %v3471_v46, %s4384_s7  ;;  %3594 = vrot.lane.b32.xlu0 %v3469_v55, %s4405_s19  ;;  %s4409_s7 = smov 98  }
 0x5db   : > { %3592 = vrot.lane.b32.xlu1 %v3467_v4, %s4405_s19  ;;  %3614 = vrot.lane.b32.xlu0 %v3465_v1, %s4406_s20 }
 0x5df   : > { %3596 = vrot.lane.b32.xlu1 %v3471_v46, %s4405_s19  ;;  %3618 = vrot.lane.b32.xlu0 %v3469_v55, %s4406_s20 }
 0x5e3   : > { %3616 = vrot.lane.b32.xlu1 %v3467_v4, %s4406_s20  ;;  %3638 = vrot.lane.b32.xlu0 %v3465_v1, %s4407_s21 }
 0x5e7   : > { %3620 = vrot.lane.b32.xlu1 %v3471_v46, %s4406_s20  ;;  %3642 = vrot.lane.b32.xlu0 %v3469_v55, %s4407_s21 }
 0x5eb   : > { %3640 = vrot.lane.b32.xlu1 %v3467_v4, %s4407_s21  ;;  %3670 = vrot.lane.b32.xlu0 %v3465_v1, %s4408_s30 }
 0x5ed   : > { %v3323_v7 = vpop.permute.xlu0 %3322 }
 0x5ee   : > { %3335 = vst.msk [vmem:[#allocation6] sm:$0xff] %vm3334_vm3, %v3323_v7 }
 0x5ef   : > { %3644 = vrot.lane.b32.xlu1 %v3471_v46, %s4407_s21  ;;  %3674 = vrot.lane.b32.xlu0 %v3467_v4, %s4408_s30 }
 0x5f1   : > { %v3325_v43 = vpop.permute.xlu0 %3324 }
 0x5f2   : > { %3336 = vst.msk [vmem:[#allocation6 + $0x10] sm:$0xff] %vm3334_vm3, %v3325_v43 }
 0x5f3   : > { %3672 = vrot.lane.b32.xlu1 %v3655_v48, %s4408_s30  ;;  %3678 = vrot.lane.b32.xlu0 %v3469_v55, %s4408_s30 }
 0x5f5   : > { %v3327_v30 = vpop.permute.xlu1 %3326  ;;  %v3348_v63 = vpop.permute.xlu0 %3347 }
 0x5f6   : > { %3337 = vst.msk [vmem:[#allocation6 + $0x20] sm:$0xff] %vm3334_vm3, %v3327_v30 }
 0x5f7   : > { %3676 = vrot.lane.b32.xlu1 %v3657_v50, %s4408_s30  ;;  %3360 = vst.msk [vmem:[#allocation6] sm:$0xff] %vm3359_vm10, %v3348_v63  ;;  %3682 = vrot.lane.b32.xlu0 %v3471_v46, %s4408_s30 }
 0x5f9   : > { %v3329_v56 = vpop.permute.xlu1 %3328  ;;  %v3352_v5 = vpop.permute.xlu0 %3351 }
 0x5fa   : > { %3338 = vst.msk [vmem:[#allocation6 + $0x30] sm:$0xff] %vm3334_vm3, %v3329_v56 }
 0x5fb   : > { %3680 = vrot.lane.b32.xlu1 %v3659_v51, %s4408_s30  ;;  %3362 = vst.msk [vmem:[#allocation6 + $0x20] sm:$0xff] %vm3359_vm10, %v3352_v5  ;;  %3707 = vrot.lane.b32.xlu0 %v3655_v48, %s4409_s7 }
 0x5fd   : > { %v3350_v62 = vpop.permute.xlu1 %3349  ;;  %v3373_v9 = vpop.permute.xlu0 %3372 }
 0x5fe   : > { %3361 = vst.msk [vmem:[#allocation6 + $0x10] sm:$0xff] %vm3359_vm10, %v3350_v62 }
 0x5ff   : > { %3684 = vrot.lane.b32.xlu1 %v3661_v58, %s4408_s30  ;;  %3385 = vst.msk [vmem:[#allocation6] sm:$0xff] %vm3384_vm9, %v3373_v9  ;;  %3711 = vrot.lane.b32.xlu0 %v3659_v51, %s4409_s7 }
 0x601   : > { %v3354_v3 = vpop.permute.xlu1 %3353  ;;  %v3377_v39 = vpop.permute.xlu0 %3376 }
 0x602   : > { %3363 = vst.msk [vmem:[#allocation6 + $0x30] sm:$0xff] %vm3359_vm10, %v3354_v3 }
 0x603   : > { %3709 = vrot.lane.b32.xlu1 %v3657_v50, %s4409_s7  ;;  %3387 = vst.msk [vmem:[#allocation6 + $0x20] sm:$0xff] %vm3384_vm9, %v3377_v39 }
 0x605   : > { %v3375_v60 = vpop.permute.xlu1 %3374  ;;  %v3398_v18 = vpop.permute.xlu0 %3397 }
 0x606   : > { %3386 = vst.msk [vmem:[#allocation6 + $0x10] sm:$0xff] %vm3384_vm9, %v3375_v60 }
 0x607   : > { %3713 = vrot.lane.b32.xlu1 %v3661_v58, %s4409_s7  ;;  %3410 = vst.msk [vmem:[#allocation6] sm:$0xff] %vm3409_vm7, %v3398_v18 }
 0x609   : > { %v3379_v13 = vpop.permute.xlu1 %3378  ;;  %v3402_v25 = vpop.permute.xlu0 %3401 }
 0x60a   : > { %3388 = vst.msk [vmem:[#allocation6 + $0x30] sm:$0xff] %vm3384_vm9, %v3379_v13 }
 0x60b   : > { %3412 = vst.msk [vmem:[#allocation6 + $0x20] sm:$0xff] %vm3409_vm7, %v3402_v25 }
 0x60d   : > { %v3400_v21 = vpop.permute.xlu1 %3399  ;;  %v3423_v36 = vpop.permute.xlu0 %3422 }
 0x60e   : > { %3411 = vst.msk [vmem:[#allocation6 + $0x10] sm:$0xff] %vm3409_vm7, %v3400_v21 }
 0x60f   : > { %3435 = vst.msk [vmem:[#allocation6] sm:$0xff] %vm3434_vm11, %v3423_v36 }
 0x611   : > { %v3404_v45 = vpop.permute.xlu1 %3403  ;;  %v3427_v19 = vpop.permute.xlu0 %3426 }
 0x612   : > { %3413 = vst.msk [vmem:[#allocation6 + $0x30] sm:$0xff] %vm3409_vm7, %v3404_v45 }
 0x613   : > { %3437 = vst.msk [vmem:[#allocation6 + $0x20] sm:$0xff] %vm3434_vm11, %v3427_v19 }
 0x615   : > { %v3425_v27 = vpop.permute.xlu1 %3424  ;;  %v3448_v61 = vpop.permute.xlu0 %3447 }
 0x616   : > { %3436 = vst.msk [vmem:[#allocation6 + $0x10] sm:$0xff] %vm3434_vm11, %v3425_v27 }
 0x617   : > { %3460 = vst.msk [vmem:[#allocation6] sm:$0xff] %vm3459_vm5, %v3448_v61 }
 0x619   : > { %v3429_v0 = vpop.permute.xlu1 %3428  ;;  %v3452_v33 = vpop.permute.xlu0 %3451 }
 0x61a   : > { %3438 = vst.msk [vmem:[#allocation6 + $0x30] sm:$0xff] %vm3434_vm11, %v3429_v0 }
 0x61b   : > { %3462 = vst.msk [vmem:[#allocation6 + $0x20] sm:$0xff] %vm3459_vm5, %v3452_v33 }
 0x61d   : > { %v3450_v32 = vpop.permute.xlu1 %3449  ;;  %v3481_v28 = vpop.permute.xlu0 %3480 }
 0x61e   : > { %3461 = vst.msk [vmem:[#allocation6 + $0x10] sm:$0xff] %vm3459_vm5, %v3450_v32 }
 0x621   : > { %v3454_v6 = vpop.permute.xlu1 %3453  ;;  %v3485_v34 = vpop.permute.xlu0 %3484 }
 0x622   : > { %3463 = vst.msk [vmem:[#allocation6 + $0x30] sm:$0xff] %vm3459_vm5, %v3454_v6 }
 0x625   : > { %v3483_v26 = vpop.permute.xlu1 %3482  ;;  %v3489_v57 = vpop.permute.xlu0 %3488 }
 0x626   : > { %v3497_v10 = vsel %vm3496_vm8, %v3481_v28, %v3483_v26 }
 0x627   : > { %3506 = vst.msk [vmem:[#allocation6] sm:$0xff] %vm3505_vm6, %v3497_v10 }
 0x629   : > { %v3487_v22 = vpop.permute.xlu1 %3486  ;;  %v3493_v49 = vpop.permute.xlu0 %3492 }
 0x62a   : > { %v3498_v16 = vsel %vm3496_vm8, %v3485_v34, %v3487_v22 }
 0x62b   : > { %3507 = vst.msk [vmem:[#allocation6 + $0x10] sm:$0xff] %vm3505_vm6, %v3498_v16 }
 0x62d   : > { %v3491_v35 = vpop.permute.xlu1 %3490  ;;  %v3519_v44 = vpop.permute.xlu0 %3518 }
 0x62e   : > { %v3723_v53 = vld [vmem:[#allocation6] sm:$0xff]  ;;  %v3499_v47 = vsel %vm3496_vm8, %v3489_v57, %v3491_v35  ;;  %3530 = vst.msk [vmem:[#allocation6 + $0x8] sm:$0xff] %vm3309_vm1, %v3519_v44 }
 0x62f   : > { %3731 = vst [vmem:[%s4451_s24] sm:$0xff] %v3723_v53  ;;  %3508 = vst.msk [vmem:[#allocation6 + $0x20] sm:$0xff] %vm3505_vm6, %v3499_v47 }
 0x631   : > { %v3495_v52 = vpop.permute.xlu1 %3494  ;;  %v3523_v23 = vpop.permute.xlu0 %3522 }
 0x632   : > { %v3725_v59 = vld [vmem:[#allocation6 + $0x10] sm:$0xff]  ;;  %v3500_v20 = vsel %vm3496_vm8, %v3493_v49, %v3495_v52  ;;  %3532 = vst.msk [vmem:[#allocation6 + $0x28] sm:$0xff] %vm3309_vm1, %v3523_v23 }
 0x633   : > { %3733 = vst [vmem:[%s4451_s24 + $0x10] sm:$0xff] %v3725_v59  ;;  %3509 = vst.msk [vmem:[#allocation6 + $0x30] sm:$0xff] %vm3505_vm6, %v3500_v20 }
 0x635   : > { %v3521_v54 = vpop.permute.xlu1 %3520  ;;  %v3543_v8 = vpop.permute.xlu0 %3542 }
 0x636   : > { %v3727_v17 = vld [vmem:[#allocation6 + $0x20] sm:$0xff]  ;;  %3531 = vst.msk [vmem:[#allocation6 + $0x18] sm:$0xff] %vm3309_vm1, %v3521_v54 }
 0x637   : > { %3735 = vst [vmem:[%s4451_s24 + $0x20] sm:$0xff] %v3727_v17  ;;  %3554 = vst.msk [vmem:[#allocation6 + $0x8] sm:$0xff] %vm3334_vm3, %v3543_v8 }
 0x639   : > { %v3525_v29 = vpop.permute.xlu1 %3524  ;;  %v3547_v2 = vpop.permute.xlu0 %3546 }
 0x63a   : > { %v3729_v42 = vld [vmem:[#allocation6 + $0x30] sm:$0xff]  ;;  %3533 = vst.msk [vmem:[#allocation6 + $0x38] sm:$0xff] %vm3309_vm1, %v3525_v29 }
 0x63b   : > { %3737 = vst [vmem:[%s4451_s24 + $0x30] sm:$0xff] %v3729_v42  ;;  %3556 = vst.msk [vmem:[#allocation6 + $0x28] sm:$0xff] %vm3334_vm3, %v3547_v2 }
 0x63d   : > { %v3545_v12 = vpop.permute.xlu1 %3544  ;;  %v3567_v15 = vpop.permute.xlu0 %3566 }
 0x63e   : > { %3555 = vst.msk [vmem:[#allocation6 + $0x18] sm:$0xff] %vm3334_vm3, %v3545_v12 }
 0x63f   : > { %3578 = vst.msk [vmem:[#allocation6 + $0x8] sm:$0xff] %vm3359_vm10, %v3567_v15 }
 0x641   : > { %v3549_v14 = vpop.permute.xlu1 %3548  ;;  %v3571_v38 = vpop.permute.xlu0 %3570 }
 0x642   : > { %3557 = vst.msk [vmem:[#allocation6 + $0x38] sm:$0xff] %vm3334_vm3, %v3549_v14 }
 0x643   : > { %3580 = vst.msk [vmem:[#allocation6 + $0x28] sm:$0xff] %vm3359_vm10, %v3571_v38 }
 0x645   : > { %v3569_v11 = vpop.permute.xlu1 %3568  ;;  %v3591_v24 = vpop.permute.xlu0 %3590 }
 0x646   : > { %3579 = vst.msk [vmem:[#allocation6 + $0x18] sm:$0xff] %vm3359_vm10, %v3569_v11 }
 0x647   : > { %3602 = vst.msk [vmem:[#allocation6 + $0x8] sm:$0xff] %vm3384_vm9, %v3591_v24 }
 0x649   : > { %v3573_v37 = vpop.permute.xlu1 %3572  ;;  %v3595_v31 = vpop.permute.xlu0 %3594 }
 0x64a   : > { %3581 = vst.msk [vmem:[#allocation6 + $0x38] sm:$0xff] %vm3359_vm10, %v3573_v37 }
 0x64b   : > { %3604 = vst.msk [vmem:[#allocation6 + $0x28] sm:$0xff] %vm3384_vm9, %v3595_v31 }
 0x64d   : > { %v3593_v40 = vpop.permute.xlu1 %3592  ;;  %v3615_v4 = vpop.permute.xlu0 %3614 }
 0x64e   : > { %3603 = vst.msk [vmem:[#allocation6 + $0x18] sm:$0xff] %vm3384_vm9, %v3593_v40 }
 0x64f   : > { %3626 = vst.msk [vmem:[#allocation6 + $0x8] sm:$0xff] %vm3409_vm7, %v3615_v4 }
 0x651   : > { %v3597_v41 = vpop.permute.xlu1 %3596  ;;  %v3619_v46 = vpop.permute.xlu0 %3618 }
 0x652   : > { %3605 = vst.msk [vmem:[#allocation6 + $0x38] sm:$0xff] %vm3384_vm9, %v3597_v41 }
 0x653   : > { %3628 = vst.msk [vmem:[#allocation6 + $0x28] sm:$0xff] %vm3409_vm7, %v3619_v46 }
 0x655   : > { %v3617_v1 = vpop.permute.xlu1 %3616  ;;  %v3639_v50 = vpop.permute.xlu0 %3638 }
 0x656   : > { %3627 = vst.msk [vmem:[#allocation6 + $0x18] sm:$0xff] %vm3409_vm7, %v3617_v1 }
 0x657   : > { %3650 = vst.msk [vmem:[#allocation6 + $0x8] sm:$0xff] %vm3434_vm11, %v3639_v50 }
 0x659   : > { %v3621_v55 = vpop.permute.xlu1 %3620  ;;  %v3643_v7 = vpop.permute.xlu0 %3642 }
 0x65a   : > { %3629 = vst.msk [vmem:[#allocation6 + $0x38] sm:$0xff] %vm3409_vm7, %v3621_v55 }
 0x65b   : > { %3652 = vst.msk [vmem:[#allocation6 + $0x28] sm:$0xff] %vm3434_vm11, %v3643_v7 }
 0x65d   : > { %v3641_v48 = vpop.permute.xlu1 %3640  ;;  %v3671_v56 = vpop.permute.xlu0 %3670 }
 0x65e   : > { %3651 = vst.msk [vmem:[#allocation6 + $0x18] sm:$0xff] %vm3434_vm11, %v3641_v48 }
 0x661   : > { %v3645_v30 = vpop.permute.xlu1 %3644  ;;  %v3675_v62 = vpop.permute.xlu0 %3674 }
 0x662   : > { %3653 = vst.msk [vmem:[#allocation6 + $0x38] sm:$0xff] %vm3434_vm11, %v3645_v30 }
 0x665   : > { %v3673_v51 = vpop.permute.xlu1 %3672  ;;  %v3679_v5 = vpop.permute.xlu0 %3678 }
 0x666   : > { %v3687_v43 = vsel %vm3686_vm4, %v3671_v56, %v3673_v51 }
 0x667   : > { %3695 = vst.msk [vmem:[#allocation6 + $0x8] sm:$0xff] %vm3459_vm5, %v3687_v43 }
 0x669   : > { %v3677_v58 = vpop.permute.xlu1 %3676  ;;  %v3683_v13 = vpop.permute.xlu0 %3682 }
 0x66a   : > { %v3688_v63 = vsel %vm3686_vm4, %v3675_v62, %v3677_v58 }
 0x66b   : > { %3696 = vst.msk [vmem:[#allocation6 + $0x18] sm:$0xff] %vm3459_vm5, %v3688_v63 }
 0x66d   : > { %v3681_v3 = vpop.permute.xlu1 %3680  ;;  %v3708_v18 = vpop.permute.xlu0 %3707 }
 0x66e   : > { %v3689_v60 = vsel %vm3686_vm4, %v3679_v5, %v3681_v3  ;;  %3719 = vst.msk [vmem:[#allocation6 + $0x8] sm:$0xff] %vm3505_vm6, %v3708_v18 }
 0x66f   : > { %3697 = vst.msk [vmem:[#allocation6 + $0x28] sm:$0xff] %vm3459_vm5, %v3689_v60 }
 0x671   : > { %v3685_v9 = vpop.permute.xlu1 %3684  ;;  %v3712_v25 = vpop.permute.xlu0 %3711 }
 0x672   : > { %v3690_v39 = vsel %vm3686_vm4, %v3683_v13, %v3685_v9  ;;  %3721 = vst.msk [vmem:[#allocation6 + $0x28] sm:$0xff] %vm3505_vm6, %v3712_v25 }
 0x673   : > { %3698 = vst.msk [vmem:[#allocation6 + $0x38] sm:$0xff] %vm3459_vm5, %v3690_v39 }
 0x675   : > { %v3710_v21 = vpop.permute.xlu1 %3709  ;;  %v3724_v36 = vld [vmem:[#allocation6 + $0x8] sm:$0xff] }
 0x676   : > { %3720 = vst.msk [vmem:[#allocation6 + $0x18] sm:$0xff] %vm3505_vm6, %v3710_v21  ;;  %3732 = vst [vmem:[%s4451_s24 + $0x8] sm:$0xff] %v3724_v36 }
 0x679   : > { %v3714_v45 = vpop.permute.xlu1 %3713  ;;  %v3728_v19 = vld [vmem:[#allocation6 + $0x28] sm:$0xff] }
 0x67a   : > { %3722 = vst.msk [vmem:[#allocation6 + $0x38] sm:$0xff] %vm3505_vm6, %v3714_v45  ;;  %3736 = vst [vmem:[%s4451_s24 + $0x28] sm:$0xff] %v3728_v19 }
 0x67d   : > { %v3726_v27 = vld [vmem:[#allocation6 + $0x18] sm:$0xff] }
 0x67e   : > { %3734 = vst [vmem:[%s4451_s24 + $0x18] sm:$0xff] %v3726_v27 }
 0x681   : > { %v3730_v0 = vld [vmem:[#allocation6 + $0x38] sm:$0xff] }
 0x682   : > { %3738 = vst [vmem:[%s4451_s24 + $0x38] sm:$0xff] %v3730_v0 }
 0x683 PF: > { %s15_s18 = sadd.s32 1, %s4373_s18  }
 0x684   : > { %p12_p5 = scmp.ge.s32.totalorder %s15_s18, 4  }
 0x686   :  { %14 = sbr.rel (!%p12_p5) target bundleno = 1 (0x1), region = 100 }

</bundles_post_ra>
